<compile_context>
chip_gen: v6e
topology: v6e:2x2x1
jax: 0.10.0
libtpu: 0.0.40
codegen_flags: <defaults>
</compile_context>

<pallas_src>
import functools

import jax
import jax.numpy as jnp
from jax import lax
from jax.experimental import pallas as pl
from jax.experimental.pallas import tpu as pltpu


# ---------------------------------------------------------------------------
# Kernel 1: 1x1 convolution == row-tiled linear  y = x @ W + b
# ---------------------------------------------------------------------------
def _proj_kernel(x_ref, w_ref, b_ref, o_ref):
    acc = jnp.dot(x_ref[...], w_ref[...], preferred_element_type=jnp.float32)
    o_ref[...] = (acc + b_ref[...]).astype(o_ref.dtype)


def linear_pallas(x2d, w, b2d, *, tile_n=512):
    """x2d: (N, Cin); w: (Cin, Cout); b2d: (1, Cout) -> (N, Cout)."""
    n, cin = x2d.shape
    cout = w.shape[1]
    tn = n if n <= tile_n else tile_n          # tn==n or tn=512 (divisible by 8)
    return pl.pallas_call(
        _proj_kernel,
        out_shape=jax.ShapeDtypeStruct((n, cout), x2d.dtype),
        grid=(pl.cdiv(n, tn),),
        in_specs=[
            pl.BlockSpec((tn, cin), lambda i: (i, 0)),
            pl.BlockSpec((cin, cout), lambda i: (0, 0)),   # weight resident
            pl.BlockSpec((1, cout), lambda i: (0, 0)),
        ],
        out_specs=pl.BlockSpec((tn, cout), lambda i: (i, 0)),
        compiler_params=pltpu.CompilerParams(
            dimension_semantics=("parallel",)),
    )(x2d, w, b2d)


# ---------------------------------------------------------------------------
# Kernel 2: all-heads attention for one batch element per grid step.
# qkv tile: (HW, 3C) heads-packed; output tile: (HW, C) (lane-dense store).
# ---------------------------------------------------------------------------
def _attn_kernel(qkv_ref, o_ref, *, num_heads, head_dim, channels, kv_chunk):
    hw = qkv_ref.shape[1]
    n_chunks = hw // kv_chunk

    qkv = qkv_ref[0]                               # (HW, 3C) -- single dense load
    q = qkv[:, 0:channels]                         # scale already folded into Wq
    k = qkv[:, channels:2 * channels]
    v = qkv[:, 2 * channels:3 * channels]

    head_outs = []
    for h in range(num_heads):                     # static unroll over heads
        lo = h * head_dim
        qh = q[:, lo:lo + head_dim]                # (HW, hd)
        kh = k[:, lo:lo + head_dim]
        vh = v[:, lo:lo + head_dim]

        m = jnp.full((hw, 1), -jnp.inf, dtype=jnp.float32)
        l = jnp.zeros((hw, 1), dtype=jnp.float32)
        acc = jnp.zeros((hw, head_dim), dtype=jnp.float32)

        for c in range(n_chunks):                  # flash-style online softmax
            ks = kh[c * kv_chunk:(c + 1) * kv_chunk, :]
            vs = vh[c * kv_chunk:(c + 1) * kv_chunk, :]
            # contract last dims of both operands -> no k transpose materialised
            s = lax.dot_general(qh, ks, (((1,), (1,)), ((), ())),
                                preferred_element_type=jnp.float32)   # (HW, chunk)
            m_new = jnp.maximum(m, jnp.max(s, axis=-1, keepdims=True))
            alpha = jnp.exp(m - m_new)
            p = jnp.exp(s - m_new)
            l = alpha * l + jnp.sum(p, axis=-1, keepdims=True)
            acc = alpha * acc + jnp.dot(p.astype(vs.dtype), vs,
                                        preferred_element_type=jnp.float32)
            m = m_new

        head_outs.append(acc * pl.reciprocal(l, approx=True))

    out = jnp.concatenate(head_outs, axis=-1)      # (HW, C): lane-dense write
    o_ref[0] = out.astype(o_ref.dtype)


def attention_pallas(qkv, *, num_heads, channels):
    """qkv: (B, HW, 3C) heads-packed -> (B, HW, C)."""
    b, hw, three_c = qkv.shape
    hd = channels // num_heads
    kv_chunk = hw if hw <= 512 else 512
    if hw % kv_chunk != 0:
        kv_chunk = hw
    kernel = functools.partial(_attn_kernel, num_heads=num_heads, head_dim=hd,
                               channels=channels, kv_chunk=kv_chunk)
    return pl.pallas_call(
        kernel,
        out_shape=jax.ShapeDtypeStruct((b, hw, channels), qkv.dtype),
        grid=(b,),
        in_specs=[pl.BlockSpec((1, hw, three_c), lambda i: (i, 0, 0))],
        out_specs=pl.BlockSpec((1, hw, channels), lambda i: (i, 0, 0)),
        compiler_params=pltpu.CompilerParams(
            dimension_semantics=("parallel",)),
    )(qkv)


# ---------------------------------------------------------------------------
# Parameter prep (one-time): fuse QKV weights, fold softmax scale into Wq/bq.
# PyTorch Conv2d 1x1 weight layout: (Cout, Cin); bias: (Cout,)
# ---------------------------------------------------------------------------
def prepare_params(params, num_heads, in_channels):
    hd = in_channels // num_heads
    scale = float(hd) ** (-0.5)
    w_qkv = jnp.concatenate(
        [params["wq"] * scale, params["wk"], params["wv"]], axis=0).T   # (C, 3C)
    b_qkv = jnp.concatenate(
        [params["bq"] * scale, params["bk"], params["bv"]]).reshape(1, -1)
    return dict(w_qkv=w_qkv, b_qkv=b_qkv,
                w_o=params["wo"].T, b_o=params["bo"].reshape(1, -1))


# ---------------------------------------------------------------------------
# Full forward pass
# ---------------------------------------------------------------------------
def self_attention_forward(x_nchw, prep, *, num_heads):
    B, C, H, W = x_nchw.shape
    assert C % num_heads == 0
    HW = H * W

    # NCHW -> (B*HW, C)  (NHWC flattened): only layout conversion left in XLA.
    x = jnp.transpose(x_nchw, (0, 2, 3, 1)).reshape(B * HW, C)

    qkv = linear_pallas(x, prep["w_qkv"], prep["b_qkv"])       # (B*HW, 3C), fused
    qkv = qkv.reshape(B, HW, 3 * C)                            # free reshape

    o = attention_pallas(qkv, num_heads=num_heads, channels=C)  # (B, HW, C)

    o = linear_pallas(o.reshape(B * HW, C), prep["w_o"], prep["b_o"])

    return jnp.transpose(o.reshape(B, H, W, C), (0, 3, 1, 2))   # back to NCHW


# ---------------------------------------------------------------------------
# Deterministic parameter init (Conv2d 1x1 -> weight (Cout, Cin), bias (Cout,))
# ---------------------------------------------------------------------------
def init_params(key, in_channels):
    keys = jax.random.split(key, 8)
    bound = 1.0 / (in_channels ** 0.5)

    def conv_init(kw, kb):
        w = jax.random.uniform(kw, (in_channels, in_channels), jnp.float32,
                               -bound, bound)
        b = jax.random.uniform(kb, (in_channels,), jnp.float32, -bound, bound)
        return w, b

    wq, bq = conv_init(keys[0], keys[1])
    wk, bk = conv_init(keys[2], keys[3])
    wv, bv = conv_init(keys[4], keys[5])
    wo, bo = conv_init(keys[6], keys[7])
    return dict(wq=wq, bq=bq, wk=wk, bk=bk, wv=wv, bv=bv, wo=wo, bo=bo)


# ---------------------------------------------------------------------------
# Pure-JAX reference (mirrors the PyTorch forward) for a sanity check.
# ---------------------------------------------------------------------------
def reference_forward(x_nchw, params, num_heads):
    B, C, H, W = x_nchw.shape
    hd = C // num_heads
    HW = H * W

    def conv1x1(x, w, b):
        return jnp.einsum("bchw,oc->bohw", x, w) + b[None, :, None, None]

    q = conv1x1(x_nchw, params["wq"], params["bq"])
    k = conv1x1(x_nchw, params["wk"], params["bk"])
    v = conv1x1(x_nchw, params["wv"], params["bv"])

    def heads(t):
        return t.reshape(B, num_heads, hd, HW).transpose(0, 1, 3, 2)

    q, k, v = heads(q), heads(k), heads(v)
    q = q * (float(hd) ** -0.5)
    s = jnp.einsum("bhqd,bhkd->bhqk", q, k)
    p = jax.nn.softmax(s, axis=-1)
    o = jnp.einsum("bhqk,bhkd->bhqd", p, v)
    o = o.transpose(0, 2, 1, 3).reshape(B, H, W, C).transpose(0, 3, 1, 2)
    return conv1x1(o, params["wo"], params["bo"])


if __name__ == "__main__":
    B, C, H, W = 2, 32, 8, 8
    num_heads = 8

    key = jax.random.PRNGKey(0)
    kx, kp = jax.random.split(key)
    x = jax.random.normal(kx, (B, C, H, W), jnp.float32)
    params = init_params(kp, C)
    prep = prepare_params(params, num_heads, C)

    fwd = jax.jit(functools.partial(self_attention_forward, num_heads=num_heads))
    out = jax.block_until_ready(fwd(x, prep))

    ref = reference_forward(x, params, num_heads)
    assert out.shape == (B, C, H, W)
    # tolerance accommodates pl.reciprocal(approx=True) in the softmax denom
    assert jnp.allclose(out, ref, atol=3e-2, rtol=3e-2), (
        f"max err {jnp.max(jnp.abs(out - ref))}")

    print("KERNEL_OK")
</pallas_src>

<mosaic_0001>
module attributes {stable_mosaic.version = 11 : i64} {
  func.func @_proj_kernel(%arg0: i32, %arg1: memref<128x32xf32, #tpu.memory_space<vmem>>, %arg2: memref<32x32xf32, #tpu.memory_space<vmem>>, %arg3: memref<1x32xf32, #tpu.memory_space<vmem>>, %arg4: memref<128x32xf32, #tpu.memory_space<vmem>>) attributes {dimension_semantics = [#tpu.dimension_semantics<parallel>], iteration_bounds = array<i64: 1>, scalar_prefetch = 0 : i64, scratch_operands = 0 : i64, tpu.core_type = #tpu.core_type<tc>, window_params = [{transform_indices = @transform_0, window_bounds = array<i64: 128, 32>}, {pipeline_mode = #tpu.pipeline_mode<synchronous>, transform_indices = @transform_1, window_bounds = array<i64: 32, 32>}, {pipeline_mode = #tpu.pipeline_mode<synchronous>, transform_indices = @transform_2, window_bounds = array<i64: 1, 32>}, {transform_indices = @transform_3, window_bounds = array<i64: 128, 32>}]} {
    %c0 = arith.constant 0 : index
    %c0_0 = arith.constant 0 : index
    %0 = vector.load %arg1[%c0, %c0_0] : memref<128x32xf32, #tpu.memory_space<vmem>>, vector<128x32xf32>
    %c0_1 = arith.constant 0 : index
    %c0_2 = arith.constant 0 : index
    %1 = vector.load %arg2[%c0_1, %c0_2] : memref<32x32xf32, #tpu.memory_space<vmem>>, vector<32x32xf32>
    %cst = arith.constant dense<0.000000e+00> : vector<128x32xf32>
    %2 = tpu.matmul %0, %1, %cst {dimension_numbers = #tpu.dot_dimension_numbers<[1], [0], [0], [1], [0, 0, 1, 1], [], []>} : vector<128x32xf32>, vector<32x32xf32>, vector<128x32xf32> -> vector<128x32xf32>
    %c0_3 = arith.constant 0 : index
    %c0_4 = arith.constant 0 : index
    %3 = vector.load %arg3[%c0_3, %c0_4] : memref<1x32xf32, #tpu.memory_space<vmem>>, vector<1x32xf32>
    %4 = vector.broadcast %3 : vector<1x32xf32> to vector<128x32xf32>
    %5 = arith.addf %2, %4 : vector<128x32xf32>
    %c0_5 = arith.constant 0 : index
    %c0_6 = arith.constant 0 : index
    %6 = vector.load %arg4[%c0_5, %c0_6] : memref<128x32xf32, #tpu.memory_space<vmem>>, vector<128x32xf32>
    tpu.vector_store %arg4[%c0_5, %c0_6], %5 {strides = array<i32>} : memref<128x32xf32, #tpu.memory_space<vmem>>, vector<128x32xf32>,
    return
  }
  func.func @transform_0(%arg0: i32) -> (i32, i32) {
    %c0_i32 = arith.constant 0 : i32
    %c0_i32_0 = arith.constant 0 : i32
    return %arg0, %c0_i32 : i32, i32
  }
  func.func @transform_1(%arg0: i32) -> (i32, i32) {
    %c0_i32 = arith.constant 0 : i32
    %c0_i32_0 = arith.constant 0 : i32
    %c0_i32_1 = arith.constant 0 : i32
    return %c0_i32, %c0_i32_0 : i32, i32
  }
  func.func @transform_2(%arg0: i32) -> (i32, i32) {
    %c0_i32 = arith.constant 0 : i32
    %c0_i32_0 = arith.constant 0 : i32
    %c0_i32_1 = arith.constant 0 : i32
    return %c0_i32, %c0_i32_0 : i32, i32
  }
  func.func @transform_3(%arg0: i32) -> (i32, i32) {
    %c0_i32 = arith.constant 0 : i32
    %c0_i32_0 = arith.constant 0 : i32
    return %arg0, %c0_i32 : i32, i32
  }
}

module attributes {stable_mosaic.version = 11 : i64} {
  func.func @_proj_kernel(%arg0: i32, %arg1: memref<128x32xf32, #tpu.memory_space<vmem>>, %arg2: memref<32x96xf32, #tpu.memory_space<vmem>>, %arg3: memref<1x96xf32, #tpu.memory_space<vmem>>, %arg4: memref<128x96xf32, #tpu.memory_space<vmem>>) attributes {dimension_semantics = [#tpu.dimension_semantics<parallel>], iteration_bounds = array<i64: 1>, scalar_prefetch = 0 : i64, scratch_operands = 0 : i64, tpu.core_type = #tpu.core_type<tc>, window_params = [{transform_indices = @transform_0, window_bounds = array<i64: 128, 32>}, {pipeline_mode = #tpu.pipeline_mode<synchronous>, transform_indices = @transform_1, window_bounds = array<i64: 32, 96>}, {pipeline_mode = #tpu.pipeline_mode<synchronous>, transform_indices = @transform_2, window_bounds = array<i64: 1, 96>}, {transform_indices = @transform_3, window_bounds = array<i64: 128, 96>}]} {
    %c0 = arith.constant 0 : index
    %c0_0 = arith.constant 0 : index
    %0 = vector.load %arg1[%c0, %c0_0] : memref<128x32xf32, #tpu.memory_space<vmem>>, vector<128x32xf32>
    %c0_1 = arith.constant 0 : index
    %c0_2 = arith.constant 0 : index
    %1 = vector.load %arg2[%c0_1, %c0_2] : memref<32x96xf32, #tpu.memory_space<vmem>>, vector<32x96xf32>
    %cst = arith.constant dense<0.000000e+00> : vector<128x96xf32>
    %2 = tpu.matmul %0, %1, %cst {dimension_numbers = #tpu.dot_dimension_numbers<[1], [0], [0], [1], [0, 0, 1, 1], [], []>} : vector<128x32xf32>, vector<32x96xf32>, vector<128x96xf32> -> vector<128x96xf32>
    %c0_3 = arith.constant 0 : index
    %c0_4 = arith.constant 0 : index
    %3 = vector.load %arg3[%c0_3, %c0_4] : memref<1x96xf32, #tpu.memory_space<vmem>>, vector<1x96xf32>
    %4 = vector.broadcast %3 : vector<1x96xf32> to vector<128x96xf32>
    %5 = arith.addf %2, %4 : vector<128x96xf32>
    %c0_5 = arith.constant 0 : index
    %c0_6 = arith.constant 0 : index
    %6 = vector.load %arg4[%c0_5, %c0_6] : memref<128x96xf32, #tpu.memory_space<vmem>>, vector<128x96xf32>
    tpu.vector_store %arg4[%c0_5, %c0_6], %5 {strides = array<i32>} : memref<128x96xf32, #tpu.memory_space<vmem>>, vector<128x96xf32>,
    return
  }
  func.func @transform_0(%arg0: i32) -> (i32, i32) {
    %c0_i32 = arith.constant 0 : i32
    %c0_i32_0 = arith.constant 0 : i32
    return %arg0, %c0_i32 : i32, i32
  }
  func.func @transform_1(%arg0: i32) -> (i32, i32) {
    %c0_i32 = arith.constant 0 : i32
    %c0_i32_0 = arith.constant 0 : i32
    %c0_i32_1 = arith.constant 0 : i32
    return %c0_i32, %c0_i32_0 : i32, i32
  }
  func.func @transform_2(%arg0: i32) -> (i32, i32) {
    %c0_i32 = arith.constant 0 : i32
    %c0_i32_0 = arith.constant 0 : i32
    %c0_i32_1 = arith.constant 0 : i32
    return %c0_i32, %c0_i32_0 : i32, i32
  }
  func.func @transform_3(%arg0: i32) -> (i32, i32) {
    %c0_i32 = arith.constant 0 : i32
    %c0_i32_0 = arith.constant 0 : i32
    return %arg0, %c0_i32 : i32, i32
  }
}

module attributes {stable_mosaic.version = 11 : i64} {
  func.func @_attn_kernel(%arg0: i32, %arg1: memref<1x64x96xf32, #tpu.memory_space<vmem>>, %arg2: memref<1x64x32xf32, #tpu.memory_space<vmem>>) attributes {dimension_semantics = [#tpu.dimension_semantics<parallel>], iteration_bounds = array<i64: 2>, scalar_prefetch = 0 : i64, scratch_operands = 0 : i64, tpu.core_type = #tpu.core_type<tc>, window_params = [{transform_indices = @transform_0, window_bounds = array<i64: 1, 64, 96>}, {transform_indices = @transform_1, window_bounds = array<i64: 1, 64, 32>}]} {
    %c0 = arith.constant 0 : index
    %c0_0 = arith.constant 0 : index
    %c0_1 = arith.constant 0 : index
    %0 = vector.load %arg1[%c0, %c0_0, %c0_1] : memref<1x64x96xf32, #tpu.memory_space<vmem>>, vector<1x64x96xf32>
    %1 = vector.shape_cast %0 : vector<1x64x96xf32> to vector<64x96xf32>
    %2 = vector.extract_strided_slice %1 {offsets = [0, 0], sizes = [64, 32], strides = [1, 1]} : vector<64x96xf32> to vector<64x32xf32>
    %3 = vector.extract_strided_slice %1 {offsets = [0, 32], sizes = [64, 32], strides = [1, 1]} : vector<64x96xf32> to vector<64x32xf32>
    %4 = vector.extract_strided_slice %1 {offsets = [0, 64], sizes = [64, 32], strides = [1, 1]} : vector<64x96xf32> to vector<64x32xf32>
    %5 = vector.extract_strided_slice %2 {offsets = [0, 0], sizes = [64, 4], strides = [1, 1]} : vector<64x32xf32> to vector<64x4xf32>
    %6 = vector.extract_strided_slice %3 {offsets = [0, 0], sizes = [64, 4], strides = [1, 1]} : vector<64x32xf32> to vector<64x4xf32>
    %7 = vector.extract_strided_slice %4 {offsets = [0, 0], sizes = [64, 4], strides = [1, 1]} : vector<64x32xf32> to vector<64x4xf32>
    %cst = arith.constant 0xFF800000 : f32
    %8 = vector.broadcast %cst : f32 to vector<64x1xf32>
    %cst_2 = arith.constant 0.000000e+00 : f32
    %9 = vector.broadcast %cst_2 : f32 to vector<64x1xf32>
    %cst_3 = arith.constant 0.000000e+00 : f32
    %10 = vector.broadcast %cst_3 : f32 to vector<64x4xf32>
    %cst_4 = arith.constant dense<0.000000e+00> : vector<64x64xf32>
    %11 = tpu.matmul %5, %6, %cst_4 {dimension_numbers = #tpu.dot_dimension_numbers<[1], [1], [0], [0], [0, 0, 1, 0], [], []>} : vector<64x4xf32>, vector<64x4xf32>, vector<64x64xf32> -> vector<64x64xf32>
    %cst_5 = arith.constant dense<0xFF800000> : vector<64xf32>
    %12 = vector.multi_reduction <maximumf>, %11, %cst_5 [1] : vector<64x64xf32> to vector<64xf32>
    %13 = vector.shape_cast %12 : vector<64xf32> to vector<64x1xf32>
    %14 = arith.maximumf %8, %13 : vector<64x1xf32>
    %15 = arith.subf %8, %14 : vector<64x1xf32>
    %16 = math.exp %15 : vector<64x1xf32>
    %17 = vector.broadcast %14 : vector<64x1xf32> to vector<64x64xf32>
    %18 = arith.subf %11, %17 : vector<64x64xf32>
    %19 = math.exp %18 : vector<64x64xf32>
    %20 = arith.mulf %16, %9 : vector<64x1xf32>
    %cst_6 = arith.constant dense<0.000000e+00> : vector<64xf32>
    %21 = vector.multi_reduction <add>, %19, %cst_6 [1] : vector<64x64xf32> to vector<64xf32>
    %22 = vector.shape_cast %21 : vector<64xf32> to vector<64x1xf32>
    %23 = arith.addf %20, %22 : vector<64x1xf32>
    %24 = vector.broadcast %16 : vector<64x1xf32> to vector<64x4xf32>
    %25 = arith.mulf %24, %10 : vector<64x4xf32>
    %cst_7 = arith.constant dense<0.000000e+00> : vector<64x4xf32>
    %26 = tpu.matmul %19, %7, %cst_7 {dimension_numbers = #tpu.dot_dimension_numbers<[1], [0], [0], [1], [0, 0, 1, 1], [], []>} : vector<64x64xf32>, vector<64x4xf32>, vector<64x4xf32> -> vector<64x4xf32>
    %27 = arith.addf %25, %26 : vector<64x4xf32>
    %28 = tpu.reciprocal %23 {approx = true} : vector<64x1xf32> -> vector<64x1xf32>
    %29 = vector.broadcast %28 : vector<64x1xf32> to vector<64x4xf32>
    %30 = arith.mulf %27, %29 : vector<64x4xf32>
    %31 = vector.extract_strided_slice %2 {offsets = [0, 4], sizes = [64, 4], strides = [1, 1]} : vector<64x32xf32> to vector<64x4xf32>
    %32 = vector.extract_strided_slice %3 {offsets = [0, 4], sizes = [64, 4], strides = [1, 1]} : vector<64x32xf32> to vector<64x4xf32>
    %33 = vector.extract_strided_slice %4 {offsets = [0, 4], sizes = [64, 4], strides = [1, 1]} : vector<64x32xf32> to vector<64x4xf32>
    %cst_8 = arith.constant 0xFF800000 : f32
    %34 = vector.broadcast %cst_8 : f32 to vector<64x1xf32>
    %cst_9 = arith.constant 0.000000e+00 : f32
    %35 = vector.broadcast %cst_9 : f32 to vector<64x1xf32>
    %cst_10 = arith.constant 0.000000e+00 : f32
    %36 = vector.broadcast %cst_10 : f32 to vector<64x4xf32>
    %cst_11 = arith.constant dense<0.000000e+00> : vector<64x64xf32>
    %37 = tpu.matmul %31, %32, %cst_11 {dimension_numbers = #tpu.dot_dimension_numbers<[1], [1], [0], [0], [0, 0, 1, 0], [], []>} : vector<64x4xf32>, vector<64x4xf32>, vector<64x64xf32> -> vector<64x64xf32>
    %cst_12 = arith.constant dense<0xFF800000> : vector<64xf32>
    %38 = vector.multi_reduction <maximumf>, %37, %cst_12 [1] : vector<64x64xf32> to vector<64xf32>
    %39 = vector.shape_cast %38 : vector<64xf32> to vector<64x1xf32>
    %40 = arith.maximumf %34, %39 : vector<64x1xf32>
    %41 = arith.subf %34, %40 : vector<64x1xf32>
    %42 = math.exp %41 : vector<64x1xf32>
    %43 = vector.broadcast %40 : vector<64x1xf32> to vector<64x64xf32>
    %44 = arith.subf %37, %43 : vector<64x64xf32>
    %45 = math.exp %44 : vector<64x64xf32>
    %46 = arith.mulf %42, %35 : vector<64x1xf32>
    %cst_13 = arith.constant dense<0.000000e+00> : vector<64xf32>
    %47 = vector.multi_reduction <add>, %45, %cst_13 [1] : vector<64x64xf32> to vector<64xf32>
    %48 = vector.shape_cast %47 : vector<64xf32> to vector<64x1xf32>
    %49 = arith.addf %46, %48 : vector<64x1xf32>
    %50 = vector.broadcast %42 : vector<64x1xf32> to vector<64x4xf32>
    %51 = arith.mulf %50, %36 : vector<64x4xf32>
    %cst_14 = arith.constant dense<0.000000e+00> : vector<64x4xf32>
    %52 = tpu.matmul %45, %33, %cst_14 {dimension_numbers = #tpu.dot_dimension_numbers<[1], [0], [0], [1], [0, 0, 1, 1], [], []>} : vector<64x64xf32>, vector<64x4xf32>, vector<64x4xf32> -> vector<64x4xf32>
    %53 = arith.addf %51, %52 : vector<64x4xf32>
    %54 = tpu.reciprocal %49 {approx = true} : vector<64x1xf32> -> vector<64x1xf32>
    %55 = vector.broadcast %54 : vector<64x1xf32> to vector<64x4xf32>
    %56 = arith.mulf %53, %55 : vector<64x4xf32>
    %57 = vector.extract_strided_slice %2 {offsets = [0, 8], sizes = [64, 4], strides = [1, 1]} : vector<64x32xf32> to vector<64x4xf32>
    %58 = vector.extract_strided_slice %3 {offsets = [0, 8], sizes = [64, 4], strides = [1, 1]} : vector<64x32xf32> to vector<64x4xf32>
    %59 = vector.extract_strided_slice %4 {offsets = [0, 8], sizes = [64, 4], strides = [1, 1]} : vector<64x32xf32> to vector<64x4xf32>
    %cst_15 = arith.constant 0xFF800000 : f32
    %60 = vector.broadcast %cst_15 : f32 to vector<64x1xf32>
    %cst_16 = arith.constant 0.000000e+00 : f32
    %61 = vector.broadcast %cst_16 : f32 to vector<64x1xf32>
    %cst_17 = arith.constant 0.000000e+00 : f32
    %62 = vector.broadcast %cst_17 : f32 to vector<64x4xf32>
    %cst_18 = arith.constant dense<0.000000e+00> : vector<64x64xf32>
    %63 = tpu.matmul %57, %58, %cst_18 {dimension_numbers = #tpu.dot_dimension_numbers<[1], [1], [0], [0], [0, 0, 1, 0], [], []>} : vector<64x4xf32>, vector<64x4xf32>, vector<64x64xf32> -> vector<64x64xf32>
    %cst_19 = arith.constant dense<0xFF800000> : vector<64xf32>
    %64 = vector.multi_reduction <maximumf>, %63, %cst_19 [1] : vector<64x64xf32> to vector<64xf32>
    %65 = vector.shape_cast %64 : vector<64xf32> to vector<64x1xf32>
    %66 = arith.maximumf %60, %65 : vector<64x1xf32>
    %67 = arith.subf %60, %66 : vector<64x1xf32>
    %68 = math.exp %67 : vector<64x1xf32>
    %69 = vector.broadcast %66 : vector<64x1xf32> to vector<64x64xf32>
    %70 = arith.subf %63, %69 : vector<64x64xf32>
    %71 = math.exp %70 : vector<64x64xf32>
    %72 = arith.mulf %68, %61 : vector<64x1xf32>
    %cst_20 = arith.constant dense<0.000000e+00> : vector<64xf32>
    %73 = vector.multi_reduction <add>, %71, %cst_20 [1] : vector<64x64xf32> to vector<64xf32>
    %74 = vector.shape_cast %73 : vector<64xf32> to vector<64x1xf32>
    %75 = arith.addf %72, %74 : vector<64x1xf32>
    %76 = vector.broadcast %68 : vector<64x1xf32> to vector<64x4xf32>
    %77 = arith.mulf %76, %62 : vector<64x4xf32>
    %cst_21 = arith.constant dense<0.000000e+00> : vector<64x4xf32>
    %78 = tpu.matmul %71, %59, %cst_21 {dimension_numbers = #tpu.dot_dimension_numbers<[1], [0], [0], [1], [0, 0, 1, 1], [], []>} : vector<64x64xf32>, vector<64x4xf32>, vector<64x4xf32> -> vector<64x4xf32>
    %79 = arith.addf %77, %78 : vector<64x4xf32>
    %80 = tpu.reciprocal %75 {approx = true} : vector<64x1xf32> -> vector<64x1xf32>
    %81 = vector.broadcast %80 : vector<64x1xf32> to vector<64x4xf32>
    %82 = arith.mulf %79, %81 : vector<64x4xf32>
    %83 = vector.extract_strided_slice %2 {offsets = [0, 12], sizes = [64, 4], strides = [1, 1]} : vector<64x32xf32> to vector<64x4xf32>
    %84 = vector.extract_strided_slice %3 {offsets = [0, 12], sizes = [64, 4], strides = [1, 1]} : vector<64x32xf32> to vector<64x4xf32>
    %85 = vector.extract_strided_slice %4 {offsets = [0, 12], sizes = [64, 4], strides = [1, 1]} : vector<64x32xf32> to vector<64x4xf32>
    %cst_22 = arith.constant 0xFF800000 : f32
    %86 = vector.broadcast %cst_22 : f32 to vector<64x1xf32>
    %cst_23 = arith.constant 0.000000e+00 : f32
    %87 = vector.broadcast %cst_23 : f32 to vector<64x1xf32>
    %cst_24 = arith.constant 0.000000e+00 : f32
    %88 = vector.broadcast %cst_24 : f32 to vector<64x4xf32>
    %cst_25 = arith.constant dense<0.000000e+00> : vector<64x64xf32>
    %89 = tpu.matmul %83, %84, %cst_25 {dimension_numbers = #tpu.dot_dimension_numbers<[1], [1], [0], [0], [0, 0, 1, 0], [], []>} : vector<64x4xf32>, vector<64x4xf32>, vector<64x64xf32> -> vector<64x64xf32>
    %cst_26 = arith.constant dense<0xFF800000> : vector<64xf32>
    %90 = vector.multi_reduction <maximumf>, %89, %cst_26 [1] : vector<64x64xf32> to vector<64xf32>
    %91 = vector.shape_cast %90 : vector<64xf32> to vector<64x1xf32>
    %92 = arith.maximumf %86, %91 : vector<64x1xf32>
    %93 = arith.subf %86, %92 : vector<64x1xf32>
    %94 = math.exp %93 : vector<64x1xf32>
    %95 = vector.broadcast %92 : vector<64x1xf32> to vector<64x64xf32>
    %96 = arith.subf %89, %95 : vector<64x64xf32>
    %97 = math.exp %96 : vector<64x64xf32>
    %98 = arith.mulf %94, %87 : vector<64x1xf32>
    %cst_27 = arith.constant dense<0.000000e+00> : vector<64xf32>
    %99 = vector.multi_reduction <add>, %97, %cst_27 [1] : vector<64x64xf32> to vector<64xf32>
    %100 = vector.shape_cast %99 : vector<64xf32> to vector<64x1xf32>
    %101 = arith.addf %98, %100 : vector<64x1xf32>
    %102 = vector.broadcast %94 : vector<64x1xf32> to vector<64x4xf32>
    %103 = arith.mulf %102, %88 : vector<64x4xf32>
    %cst_28 = arith.constant dense<0.000000e+00> : vector<64x4xf32>
    %104 = tpu.matmul %97, %85, %cst_28 {dimension_numbers = #tpu.dot_dimension_numbers<[1], [0], [0], [1], [0, 0, 1, 1], [], []>} : vector<64x64xf32>, vector<64x4xf32>, vector<64x4xf32> -> vector<64x4xf32>
    %105 = arith.addf %103, %104 : vector<64x4xf32>
    %106 = tpu.reciprocal %101 {approx = true} : vector<64x1xf32> -> vector<64x1xf32>
    %107 = vector.broadcast %106 : vector<64x1xf32> to vector<64x4xf32>
    %108 = arith.mulf %105, %107 : vector<64x4xf32>
    %109 = vector.extract_strided_slice %2 {offsets = [0, 16], sizes = [64, 4], strides = [1, 1]} : vector<64x32xf32> to vector<64x4xf32>
    %110 = vector.extract_strided_slice %3 {offsets = [0, 16], sizes = [64, 4], strides = [1, 1]} : vector<64x32xf32> to vector<64x4xf32>
    %111 = vector.extract_strided_slice %4 {offsets = [0, 16], sizes = [64, 4], strides = [1, 1]} : vector<64x32xf32> to vector<64x4xf32>
    %cst_29 = arith.constant 0xFF800000 : f32
    %112 = vector.broadcast %cst_29 : f32 to vector<64x1xf32>
    %cst_30 = arith.constant 0.000000e+00 : f32
    %113 = vector.broadcast %cst_30 : f32 to vector<64x1xf32>
    %cst_31 = arith.constant 0.000000e+00 : f32
    %114 = vector.broadcast %cst_31 : f32 to vector<64x4xf32>
    %cst_32 = arith.constant dense<0.000000e+00> : vector<64x64xf32>
    %115 = tpu.matmul %109, %110, %cst_32 {dimension_numbers = #tpu.dot_dimension_numbers<[1], [1], [0], [0], [0, 0, 1, 0], [], []>} : vector<64x4xf32>, vector<64x4xf32>, vector<64x64xf32> -> vector<64x64xf32>
    %cst_33 = arith.constant dense<0xFF800000> : vector<64xf32>
    %116 = vector.multi_reduction <maximumf>, %115, %cst_33 [1] : vector<64x64xf32> to vector<64xf32>
    %117 = vector.shape_cast %116 : vector<64xf32> to vector<64x1xf32>
    %118 = arith.maximumf %112, %117 : vector<64x1xf32>
    %119 = arith.subf %112, %118 : vector<64x1xf32>
    %120 = math.exp %119 : vector<64x1xf32>
    %121 = vector.broadcast %118 : vector<64x1xf32> to vector<64x64xf32>
    %122 = arith.subf %115, %121 : vector<64x64xf32>
    %123 = math.exp %122 : vector<64x64xf32>
    %124 = arith.mulf %120, %113 : vector<64x1xf32>
    %cst_34 = arith.constant dense<0.000000e+00> : vector<64xf32>
    %125 = vector.multi_reduction <add>, %123, %cst_34 [1] : vector<64x64xf32> to vector<64xf32>
    %126 = vector.shape_cast %125 : vector<64xf32> to vector<64x1xf32>
    %127 = arith.addf %124, %126 : vector<64x1xf32>
    %128 = vector.broadcast %120 : vector<64x1xf32> to vector<64x4xf32>
    %129 = arith.mulf %128, %114 : vector<64x4xf32>
    %cst_35 = arith.constant dense<0.000000e+00> : vector<64x4xf32>
    %130 = tpu.matmul %123, %111, %cst_35 {dimension_numbers = #tpu.dot_dimension_numbers<[1], [0], [0], [1], [0, 0, 1, 1], [], []>} : vector<64x64xf32>, vector<64x4xf32>, vector<64x4xf32> -> vector<64x4xf32>
    %131 = arith.addf %129, %130 : vector<64x4xf32>
    %132 = tpu.reciprocal %127 {approx = true} : vector<64x1xf32> -> vector<64x1xf32>
    %133 = vector.broadcast %132 : vector<64x1xf32> to vector<64x4xf32>
    %134 = arith.mulf %131, %133 : vector<64x4xf32>
    %135 = vector.extract_strided_slice %2 {offsets = [0, 20], sizes = [64, 4], strides = [1, 1]} : vector<64x32xf32> to vector<64x4xf32>
    %136 = vector.extract_strided_slice %3 {offsets = [0, 20], sizes = [64, 4], strides = [1, 1]} : vector<64x32xf32> to vector<64x4xf32>
    %137 = vector.extract_strided_slice %4 {offsets = [0, 20], sizes = [64, 4], strides = [1, 1]} : vector<64x32xf32> to vector<64x4xf32>
    %cst_36 = arith.constant 0xFF800000 : f32
    %138 = vector.broadcast %cst_36 : f32 to vector<64x1xf32>
    %cst_37 = arith.constant 0.000000e+00 : f32
    %139 = vector.broadcast %cst_37 : f32 to vector<64x1xf32>
    %cst_38 = arith.constant 0.000000e+00 : f32
    %140 = vector.broadcast %cst_38 : f32 to vector<64x4xf32>
    %cst_39 = arith.constant dense<0.000000e+00> : vector<64x64xf32>
    %141 = tpu.matmul %135, %136, %cst_39 {dimension_numbers = #tpu.dot_dimension_numbers<[1], [1], [0], [0], [0, 0, 1, 0], [], []>} : vector<64x4xf32>, vector<64x4xf32>, vector<64x64xf32> -> vector<64x64xf32>
    %cst_40 = arith.constant dense<0xFF800000> : vector<64xf32>
    %142 = vector.multi_reduction <maximumf>, %141, %cst_40 [1] : vector<64x64xf32> to vector<64xf32>
    %143 = vector.shape_cast %142 : vector<64xf32> to vector<64x1xf32>
    %144 = arith.maximumf %138, %143 : vector<64x1xf32>
    %145 = arith.subf %138, %144 : vector<64x1xf32>
    %146 = math.exp %145 : vector<64x1xf32>
    %147 = vector.broadcast %144 : vector<64x1xf32> to vector<64x64xf32>
    %148 = arith.subf %141, %147 : vector<64x64xf32>
    %149 = math.exp %148 : vector<64x64xf32>
    %150 = arith.mulf %146, %139 : vector<64x1xf32>
    %cst_41 = arith.constant dense<0.000000e+00> : vector<64xf32>
    %151 = vector.multi_reduction <add>, %149, %cst_41 [1] : vector<64x64xf32> to vector<64xf32>
    %152 = vector.shape_cast %151 : vector<64xf32> to vector<64x1xf32>
    %153 = arith.addf %150, %152 : vector<64x1xf32>
    %154 = vector.broadcast %146 : vector<64x1xf32> to vector<64x4xf32>
    %155 = arith.mulf %154, %140 : vector<64x4xf32>
    %cst_42 = arith.constant dense<0.000000e+00> : vector<64x4xf32>
    %156 = tpu.matmul %149, %137, %cst_42 {dimension_numbers = #tpu.dot_dimension_numbers<[1], [0], [0], [1], [0, 0, 1, 1], [], []>} : vector<64x64xf32>, vector<64x4xf32>, vector<64x4xf32> -> vector<64x4xf32>
    %157 = arith.addf %155, %156 : vector<64x4xf32>
    %158 = tpu.reciprocal %153 {approx = true} : vector<64x1xf32> -> vector<64x1xf32>
    %159 = vector.broadcast %158 : vector<64x1xf32> to vector<64x4xf32>
    %160 = arith.mulf %157, %159 : vector<64x4xf32>
    %161 = vector.extract_strided_slice %2 {offsets = [0, 24], sizes = [64, 4], strides = [1, 1]} : vector<64x32xf32> to vector<64x4xf32>
    %162 = vector.extract_strided_slice %3 {offsets = [0, 24], sizes = [64, 4], strides = [1, 1]} : vector<64x32xf32> to vector<64x4xf32>
    %163 = vector.extract_strided_slice %4 {offsets = [0, 24], sizes = [64, 4], strides = [1, 1]} : vector<64x32xf32> to vector<64x4xf32>
    %cst_43 = arith.constant 0xFF800000 : f32
    %164 = vector.broadcast %cst_43 : f32 to vector<64x1xf32>
    %cst_44 = arith.constant 0.000000e+00 : f32
    %165 = vector.broadcast %cst_44 : f32 to vector<64x1xf32>
    %cst_45 = arith.constant 0.000000e+00 : f32
    %166 = vector.broadcast %cst_45 : f32 to vector<64x4xf32>
    %cst_46 = arith.constant dense<0.000000e+00> : vector<64x64xf32>
    %167 = tpu.matmul %161, %162, %cst_46 {dimension_numbers = #tpu.dot_dimension_numbers<[1], [1], [0], [0], [0, 0, 1, 0], [], []>} : vector<64x4xf32>, vector<64x4xf32>, vector<64x64xf32> -> vector<64x64xf32>
    %cst_47 = arith.constant dense<0xFF800000> : vector<64xf32>
    %168 = vector.multi_reduction <maximumf>, %167, %cst_47 [1] : vector<64x64xf32> to vector<64xf32>
    %169 = vector.shape_cast %168 : vector<64xf32> to vector<64x1xf32>
    %170 = arith.maximumf %164, %169 : vector<64x1xf32>
    %171 = arith.subf %164, %170 : vector<64x1xf32>
    %172 = math.exp %171 : vector<64x1xf32>
    %173 = vector.broadcast %170 : vector<64x1xf32> to vector<64x64xf32>
    %174 = arith.subf %167, %173 : vector<64x64xf32>
    %175 = math.exp %174 : vector<64x64xf32>
    %176 = arith.mulf %172, %165 : vector<64x1xf32>
    %cst_48 = arith.constant dense<0.000000e+00> : vector<64xf32>
    %177 = vector.multi_reduction <add>, %175, %cst_48 [1] : vector<64x64xf32> to vector<64xf32>
    %178 = vector.shape_cast %177 : vector<64xf32> to vector<64x1xf32>
    %179 = arith.addf %176, %178 : vector<64x1xf32>
    %180 = vector.broadcast %172 : vector<64x1xf32> to vector<64x4xf32>
    %181 = arith.mulf %180, %166 : vector<64x4xf32>
    %cst_49 = arith.constant dense<0.000000e+00> : vector<64x4xf32>
    %182 = tpu.matmul %175, %163, %cst_49 {dimension_numbers = #tpu.dot_dimension_numbers<[1], [0], [0], [1], [0, 0, 1, 1], [], []>} : vector<64x64xf32>, vector<64x4xf32>, vector<64x4xf32> -> vector<64x4xf32>
    %183 = arith.addf %181, %182 : vector<64x4xf32>
    %184 = tpu.reciprocal %179 {approx = true} : vector<64x1xf32> -> vector<64x1xf32>
    %185 = vector.broadcast %184 : vector<64x1xf32> to vector<64x4xf32>
    %186 = arith.mulf %183, %185 : vector<64x4xf32>
    %187 = vector.extract_strided_slice %2 {offsets = [0, 28], sizes = [64, 4], strides = [1, 1]} : vector<64x32xf32> to vector<64x4xf32>
    %188 = vector.extract_strided_slice %3 {offsets = [0, 28], sizes = [64, 4], strides = [1, 1]} : vector<64x32xf32> to vector<64x4xf32>
    %189 = vector.extract_strided_slice %4 {offsets = [0, 28], sizes = [64, 4], strides = [1, 1]} : vector<64x32xf32> to vector<64x4xf32>
    %cst_50 = arith.constant 0xFF800000 : f32
    %190 = vector.broadcast %cst_50 : f32 to vector<64x1xf32>
    %cst_51 = arith.constant 0.000000e+00 : f32
    %191 = vector.broadcast %cst_51 : f32 to vector<64x1xf32>
    %cst_52 = arith.constant 0.000000e+00 : f32
    %192 = vector.broadcast %cst_52 : f32 to vector<64x4xf32>
    %cst_53 = arith.constant dense<0.000000e+00> : vector<64x64xf32>
    %193 = tpu.matmul %187, %188, %cst_53 {dimension_numbers = #tpu.dot_dimension_numbers<[1], [1], [0], [0], [0, 0, 1, 0], [], []>} : vector<64x4xf32>, vector<64x4xf32>, vector<64x64xf32> -> vector<64x64xf32>
    %cst_54 = arith.constant dense<0xFF800000> : vector<64xf32>
    %194 = vector.multi_reduction <maximumf>, %193, %cst_54 [1] : vector<64x64xf32> to vector<64xf32>
    %195 = vector.shape_cast %194 : vector<64xf32> to vector<64x1xf32>
    %196 = arith.maximumf %190, %195 : vector<64x1xf32>
    %197 = arith.subf %190, %196 : vector<64x1xf32>
    %198 = math.exp %197 : vector<64x1xf32>
    %199 = vector.broadcast %196 : vector<64x1xf32> to vector<64x64xf32>
    %200 = arith.subf %193, %199 : vector<64x64xf32>
    %201 = math.exp %200 : vector<64x64xf32>
    %202 = arith.mulf %198, %191 : vector<64x1xf32>
    %cst_55 = arith.constant dense<0.000000e+00> : vector<64xf32>
    %203 = vector.multi_reduction <add>, %201, %cst_55 [1] : vector<64x64xf32> to vector<64xf32>
    %204 = vector.shape_cast %203 : vector<64xf32> to vector<64x1xf32>
    %205 = arith.addf %202, %204 : vector<64x1xf32>
    %206 = vector.broadcast %198 : vector<64x1xf32> to vector<64x4xf32>
    %207 = arith.mulf %206, %192 : vector<64x4xf32>
    %cst_56 = arith.constant dense<0.000000e+00> : vector<64x4xf32>
    %208 = tpu.matmul %201, %189, %cst_56 {dimension_numbers = #tpu.dot_dimension_numbers<[1], [0], [0], [1], [0, 0, 1, 1], [], []>} : vector<64x64xf32>, vector<64x4xf32>, vector<64x4xf32> -> vector<64x4xf32>
    %209 = arith.addf %207, %208 : vector<64x4xf32>
    %210 = tpu.reciprocal %205 {approx = true} : vector<64x1xf32> -> vector<64x1xf32>
    %211 = vector.broadcast %210 : vector<64x1xf32> to vector<64x4xf32>
    %212 = arith.mulf %209, %211 : vector<64x4xf32>
    %213 = tpu.concatenate %30, %56, %82, %108, %134, %160, %186, %212 in 1 : vector<64x4xf32>, vector<64x4xf32>, vector<64x4xf32>, vector<64x4xf32>, vector<64x4xf32>, vector<64x4xf32>, vector<64x4xf32>, vector<64x4xf32> -> vector<64x32xf32>
    %c0_57 = arith.constant 0 : index
    %c0_58 = arith.constant 0 : index
    %c0_59 = arith.constant 0 : index
    %214 = vector.load %arg2[%c0_57, %c0_58, %c0_59] : memref<1x64x32xf32, #tpu.memory_space<vmem>>, vector<1x64x32xf32>
    %215 = vector.shape_cast %214 : vector<1x64x32xf32> to vector<64x32xf32>
    %216 = vector.shape_cast %213 : vector<64x32xf32> to vector<1x64x32xf32>
    tpu.vector_store %arg2[%c0_57, %c0_58, %c0_59], %216 {strides = array<i32>} : memref<1x64x32xf32, #tpu.memory_space<vmem>>, vector<1x64x32xf32>,
    return
  }
  func.func @transform_0(%arg0: i32) -> (i32, i32, i32) {
    %c0_i32 = arith.constant 0 : i32
    %c0_i32_0 = arith.constant 0 : i32
    %c0_i32_1 = arith.constant 0 : i32
    return %arg0, %c0_i32, %c0_i32_0 : i32, i32, i32
  }
  func.func @transform_1(%arg0: i32) -> (i32, i32, i32) {
    %c0_i32 = arith.constant 0 : i32
    %c0_i32_0 = arith.constant 0 : i32
    %c0_i32_1 = arith.constant 0 : i32
    return %arg0, %c0_i32, %c0_i32_0 : i32, i32, i32
  }
}

</mosaic_0001>

<bundles_post_ra>
// kernel: self_attention_forward.3
= control target key start
LH: loop header
LB: loop body
LE: loop exit
PB: predicated region body
PF: predicated region fallthrough
CT: control target
= control target key end

     0   :  { %8 = vsyncpa [#allocation3], 0  ;;  %s524_s0 = inlined_call_operand.hbm [shape: f32[128,32], index: 0, kind: input, shape index: {}]   ;;  %s525_s1 = inlined_call_operand.hbm [shape: f32[32,96], index: 1, kind: input, shape index: {}]   ;;  %s526_s2 = inlined_call_operand.vmem [shape: f32[1,96], index: 2, kind: input, shape index: {}]   ;;  %s527_s3 = inlined_call_operand.vmem [shape: f32[128,96], index: 3, kind: output, shape index: {}]  }
   0x1   :  { %9 = vsyncpa [#allocation5], 0  ;;  %s411_s12 = smov [#allocation2]  }
   0x2   :  { %s15_s13 = sshll.u32 %s411_s12, 4  ;;  %s16_s13 = int_to_ptr.vmem [resolvable:$true] %s15_s13 }
   0x3   :  { %s375_s14 = scalar_lea.vmem %s16_s13, 2048  ;;  %p380_p1 = scmp.lt.s32.totalorder %s16_s13, %s16_s13 }
   0x4   :  { %p376_p0 = scmp.ne.s32.totalorder %s16_s13, %s375_s14  ;;  %p381_p2 = scmp.lt.s32.totalorder %s375_s14, %s375_s14 }
   0x6   :  { %p382_p3 = por %p381_p2, %p380_p1 }
   0x8   :  { %p383_p4 = pnand %p382_p3, %p376_p0 }
   0xa   :  { %386 = shalt.err (!%p383_p4)
}
   0xb   :  { %s412_s15 = smov 128   ;;  %s413_s16 = smov 8  }
   0xc   :  { %21 = dma.hbm_to_vmem [thread:$0]  %s524_s0, 2048, %s16_s13, [#allocation3], %s412_s15, %s412_s15, %s413_s16  }
   0xd   :  { %s414_s19 = smov [#allocation4]  }
   0xe   :  { %s27_s20 = sshll.u32 %s414_s19, 4  ;;  %s28_s20 = int_to_ptr.vmem [resolvable:$true] %s27_s20 }
   0xf   :  { %s395_s21 = scalar_lea.vmem %s28_s20, 512  ;;  %p400_p6 = scmp.lt.s32.totalorder %s28_s20, %s28_s20 }
  0x10   :  { %p396_p5 = scmp.ne.s32.totalorder %s28_s20, %s395_s21  ;;  %p401_p7 = scmp.lt.s32.totalorder %s395_s21, %s395_s21 }
  0x12   :  { %p402_p8 = por %p401_p7, %p400_p6 }
  0x14   :  { %p403_p9 = pnand %p402_p8, %p396_p5 }
  0x16   :  { %406 = shalt.err (!%p403_p9)
}
  0x17   :  { %33 = dma.hbm_to_vmem [thread:$0]  %s525_s1, 512, %s28_s20, [#allocation5], %s412_s15, %s412_s15, %s413_s16  }
  0x18   :  { %407 = dma.done.wait [#allocation3], 2048  }
  0x19   :  { %408 = vsyncadd [#allocation3], 4294965248 }
  0x1a   :  { %409 = dma.done.wait [#allocation5], 512  }
  0x1b   :  { %410 = vsyncadd [#allocation5], 4294966784  ;;  %v61_v0 = vld [vmem:[#allocation4 + $0x18] sm:$0xff]  ;;  %v60_v1 = vld [vmem:[#allocation4 + $0x10] sm:$0xff]  ;;  %vm69_vm0 = vcmask 261120   ;;  %vm263_vm1 = vcmask 785408  }
  0x1c   :  { %323 = vmatprep.subr.mxu0 %v61_v0  ;;  %355 = vmatprep.subr.mxu1 %v61_v0  ;;  %v59_v2 = vld [vmem:[#allocation4 + $0x8] sm:$0xff]  ;;  %v58_v3 = vld [vmem:[#allocation4] sm:$0xff]  ;;  %v44_v8 = vld [vmem:[#allocation2 + $0x10] sm:$0xff] }
  0x1d   :  { %324 = vmatpush3.msra.mxu0 %v61_v0  ;;  %359 = vmatpush3.msra.mxu1 %v61_v0  ;;  %v42_v4 = vld [vmem:[#allocation2] sm:$0xff]  ;;  %v43_v6 = vld [vmem:[#allocation2 + $0x8] sm:$0xff]  ;;  %v52_v9 = vld [vmem:[#allocation2 + $0x50] sm:$0xff] }
  0x1e   :  { %325 = vmatprep.subr.mxu0 %v60_v1  ;;  %356 = vmatprep.subr.mxu1 %v60_v1  ;;  %v50_v5 = vld [vmem:[#allocation2 + $0x40] sm:$0xff]  ;;  %v51_v7 = vld [vmem:[#allocation2 + $0x48] sm:$0xff]  ;;  %v45_v10 = vld [vmem:[#allocation2 + $0x18] sm:$0xff] }
  0x1f   :  { %326 = vmatpush3.msra.mxu0 %v60_v1  ;;  %360 = vmatpush3.msra.mxu1 %v60_v1  ;;  %v53_v11 = vld [vmem:[#allocation2 + $0x58] sm:$0xff]  ;;  %v46_v12 = vld [vmem:[#allocation2 + $0x20] sm:$0xff]  ;;  %v47_v14 = vld [vmem:[#allocation2 + $0x28] sm:$0xff] }
  0x20   :  { %327 = vmatprep.subr.mxu0 %v59_v2  ;;  %357 = vmatprep.subr.mxu1 %v59_v2  ;;  %v54_v13 = vld [vmem:[#allocation2 + $0x60] sm:$0xff]  ;;  %v55_v15 = vld [vmem:[#allocation2 + $0x68] sm:$0xff]  ;;  %v48_v16 = vld [vmem:[#allocation2 + $0x30] sm:$0xff] }
  0x21   :  { %328 = vmatpush3.msra.mxu0 %v59_v2  ;;  %361 = vmatpush3.msra.mxu1 %v59_v2  ;;  %v56_v17 = vld [vmem:[#allocation2 + $0x70] sm:$0xff]  ;;  %v49_v18 = vld [vmem:[#allocation2 + $0x38] sm:$0xff]  ;;  %v286_v20 = vld [vmem:[%s526_s2] ss:$0 sm:$0xff] }
  0x22   :  { %329 = vmatprep.subr.mxu0 %v58_v3  ;;  %358 = vmatprep.subr.mxu1 %v58_v3  ;;  %v57_v19 = vld [vmem:[#allocation2 + $0x78] sm:$0xff] }
  0x23   :  { %330 = vmatpush3.msra.mxu0 %v58_v3  ;;  %362 = vmatpush3.msra.mxu1 %v58_v3 }
  0x24   :  { %331 = vmatprep.mubr.msk.f32.mxu0 %vm69_vm0, %v42_v4  ;;  %343 = vmatprep.mubr.msk.f32.mxu1 %vm69_vm0, %v50_v5 }
  0x25   :  { %332 = vmatmul.mubr.msk.f32.vlgmr.msra.gmra.mxu0 %vm69_vm0, %v43_v6  ;;  %344 = vmatmul.mubr.msk.f32.vlgmr.msra.gmra.mxu1 %vm69_vm0, %v51_v7 }
  0x26   :  { %334 = vmatprep.mubr.msk.f32.mxu0 %vm69_vm0, %v44_v8  ;;  %346 = vmatprep.mubr.msk.f32.mxu1 %vm69_vm0, %v52_v9 }
  0x29   :  { %335 = vmatmul.mubr.msk.f32.gmra.mxu0 %vm69_vm0, %v45_v10  ;;  %347 = vmatmul.mubr.msk.f32.gmra.mxu1 %vm69_vm0, %v53_v11 }
  0x2a   :  { %337 = vmatprep.mubr.msk.f32.mxu0 %vm69_vm0, %v46_v12  ;;  %349 = vmatprep.mubr.msk.f32.mxu1 %vm69_vm0, %v54_v13 }
  0x2d   :  { %338 = vmatmul.mubr.msk.f32.gmra.mxu0 %vm69_vm0, %v47_v14  ;;  %350 = vmatmul.mubr.msk.f32.gmra.mxu1 %vm69_vm0, %v55_v15 }
  0x2e   :  { %340 = vmatprep.mubr.msk.f32.mxu0 %vm69_vm0, %v48_v16  ;;  %352 = vmatprep.mubr.msk.f32.mxu1 %vm69_vm0, %v56_v17 }
  0x31   :  { %341 = vmatmul.mubr.msk.f32.gmra.mxu0 %vm69_vm0, %v49_v18  ;;  %353 = vmatmul.mubr.msk.f32.gmra.mxu1 %vm69_vm0, %v57_v19 }
  0xe5   :  { %v333_v21 = vpop.f32.mrf.mxu0  ;;  %v345_v22 = vpop.f32.mrf.mxu1 }
  0xe6   :  { %v190_v23 = vadd.f32 %v333_v21, %v286_v20  ;;  %v230_v24 = vadd.f32 %v345_v22, %v286_v20 }
  0xe7   :  { %v184_v25 = vpop.f32.mrf.mxu0  ;;  %v224_v26 = vpop.f32.mrf.mxu1 }
  0xe8   :  { %265 = vst.msk [vmem:[%s527_s3 + $0x8] sm:$0xff] %vm263_vm1, %v190_v23  ;;  %273 = vst.msk [vmem:[%s527_s3 + $0x48] sm:$0xff] %vm263_vm1, %v230_v24  ;;  %v185_v27 = vadd.f32 %v286_v20, %v184_v25  ;;  %v225_v28 = vadd.f32 %v286_v20, %v224_v26 }
  0xe9   :  { %v336_v29 = vpop.f32.mrf.mxu0  ;;  %v348_v30 = vpop.f32.mrf.mxu1 }
  0xea   :  { %264 = vst.msk [vmem:[%s527_s3] sm:$0xff] %vm263_vm1, %v185_v27  ;;  %272 = vst.msk [vmem:[%s527_s3 + $0x40] sm:$0xff] %vm263_vm1, %v225_v28  ;;  %v200_v31 = vadd.f32 %v336_v29, %v286_v20  ;;  %v240_v32 = vadd.f32 %v348_v30, %v286_v20 }
  0xeb   :  { %v194_v33 = vpop.f32.mrf.mxu0  ;;  %v234_v34 = vpop.f32.mrf.mxu1 }
  0xec   :  { %267 = vst.msk [vmem:[%s527_s3 + $0x18] sm:$0xff] %vm263_vm1, %v200_v31  ;;  %275 = vst.msk [vmem:[%s527_s3 + $0x58] sm:$0xff] %vm263_vm1, %v240_v32  ;;  %v195_v35 = vadd.f32 %v286_v20, %v194_v33  ;;  %v235_v36 = vadd.f32 %v286_v20, %v234_v34 }
  0xed   :  { %v339_v37 = vpop.f32.mrf.mxu0  ;;  %v351_v38 = vpop.f32.mrf.mxu1 }
  0xee   :  { %266 = vst.msk [vmem:[%s527_s3 + $0x10] sm:$0xff] %vm263_vm1, %v195_v35  ;;  %274 = vst.msk [vmem:[%s527_s3 + $0x50] sm:$0xff] %vm263_vm1, %v235_v36  ;;  %v210_v39 = vadd.f32 %v339_v37, %v286_v20  ;;  %v250_v40 = vadd.f32 %v351_v38, %v286_v20 }
  0xef   :  { %v204_v41 = vpop.f32.mrf.mxu0  ;;  %v244_v42 = vpop.f32.mrf.mxu1 }
  0xf0   :  { %269 = vst.msk [vmem:[%s527_s3 + $0x28] sm:$0xff] %vm263_vm1, %v210_v39  ;;  %277 = vst.msk [vmem:[%s527_s3 + $0x68] sm:$0xff] %vm263_vm1, %v250_v40  ;;  %v205_v43 = vadd.f32 %v286_v20, %v204_v41  ;;  %v245_v44 = vadd.f32 %v286_v20, %v244_v42 }
  0xf1   :  { %v342_v45 = vpop.f32.mrf.mxu0  ;;  %v354_v46 = vpop.f32.mrf.mxu1 }
  0xf2   :  { %268 = vst.msk [vmem:[%s527_s3 + $0x20] sm:$0xff] %vm263_vm1, %v205_v43  ;;  %276 = vst.msk [vmem:[%s527_s3 + $0x60] sm:$0xff] %vm263_vm1, %v245_v44  ;;  %v220_v47 = vadd.f32 %v342_v45, %v286_v20  ;;  %v260_v48 = vadd.f32 %v354_v46, %v286_v20 }
  0xf3   :  { %v214_v49 = vpop.f32.mrf.mxu0  ;;  %v254_v50 = vpop.f32.mrf.mxu1 }
  0xf4   :  { %271 = vst.msk [vmem:[%s527_s3 + $0x38] sm:$0xff] %vm263_vm1, %v220_v47  ;;  %279 = vst.msk [vmem:[%s527_s3 + $0x78] sm:$0xff] %vm263_vm1, %v260_v48  ;;  %v215_v51 = vadd.f32 %v286_v20, %v214_v49  ;;  %v255_v52 = vadd.f32 %v286_v20, %v254_v50 }
  0xf6   :  { %270 = vst.msk [vmem:[%s527_s3 + $0x30] sm:$0xff] %vm263_vm1, %v215_v51  ;;  %278 = vst.msk [vmem:[%s527_s3 + $0x70] sm:$0xff] %vm263_vm1, %v255_v52 }
  0xf7   :  { %284 = vsyncpa [#allocation3], 1 }
  0xf8   :  { %285 = vsyncpa [#allocation5], 1 }

// kernel: self_attention_forward.5
= control target key start
LH: loop header
LB: loop body
LE: loop exit
PB: predicated region body
PF: predicated region fallthrough
CT: control target
= control target key end

     0   :  { %vm42_vm0 = vcmask 261120   ;;  %s491_s0 = inlined_call_operand.vmem [shape: f32[128,32], index: 0, kind: input, shape index: {}]   ;;  %s492_s1 = inlined_call_operand.vmem [shape: f32[32,32], index: 1, kind: input, shape index: {}]   ;;  %s493_s2 = inlined_call_operand.vmem [shape: f32[1,32], index: 2, kind: input, shape index: {}]   ;;  %s494_s3 = inlined_call_operand.hbm [shape: f32[128,32], index: 3, kind: output, shape index: {}]  }
   0x1   :  { %v34_v0 = vld [vmem:[%s492_s1 + $0x18] sm:$0xff]  ;;  %v33_v1 = vld [vmem:[%s492_s1 + $0x10] sm:$0xff]  ;;  %v32_v2 = vld [vmem:[%s492_s1 + $0x8] sm:$0xff] }
   0x2   :  { %305 = vmatprep.subr.mxu0 %v34_v0  ;;  %337 = vmatprep.subr.mxu1 %v34_v0  ;;  %v31_v3 = vld [vmem:[%s492_s1] sm:$0xff] }
   0x3   :  { %306 = vmatpush3.msra.mxu0 %v34_v0  ;;  %341 = vmatpush3.msra.mxu1 %v34_v0  ;;  %v15_v4 = vld [vmem:[%s491_s0] sm:$0xff] }
   0x4   :  { %307 = vmatprep.subr.mxu0 %v33_v1  ;;  %338 = vmatprep.subr.mxu1 %v33_v1  ;;  %v23_v5 = vld [vmem:[%s491_s0 + $0x40] sm:$0xff] }
   0x5   :  { %308 = vmatpush3.msra.mxu0 %v33_v1  ;;  %342 = vmatpush3.msra.mxu1 %v33_v1 }
   0x6   :  { %309 = vmatprep.subr.mxu0 %v32_v2  ;;  %339 = vmatprep.subr.mxu1 %v32_v2 }
   0x7   :  { %310 = vmatpush3.msra.mxu0 %v32_v2  ;;  %343 = vmatpush3.msra.mxu1 %v32_v2 }
   0x8   :  { %8 = vsyncpa [#allocation3], 0  ;;  %311 = vmatprep.subr.mxu0 %v31_v3  ;;  %340 = vmatprep.subr.mxu1 %v31_v3  ;;  %v16_v6 = vld [vmem:[%s491_s0 + $0x8] sm:$0xff]  ;;  %v17_v8 = vld [vmem:[%s491_s0 + $0x10] sm:$0xff] }
   0x9   :  { %v24_v7 = vld [vmem:[%s491_s0 + $0x48] sm:$0xff]  ;;  %312 = vmatpush3.msra.mxu0 %v31_v3  ;;  %344 = vmatpush3.msra.mxu1 %v31_v3  ;;  %v25_v9 = vld [vmem:[%s491_s0 + $0x50] sm:$0xff]  ;;  %v18_v10 = vld [vmem:[%s491_s0 + $0x18] sm:$0xff] }
   0xa   :  { %313 = vmatprep.mubr.msk.f32.mxu0 %vm42_vm0, %v15_v4  ;;  %325 = vmatprep.mubr.msk.f32.mxu1 %vm42_vm0, %v23_v5  ;;  %v26_v11 = vld [vmem:[%s491_s0 + $0x58] sm:$0xff]  ;;  %v19_v12 = vld [vmem:[%s491_s0 + $0x20] sm:$0xff]  ;;  %v20_v14 = vld [vmem:[%s491_s0 + $0x28] sm:$0xff] }
   0xb   :  { %314 = vmatmul.mubr.msk.f32.vlgmr.msra.gmra.mxu0 %vm42_vm0, %v16_v6  ;;  %326 = vmatmul.mubr.msk.f32.vlgmr.msra.gmra.mxu1 %vm42_vm0, %v24_v7  ;;  %v27_v13 = vld [vmem:[%s491_s0 + $0x60] sm:$0xff]  ;;  %v28_v15 = vld [vmem:[%s491_s0 + $0x68] sm:$0xff]  ;;  %v21_v16 = vld [vmem:[%s491_s0 + $0x30] sm:$0xff] }
   0xc   :  { %316 = vmatprep.mubr.msk.f32.mxu0 %vm42_vm0, %v17_v8  ;;  %328 = vmatprep.mubr.msk.f32.mxu1 %vm42_vm0, %v25_v9  ;;  %v29_v17 = vld [vmem:[%s491_s0 + $0x70] sm:$0xff]  ;;  %v22_v18 = vld [vmem:[%s491_s0 + $0x38] sm:$0xff]  ;;  %v268_v20 = vld [vmem:[%s493_s2] ss:$0 sm:$0xff] }
   0xd   :  { %v30_v19 = vld [vmem:[%s491_s0 + $0x78] sm:$0xff]  ;;  %s370_s0 = smov [#allocation2]  }
   0xe   :  { %s257_s2 = sshll.u32 %s370_s0, 4  ;;  %s258_s2 = int_to_ptr.vmem [resolvable:$true] %s257_s2 }
   0xf   :  { %317 = vmatmul.mubr.msk.f32.gmra.mxu0 %vm42_vm0, %v18_v10  ;;  %329 = vmatmul.mubr.msk.f32.gmra.mxu1 %vm42_vm0, %v26_v11  ;;  %s348_s1 = scalar_lea.vmem %s258_s2, 2048  ;;  %p353_p1 = scmp.lt.s32.totalorder %s258_s2, %s258_s2 }
  0x10   :  { %319 = vmatprep.mubr.msk.f32.mxu0 %vm42_vm0, %v19_v12  ;;  %331 = vmatprep.mubr.msk.f32.mxu1 %vm42_vm0, %v27_v13  ;;  %p349_p0 = scmp.ne.s32.totalorder %s258_s2, %s348_s1  ;;  %p354_p2 = scmp.lt.s32.totalorder %s348_s1, %s348_s1 }
  0x12   :  { %p355_p3 = por %p354_p2, %p353_p1 }
  0x13   :  { %320 = vmatmul.mubr.msk.f32.gmra.mxu0 %vm42_vm0, %v20_v14  ;;  %332 = vmatmul.mubr.msk.f32.gmra.mxu1 %vm42_vm0, %v28_v15 }
  0x14   :  { %322 = vmatprep.mubr.msk.f32.mxu0 %vm42_vm0, %v21_v16  ;;  %334 = vmatprep.mubr.msk.f32.mxu1 %vm42_vm0, %v29_v17  ;;  %p356_p4 = pnand %p355_p3, %p349_p0 }
  0x17   :  { %323 = vmatmul.mubr.msk.f32.gmra.mxu0 %vm42_vm0, %v22_v18  ;;  %335 = vmatmul.mubr.msk.f32.gmra.mxu1 %vm42_vm0, %v30_v19 }
  0xcb   :  { %v315_v21 = vpop.f32.mrf.mxu0  ;;  %v327_v22 = vpop.f32.mrf.mxu1 }
  0xcc   :  { %v163_v23 = vadd.f32 %v315_v21, %v268_v20  ;;  %v203_v24 = vadd.f32 %v327_v22, %v268_v20 }
  0xcd   :  { %v157_v25 = vpop.f32.mrf.mxu0  ;;  %v197_v26 = vpop.f32.mrf.mxu1 }
  0xce   :  { %237 = vst.msk [vmem:[#allocation2 + $0x8] sm:$0xff] %vm42_vm0, %v163_v23  ;;  %245 = vst.msk [vmem:[#allocation2 + $0x48] sm:$0xff] %vm42_vm0, %v203_v24  ;;  %v158_v27 = vadd.f32 %v268_v20, %v157_v25  ;;  %v198_v28 = vadd.f32 %v268_v20, %v197_v26 }
  0xcf   :  { %v318_v29 = vpop.f32.mrf.mxu0  ;;  %v330_v30 = vpop.f32.mrf.mxu1 }
  0xd0   :  { %236 = vst.msk [vmem:[#allocation2] sm:$0xff] %vm42_vm0, %v158_v27  ;;  %244 = vst.msk [vmem:[#allocation2 + $0x40] sm:$0xff] %vm42_vm0, %v198_v28  ;;  %v173_v31 = vadd.f32 %v318_v29, %v268_v20  ;;  %v213_v32 = vadd.f32 %v330_v30, %v268_v20 }
  0xd1   :  { %v167_v33 = vpop.f32.mrf.mxu0  ;;  %v207_v34 = vpop.f32.mrf.mxu1 }
  0xd2   :  { %239 = vst.msk [vmem:[#allocation2 + $0x18] sm:$0xff] %vm42_vm0, %v173_v31  ;;  %247 = vst.msk [vmem:[#allocation2 + $0x58] sm:$0xff] %vm42_vm0, %v213_v32  ;;  %v168_v35 = vadd.f32 %v268_v20, %v167_v33  ;;  %v208_v36 = vadd.f32 %v268_v20, %v207_v34 }
  0xd3   :  { %v321_v37 = vpop.f32.mrf.mxu0  ;;  %v333_v38 = vpop.f32.mrf.mxu1 }
  0xd4   :  { %238 = vst.msk [vmem:[#allocation2 + $0x10] sm:$0xff] %vm42_vm0, %v168_v35  ;;  %246 = vst.msk [vmem:[#allocation2 + $0x50] sm:$0xff] %vm42_vm0, %v208_v36  ;;  %v183_v39 = vadd.f32 %v321_v37, %v268_v20  ;;  %v223_v40 = vadd.f32 %v333_v38, %v268_v20 }
  0xd5   :  { %v177_v41 = vpop.f32.mrf.mxu0  ;;  %v217_v42 = vpop.f32.mrf.mxu1 }
  0xd6   :  { %241 = vst.msk [vmem:[#allocation2 + $0x28] sm:$0xff] %vm42_vm0, %v183_v39  ;;  %249 = vst.msk [vmem:[#allocation2 + $0x68] sm:$0xff] %vm42_vm0, %v223_v40  ;;  %v178_v43 = vadd.f32 %v268_v20, %v177_v41  ;;  %v218_v44 = vadd.f32 %v268_v20, %v217_v42 }
  0xd7   :  { %v324_v45 = vpop.f32.mrf.mxu0  ;;  %v336_v46 = vpop.f32.mrf.mxu1 }
  0xd8   :  { %240 = vst.msk [vmem:[#allocation2 + $0x20] sm:$0xff] %vm42_vm0, %v178_v43  ;;  %248 = vst.msk [vmem:[#allocation2 + $0x60] sm:$0xff] %vm42_vm0, %v218_v44  ;;  %v193_v47 = vadd.f32 %v324_v45, %v268_v20  ;;  %v233_v48 = vadd.f32 %v336_v46, %v268_v20 }
  0xd9   :  { %v187_v49 = vpop.f32.mrf.mxu0  ;;  %v227_v50 = vpop.f32.mrf.mxu1 }
  0xda   :  { %243 = vst.msk [vmem:[#allocation2 + $0x38] sm:$0xff] %vm42_vm0, %v193_v47  ;;  %251 = vst.msk [vmem:[#allocation2 + $0x78] sm:$0xff] %vm42_vm0, %v233_v48  ;;  %v188_v51 = vadd.f32 %v268_v20, %v187_v49  ;;  %v228_v52 = vadd.f32 %v268_v20, %v227_v50 }
  0xdc   :  { %242 = vst.msk [vmem:[#allocation2 + $0x30] sm:$0xff] %vm42_vm0, %v188_v51  ;;  %250 = vst.msk [vmem:[#allocation2 + $0x70] sm:$0xff] %vm42_vm0, %v228_v52 }
  0xdd   :  { %359 = shalt.err (!%p356_p4)
}
  0xde   :  { %s371_s26 = smov 128   ;;  %s372_s27 = smov 8  }
  0xdf   :  { %263 = dma.vmem_to_hbm [thread:$0]  %s258_s2, 2048, %s494_s3, [#allocation3], %s371_s26, %s371_s26, %s372_s27  }
  0xe0   :  { %368 = dma.done.wait [#allocation3], 2048  }
  0xe1   :  { %369 = vsyncadd [#allocation3], 4294965248 }
  0xe2   :  { %267 = vsyncpa [#allocation3], 1 }

// kernel: self_attention_forward.4
= control target key start
LH: loop header
LB: loop body
LE: loop exit
PB: predicated region body
PF: predicated region fallthrough
CT: control target
= control target key end

     0   :  { %s5528_s6 = smov 0   ;;  %s7476_s0 = inlined_call_operand.vmem [shape: f32[2,64,96], index: 0, kind: input, shape index: {}]   ;;  %s7477_s1 = inlined_call_operand.vmem [shape: f32[2,64,32], index: 1, kind: output, shape index: {}]  }
   0x1 LB: > { %s4133_s7 = sadd.s32 4294967295, %s5486_s6   ;;  %p4137_p0 = scmp.ge.s32.totalorder %s5486_s6, 1  ;;  %s5486_s6 = sphi %s5528_s6, %s11_s6  }
   0x2   : > { %p87_p1 = scmp.lt.s32.totalorder %s5486_s6, 3 }
   0x4   : > { %p88_p2 = pnand %p4137_p0, %p87_p1 }
   0x6   : > { %91 = sbr.rel (%p88_p2) target bundleno = 4189 (0x105d), region = 24 }
   0xb   : > { %p107_p3 = scmp.lt.s32.totalorder %s4133_s7, 1  ;;  %s5488_s12 = smov 96   ;;  %vm149_vm0 = vcmask 31744   ;;  %vm287_vm1 = vcmask 523264   ;;  %vm4015_vm2 = vcmask 64512   ;;  %vm4024_vm3 = vcmask 97280  }
   0xc   : > { %s5489_s13 = smov 64   ;;  %s5490_s14 = smov 92   ;;  %vm4033_vm4 = vcmask 130048   ;;  %vm4042_vm5 = vcmask 162816   ;;  %vm4060_vm6 = vcmask 228352   ;;  %vm4051_vm7 = vcmask 195584  }
   0xd   : > { %s7778_s7 = smov (!%p107_p3, %s4133_s7), 1  ;;  %s5491_s15 = smov 124   ;;  %vm4069_vm8 = vcmask 261120  }
   0xe   : > { %s4336_s8 = sshll.u32 %s7778_s7, 6  ;;  %s5492_s16 = smov 60  }
   0xf   : > { %s5544_s11 = scalar_lea.vmem %s7476_s0, %s4336_s8  ;;  %s5493_s17 = smov 88  }
  0x10   : > { %v5547_v0 = vld [vmem:[%s5544_s11 + $0x38] sm:$0xff]  ;;  %v5550_v1 = vld [vmem:[%s5544_s11 + $0x28] sm:$0xff]  ;;  %v5555_v2 = vld [vmem:[%s5544_s11 + $0x30] sm:$0xff]  ;;  %s5494_s18 = smov 120   ;;  %s5495_s19 = smov 56  }
  0x11   : > { %147 = vrot.lane.b32.xlu0 %v5547_v0, %s5488_s12  ;;  %143 = vrot.lane.b32.xlu1 %v5550_v1, %s5488_s12  ;;  %v5558_v3 = vld [vmem:[%s5544_s11 + $0x20] sm:$0xff]  ;;  %v5568_v5 = vld [vmem:[%s5544_s11 + $0x18] sm:$0xff]  ;;  %s5496_s20 = smov 84   ;;  %s5497_s21 = smov 116  }
  0x12   : > { %v5561_v4 = vld [vmem:[%s5544_s11] sm:$0xff]  ;;  %v5571_v6 = vld [vmem:[%s5544_s11 + $0x10] sm:$0xff]  ;;  %v5576_v7 = vld [vmem:[%s5544_s11 + $0x8] sm:$0xff]  ;;  %s5498_s22 = smov 52   ;;  %s5499_s23 = smov 80  }
  0x13   : > { %4610 = vmatprep.mubr.msk.f32.mxu0 %vm149_vm0, %v5561_v4  ;;  %s5500_s24 = smov 112   ;;  %s5501_s25 = smov 48  }
  0x14   : > { %s5502_s26 = smov 76   ;;  %s5503_s27 = smov 108  }
  0x15   : > { %145 = vrot.lane.b32.xlu0 %v5555_v2, %s5488_s12  ;;  %141 = vrot.lane.b32.xlu1 %v5558_v3, %s5488_s12  ;;  %s5504_s28 = smov 44   ;;  %s5505_s29 = smov 72  }
  0x16   : > { %s5506_s30 = smov 104   ;;  %s5507_s2 = smov 40  }
  0x17   : > { %s5508_s3 = smov 68   ;;  %s5509_s4 = smov 100  }
  0x18   : > { %s5510_s5 = smov 36   ;;  %s5511_s9 = smov 4  }
  0x19   : > { %139 = vrot.lane.b32.xlu0 %v5568_v5, %s5488_s12  ;;  %137 = vrot.lane.b32.xlu1 %v5571_v6, %s5488_s12  ;;  %s5512_s10 = smov 8  }
  0x1d   : > { %135 = vrot.lane.b32.xlu0 %v5576_v7, %s5488_s12  ;;  %133 = vrot.lane.b32.xlu1 %v5561_v4, %s5488_s12  ;;  %s5514_s12 = smov 16  }
  0x21   : > { %414 = vrot.lane.b32.xlu0 %v5547_v0, %s5489_s13  ;;  %412 = vrot.lane.b32.xlu1 %v5555_v2, %s5489_s13 }
  0x25   : > { %410 = vrot.lane.b32.xlu0 %v5550_v1, %s5489_s13  ;;  %406 = vrot.lane.b32.xlu1 %v5568_v5, %s5489_s13 }
  0x29   : > { %408 = vrot.lane.b32.xlu0 %v5558_v3, %s5489_s13  ;;  %402 = vrot.lane.b32.xlu1 %v5576_v7, %s5489_s13 }
  0x2d   : > { %404 = vrot.lane.b32.xlu0 %v5571_v6, %s5489_s13  ;;  %607 = vrot.lane.b32.xlu1 %v5547_v0, %s5490_s14 }
  0x31   : > { %400 = vrot.lane.b32.xlu0 %v5561_v4, %s5489_s13  ;;  %605 = vrot.lane.b32.xlu1 %v5555_v2, %s5490_s14  ;;  %s5515_s13 = smov 20  }
  0x35   : > { %601 = vrot.lane.b32.xlu1 %v5558_v3, %s5490_s14  ;;  %603 = vrot.lane.b32.xlu0 %v5550_v1, %s5490_s14 }
  0x83   : > { %v148_v8 = vpop.permute.xlu0 %147  ;;  %v144_v9 = vpop.permute.xlu1 %143 }
  0x84   : > { %4594 = vmatprep.subr.msk.mxu0 %vm149_vm0, %v148_v8 }
  0x85   : > { %4595 = vmatpush3.xpose.msk.msra.mxu0 %vm149_vm0, %v148_v8 }
  0x87   : > { %v146_v10 = vpop.permute.xlu0 %145  ;;  %v142_v11 = vpop.permute.xlu1 %141 }
  0x88   : > { %4596 = vmatprep.subr.msk.mxu0 %vm149_vm0, %v146_v10 }
  0x89   : > { %4597 = vmatpush3.xpose.msk.msra.mxu0 %vm149_vm0, %v146_v10 }
  0x8a   : > { %4598 = vmatprep.subr.msk.mxu0 %vm149_vm0, %v144_v9 }
  0x8b   : > { %v140_v12 = vpop.permute.xlu0 %139  ;;  %v138_v13 = vpop.permute.xlu1 %137 }
  0x8d   : > { %4599 = vmatpush3.xpose.msk.msra.mxu0 %vm149_vm0, %v144_v9 }
  0x8e   : > { %4600 = vmatprep.subr.msk.mxu0 %vm149_vm0, %v142_v11 }
  0x8f   : > { %v136_v14 = vpop.permute.xlu0 %135  ;;  %v134_v15 = vpop.permute.xlu1 %133 }
  0x91   : > { %4601 = vmatpush3.xpose.msk.msra.mxu0 %vm149_vm0, %v142_v11 }
  0x92   : > { %4602 = vmatprep.subr.msk.mxu0 %vm149_vm0, %v140_v12 }
  0x93   : > { %v415_v16 = vpop.permute.xlu0 %414  ;;  %v413_v18 = vpop.permute.xlu1 %412 }
  0x94   : > { %4622 = vmatprep.subr.mxu1 %v415_v16 }
  0x95   : > { %4603 = vmatpush3.xpose.msk.msra.mxu0 %vm149_vm0, %v140_v12  ;;  %4623 = vmatpush3.msra.mxu1 %v415_v16 }
  0x96   : > { %4604 = vmatprep.subr.msk.mxu0 %vm149_vm0, %v138_v13  ;;  %4624 = vmatprep.subr.mxu1 %v413_v18 }
  0x97   : > { %v411_v17 = vpop.permute.xlu0 %410  ;;  %4625 = vmatpush3.msra.mxu1 %v413_v18  ;;  %v407_v20 = vpop.permute.xlu1 %406 }
  0x98   : > { %4626 = vmatprep.subr.mxu1 %v411_v17 }
  0x99   : > { %4605 = vmatpush3.xpose.msk.msra.mxu0 %vm149_vm0, %v138_v13  ;;  %4627 = vmatpush3.msra.mxu1 %v411_v17 }
  0x9a   : > { %4606 = vmatprep.subr.msk.mxu0 %vm149_vm0, %v136_v14 }
  0x9b   : > { %v409_v19 = vpop.permute.xlu0 %408  ;;  %v403_v22 = vpop.permute.xlu1 %402 }
  0x9c   : > { %4628 = vmatprep.subr.mxu1 %v409_v19 }
  0x9d   : > { %4607 = vmatpush3.xpose.msk.msra.mxu0 %vm149_vm0, %v136_v14  ;;  %4629 = vmatpush3.msra.mxu1 %v409_v19 }
  0x9e   : > { %4608 = vmatprep.subr.msk.mxu0 %vm149_vm0, %v134_v15  ;;  %4630 = vmatprep.subr.mxu1 %v407_v20 }
  0x9f   : > { %v405_v21 = vpop.permute.xlu0 %404  ;;  %4631 = vmatpush3.msra.mxu1 %v407_v20  ;;  %v608_v24 = vpop.permute.xlu1 %607 }
  0xa0   : > { %4632 = vmatprep.subr.mxu1 %v405_v21 }
  0xa1   : > { %4609 = vmatpush3.xpose.msk.msra.mxu0 %vm149_vm0, %v134_v15  ;;  %4633 = vmatpush3.msra.mxu1 %v405_v21 }
  0xa2   : > { %4634 = vmatprep.subr.mxu1 %v403_v22 }
  0xa3   : > { %4635 = vmatpush3.msra.mxu1 %v403_v22  ;;  %v401_v23 = vpop.permute.xlu0 %400  ;;  %v606_v41 = vpop.permute.xlu1 %605 }
  0xa4   : > { %4611 = vmatmul.mubr.msk.f32.vlgmr.msra.gmra.mxu0 %vm149_vm0, %v5576_v7  ;;  %4636 = vmatprep.subr.mxu1 %v401_v23 }
  0xa5   : > { %4613 = vmatprep.mubr.msk.f32.mxu0 %vm149_vm0, %v5571_v6  ;;  %4637 = vmatpush3.msra.mxu1 %v401_v23 }
  0xa6   : > { %4650 = vmatprep.subr.msk.mxu1 %vm149_vm0, %v608_v24 }
  0xa7   : > { %v602_v42 = vpop.permute.xlu1 %601  ;;  %v604_v43 = vpop.permute.xlu0 %603 }
  0xa8   : > { %4614 = vmatmul.mubr.msk.f32.gmra.mxu0 %vm149_vm0, %v5568_v5 }
  0xa9   : > { %4616 = vmatprep.mubr.msk.f32.mxu0 %vm149_vm0, %v5558_v3 }
  0xac   : > { %4617 = vmatmul.mubr.msk.f32.gmra.mxu0 %vm149_vm0, %v5550_v1 }
  0xad   : > { %4619 = vmatprep.mubr.msk.f32.mxu0 %vm149_vm0, %v5555_v2 }
  0xb0   : > { %4620 = vmatmul.mubr.msk.f32.gmra.mxu0 %vm149_vm0, %v5547_v0 }
 0x164   : > { %v4612_v25 = vpop.f32.mrf.mxu0 }
 0x165   : > { %v291_v26 = vsel %vm287_vm1, %v4612_v25, -inf }
 0x166   : > { %292 = vmax.xlane.f32.xlu1 %v291_v26  ;;  %v248_v27 = vpop.f32.mrf.mxu0 }
 0x167   : > { %v288_v28 = vsel %vm287_vm1, %v248_v27, -inf }
 0x168   : > { %289 = vmax.xlane.f32.xlu0 %v288_v28  ;;  %v5633_v29 = vpop.f32.mrf.mxu0 }
 0x169   : > { %v297_v34 = vsel %vm287_vm1, %v5633_v29, -inf }
 0x16a   : > { %v258_v30 = vpop.f32.mrf.mxu0 }
 0x16b   : > { %v294_v32 = vsel %vm287_vm1, %v258_v30, -inf }
 0x16c   : > { %v5635_v31 = vpop.f32.mrf.mxu0 }
 0x16d   : > { %v303_v37 = vsel %vm287_vm1, %v5635_v31, -inf }
 0x16e   : > { %v5638_v33 = vpop.f32.mrf.mxu0 }
 0x16f   : > { %v300_v35 = vsel %vm287_vm1, %v5638_v33, -inf }
 0x170   : > { %v5644_v36 = vpop.f32.mrf.mxu0 }
 0x171   : > { %v309_v38 = vsel %vm287_vm1, %v5644_v36, -inf }
 0x172   : > { %v5658_v39 = vpop.f32.mrf.mxu0 }
 0x173   : > { %v306_v40 = vsel %vm287_vm1, %v5658_v39, -inf }
 0x177   : > { %597 = vrot.lane.b32.xlu1 %v5571_v6, %s5490_s14 }
 0x17e   : > { %599 = vrot.lane.b32.xlu0 %v5568_v5, %s5490_s14 }
 0x19b   : > { %295 = vmax.xlane.f32.xlu1 %v294_v32 }
 0x19d   : > { %298 = vmax.xlane.f32.xlu0 %v297_v34 }
 0x19f   : > { %301 = vmax.xlane.f32.xlu1 %v300_v35 }
 0x1a1   : > { %304 = vmax.xlane.f32.xlu0 %v303_v37 }
 0x1a5   : > { %310 = vmax.xlane.f32.xlu0 %v309_v38 }
 0x1b0   : > { %593 = vrot.lane.b32.xlu1 %v5561_v4, %s5490_s14 }
 0x1bb   : > { %595 = vrot.lane.b32.xlu0 %v5576_v7, %s5490_s14  ;;  %s5516_s14 = smov 24  }
 0x1bf   : > { %577 = vrot.lane.b32.xlu0 %v5561_v4, %s5491_s15 }
 0x1c3   : > { %581 = vrot.lane.b32.xlu0 %v5571_v6, %s5491_s15 }
 0x1c7   : > { %585 = vrot.lane.b32.xlu0 %v5558_v3, %s5491_s15 }
 0x1cb   : > { %589 = vrot.lane.b32.xlu0 %v5555_v2, %s5491_s15 }
 0x1cf   : > { %872 = vrot.lane.b32.xlu0 %v5547_v0, %s5492_s16 }
 0x1d3   : > { %868 = vrot.lane.b32.xlu0 %v5550_v1, %s5492_s16 }
 0x1d4   : > { %307 = vmax.xlane.f32.xlu1 %v306_v40 }
 0x1d7   : > { %866 = vrot.lane.b32.xlu0 %v5558_v3, %s5492_s16 }
 0x1db   : > { %862 = vrot.lane.b32.xlu0 %v5571_v6, %s5492_s16 }
 0x1df   : > { %858 = vrot.lane.b32.xlu0 %v5561_v4, %s5492_s16 }
 0x1e3   : > { %1061 = vrot.lane.b32.xlu0 %v5550_v1, %s5493_s17 }
 0x1e5   : > { %579 = vrot.lane.b32.xlu1 %v5576_v7, %s5491_s15 }
 0x1e9   : > { %583 = vrot.lane.b32.xlu1 %v5568_v5, %s5491_s15 }
 0x1ed   : > { %587 = vrot.lane.b32.xlu1 %v5550_v1, %s5491_s15 }
 0x1ef   : > { %v5665_v44 = vpop.xlane.xlu1 %292 }
 0x1f0   : > { %7543 = vst [vmem:[#allocation2_spill] sm:$0xff] %v5665_v44  ;;  %v337_v45 = vsub.f32 %v4612_v25, %v5665_v44 }
 0x1f1   : > { %v5668_v46 = vpop.xlane.xlu0 %289  ;;  %591 = vrot.lane.b32.xlu1 %v5547_v0, %s5491_s15  ;;  %s5517_s15 = smov 28  }
 0x1f2   : > { %7544 = vst [vmem:[#allocation3_spill] sm:$0xff] %v5668_v46  ;;  %v336_v47 = vsub.f32 %v248_v27, %v5668_v46  ;;  %v346_v48 = vmul.f32 1.442695, %v337_v45 }
 0x1f3   : > { %v598_v53 = vpop.permute.xlu1 %597 }
 0x1f4   : > { %v344_v49 = vmul.f32 1.442695, %v336_v47 }
 0x1f5   : > { %v600_v52 = vpop.permute.xlu0 %599  ;;  %870 = vrot.lane.b32.xlu1 %v5555_v2, %s5492_s16 }
 0x1f6   : > { %5080 = vpow2.f32 %v344_v49 }
 0x1f7   : > { %5082 = vpow2.f32 %v346_v48 }
 0x1f9   : > { %864 = vrot.lane.b32.xlu1 %v5568_v5, %s5492_s16 }
 0x1fd   : > { %860 = vrot.lane.b32.xlu1 %v5576_v7, %s5492_s16 }
 0x201   : > { %1065 = vrot.lane.b32.xlu1 %v5547_v0, %s5493_s17 }
 0x203   : > { %v5672_v50 = vpop.eup %5080 }
 0x204   : > { %7545 = vst [vmem:[#allocation4_spill] sm:$0xff] %v5672_v50  ;;  %v5674_v51 = vpop.eup %5082  ;;  %4638 = vmatprep.mubr.msk.f32.mxu1 %vm287_vm1, %v5672_v50 }
 0x205   : > { %7546 = vst [vmem:[#allocation5_spill] sm:$0xff] %v5674_v51  ;;  %4639 = vmatmul.mubr.msk.f32.vlgmr.msra.gmra.mxu1 %vm287_vm1, %v5674_v51  ;;  %1063 = vrot.lane.b32.xlu1 %v5555_v2, %s5493_s17 }
 0x206   : > { %4651 = vmatpush3.xpose.msk.msra.mxu1 %vm149_vm0, %v608_v24 }
 0x207   : > { %4652 = vmatprep.subr.msk.mxu1 %vm149_vm0, %v606_v41 }
 0x209   : > { %1059 = vrot.lane.b32.xlu1 %v5558_v3, %s5493_s17 }
 0x20a   : > { %4653 = vmatpush3.xpose.msk.msra.mxu1 %vm149_vm0, %v606_v41 }
 0x20b   : > { %4654 = vmatprep.subr.msk.mxu1 %vm149_vm0, %v604_v43 }
 0x20e   : > { %4655 = vmatpush3.xpose.msk.msra.mxu1 %vm149_vm0, %v604_v43 }
 0x20f   : > { %4656 = vmatprep.subr.msk.mxu1 %vm149_vm0, %v602_v42 }
 0x212   : > { %4657 = vmatpush3.xpose.msk.msra.mxu1 %vm149_vm0, %v602_v42 }
 0x213   : > { %4658 = vmatprep.subr.msk.mxu1 %vm149_vm0, %v600_v52 }
 0x216   : > { %4659 = vmatpush3.xpose.msk.msra.mxu1 %vm149_vm0, %v600_v52 }
 0x217   : > { %4660 = vmatprep.subr.msk.mxu1 %vm149_vm0, %v598_v53 }
 0x21a   : > { %4661 = vmatpush3.xpose.msk.msra.mxu1 %vm149_vm0, %v598_v53 }
 0x224   : > { %v5691_v54 = vpop.xlane.xlu1 %295 }
 0x225   : > { %7547 = vst [vmem:[#allocation6_spill] sm:$0xff] %v5691_v54  ;;  %v338_v55 = vsub.f32 %v258_v30, %v5691_v54 }
 0x226   : > { %v5694_v56 = vpop.xlane.xlu0 %298 }
 0x227   : > { %7548 = vst [vmem:[#allocation7_spill] sm:$0xff] %v5694_v56  ;;  %v348_v57 = vmul.f32 1.442695, %v338_v55  ;;  %v339_v58 = vsub.f32 %v5633_v29, %v5694_v56 }
 0x228   : > { %v5698_v59 = vpop.xlane.xlu1 %301 }
 0x229   : > { %7549 = vst [vmem:[#allocation8_spill] sm:$0xff] %v5698_v59  ;;  %v350_v60 = vmul.f32 1.442695, %v339_v58  ;;  %5084 = vpow2.f32 %v348_v57  ;;  %v340_v61 = vsub.f32 %v5638_v33, %v5698_v59 }
 0x22a   : > { %v5702_v62 = vpop.xlane.xlu0 %304 }
 0x22b   : > { %7550 = vst [vmem:[#allocation9_spill] sm:$0xff] %v5702_v62  ;;  %v341_v63 = vsub.f32 %v5635_v31, %v5702_v62  ;;  %5086 = vpow2.f32 %v350_v60  ;;  %v352_v8 = vmul.f32 1.442695, %v340_v61 }
 0x22c   : > { %v594_v12 = vpop.permute.xlu1 %593 }
 0x22d   : > { %v354_v9 = vmul.f32 1.442695, %v341_v63  ;;  %5088 = vpow2.f32 %v352_v8 }
 0x22e   : > { %v5706_v10 = vpop.xlane.xlu0 %310 }
 0x22f   : > { %7551 = vst [vmem:[#allocation10_spill] sm:$0xff] %v5706_v10  ;;  %5090 = vpow2.f32 %v354_v9  ;;  %v343_v17 = vsub.f32 %v5644_v36, %v5706_v10 }
 0x231   : > { %v358_v20 = vmul.f32 1.442695, %v343_v17 }
 0x232   : > { %v596_v11 = vpop.permute.xlu0 %595 }
 0x233   : > { %4662 = vmatprep.subr.msk.mxu1 %vm149_vm0, %v596_v11 }
 0x234   : > { %4663 = vmatpush3.xpose.msk.msra.mxu1 %vm149_vm0, %v596_v11 }
 0x235   : > { %4664 = vmatprep.subr.msk.mxu1 %vm149_vm0, %v594_v12 }
 0x236   : > { %v5711_v13 = vpop.eup %5084  ;;  %v578_v22 = vpop.permute.xlu0 %577 }
 0x237   : > { %7552 = vst [vmem:[#allocation11_spill] sm:$0xff] %v5711_v13  ;;  %4641 = vmatprep.mubr.msk.f32.mxu1 %vm287_vm1, %v5711_v13 }
 0x238   : > { %4665 = vmatpush3.xpose.msk.msra.mxu1 %vm149_vm0, %v594_v12  ;;  %v5716_v14 = vpop.eup %5086 }
 0x239   : > { %7553 = vst [vmem:[#allocation12_spill] sm:$0xff] %v5716_v14  ;;  %4642 = vmatmul.mubr.msk.f32.gmra.mxu1 %vm287_vm1, %v5716_v14 }
 0x23a   : > { %v5720_v15 = vpop.eup %5088  ;;  %v582_v26 = vpop.permute.xlu0 %581 }
 0x23b   : > { %7554 = vst [vmem:[#allocation13_spill] sm:$0xff] %v5720_v15  ;;  %4644 = vmatprep.mubr.msk.f32.mxu1 %vm287_vm1, %v5720_v15 }
 0x23c   : > { %v5724_v16 = vpop.eup %5090 }
 0x23d   : > { %7555 = vst [vmem:[#allocation14_spill] sm:$0xff] %v5724_v16  ;;  %4645 = vmatmul.mubr.msk.f32.gmra.mxu1 %vm287_vm1, %v5724_v16 }
 0x23e   : > { %v586_v28 = vpop.permute.xlu0 %585 }
 0x242   : > { %v590_v30 = vpop.permute.xlu0 %589 }
 0x246   : > { %v873_v32 = vpop.permute.xlu0 %872 }
 0x247   : > { %4678 = vmatprep.subr.mxu0 %v873_v32 }
 0x248   : > { %4679 = vmatpush3.msra.mxu0 %v873_v32 }
 0x24a   : > { %v869_v33 = vpop.permute.xlu0 %868 }
 0x24e   : > { %v867_v35 = vpop.permute.xlu0 %866 }
 0x252   : > { %v863_v37 = vpop.permute.xlu0 %862 }
 0x25d   : > { %v5738_v18 = vpop.xlane.xlu1 %307 }
 0x25e   : > { %7556 = vst [vmem:[#allocation15_spill] sm:$0xff] %v5738_v18  ;;  %v342_v19 = vsub.f32 %v5658_v39, %v5738_v18  ;;  %v859_v39 = vpop.permute.xlu0 %858 }
 0x260   : > { %v356_v21 = vmul.f32 1.442695, %v342_v19 }
 0x261   : > { %v580_v25 = vpop.permute.xlu1 %579 }
 0x262   : > { %5092 = vpow2.f32 %v356_v21 }
 0x263   : > { %5094 = vpow2.f32 %v358_v20 }
 0x265   : > { %v584_v27 = vpop.permute.xlu1 %583 }
 0x269   : > { %v588_v29 = vpop.permute.xlu1 %587 }
 0x26d   : > { %v592_v31 = vpop.permute.xlu1 %591 }
 0x26f   : > { %v5742_v23 = vpop.eup %5092 }
 0x270   : > { %7557 = vst [vmem:[#allocation16_spill] sm:$0xff] %v5742_v23  ;;  %v5744_v24 = vpop.eup %5094  ;;  %4647 = vmatprep.mubr.msk.f32.mxu1 %vm287_vm1, %v5742_v23 }
 0x271   : > { %7558 = vst [vmem:[#allocation17_spill] sm:$0xff] %v5744_v24  ;;  %4648 = vmatmul.mubr.msk.f32.gmra.mxu1 %vm287_vm1, %v5744_v24  ;;  %v871_v34 = vpop.permute.xlu1 %870 }
 0x272   : > { %4666 = vmatprep.mubr.msk.f32.mxu1 %vm149_vm0, %v578_v22  ;;  %4680 = vmatprep.subr.mxu0 %v871_v34 }
 0x273   : > { %4681 = vmatpush3.msra.mxu0 %v871_v34 }
 0x274   : > { %4682 = vmatprep.subr.mxu0 %v869_v33 }
 0x275   : > { %4667 = vmatmul.mubr.msk.f32.vlgmr.msra.gmra.mxu1 %vm149_vm0, %v580_v25  ;;  %4683 = vmatpush3.msra.mxu0 %v869_v33  ;;  %v865_v36 = vpop.permute.xlu1 %864 }
 0x276   : > { %4669 = vmatprep.mubr.msk.f32.mxu1 %vm149_vm0, %v582_v26  ;;  %4684 = vmatprep.subr.mxu0 %v867_v35 }
 0x277   : > { %4685 = vmatpush3.msra.mxu0 %v867_v35 }
 0x278   : > { %4686 = vmatprep.subr.mxu0 %v865_v36 }
 0x279   : > { %4670 = vmatmul.mubr.msk.f32.gmra.mxu1 %vm149_vm0, %v584_v27  ;;  %4687 = vmatpush3.msra.mxu0 %v865_v36  ;;  %v861_v38 = vpop.permute.xlu1 %860  ;;  %v1062_v27 = vpop.permute.xlu0 %1061 }
 0x27a   : > { %4672 = vmatprep.mubr.msk.f32.mxu1 %vm149_vm0, %v586_v28  ;;  %4688 = vmatprep.subr.mxu0 %v863_v37 }
 0x27b   : > { %4689 = vmatpush3.msra.mxu0 %v863_v37 }
 0x27c   : > { %4690 = vmatprep.subr.mxu0 %v861_v38 }
 0x27d   : > { %4673 = vmatmul.mubr.msk.f32.gmra.mxu1 %vm149_vm0, %v588_v29  ;;  %4691 = vmatpush3.msra.mxu0 %v861_v38  ;;  %v5766_v40 = vpop.permute.xlu1 %1065 }
 0x27e   : > { %4675 = vmatprep.mubr.msk.f32.mxu1 %vm149_vm0, %v590_v30  ;;  %4692 = vmatprep.subr.mxu0 %v859_v39 }
 0x27f   : > { %4693 = vmatpush3.msra.mxu0 %v859_v39 }
 0x280   : > { %4706 = vmatprep.subr.msk.mxu0 %vm149_vm0, %v5766_v40 }
 0x281   : > { %4676 = vmatmul.mubr.msk.f32.gmra.mxu1 %vm149_vm0, %v592_v31  ;;  %v1064_v25 = vpop.permute.xlu1 %1063 }
 0x285   : > { %v1060_v26 = vpop.permute.xlu1 %1059 }
 0x2c5   : > { %v5770_v41 = vpop.f32.mrf.mxu1 }
 0x2c6   : > { %7559 = vst [vmem:[#allocation18_spill] sm:$0xff] %v5770_v41 }
 0x2c7   : > { %v5772_v42 = vpop.f32.mrf.mxu1 }
 0x2c8   : > { %7560 = vst [vmem:[#allocation19_spill] sm:$0xff] %v5772_v42 }
 0x2f9   : > { %v5774_v43 = vpop.f32.mrf.mxu1 }
 0x2fa   : > { %7561 = vst [vmem:[#allocation20_spill] sm:$0xff] %v5774_v43 }
 0x2fb   : > { %v5776_v45 = vpop.f32.mrf.mxu1 }
 0x2fc   : > { %7562 = vst [vmem:[#allocation21_spill] sm:$0xff] %v5776_v45  ;;  %v6077_v45 = vld [vmem:[%s5544_s11] sm:$0xff] }
 0x2fd   : > { %v5778_v47 = vpop.f32.mrf.mxu1 }
 0x2fe   : > { %7563 = vst [vmem:[#allocation22_spill] sm:$0xff] %v5778_v47 }
 0x2ff   : > { %v5780_v48 = vpop.f32.mrf.mxu1 }
 0x300   : > { %7564 = vst [vmem:[#allocation23_spill] sm:$0xff] %v5780_v48 }
 0x331   : > { %v5782_v49 = vpop.f32.mrf.mxu1 }
 0x332   : > { %7565 = vst [vmem:[#allocation24_spill] sm:$0xff] %v5782_v49 }
 0x333   : > { %v5784_v52 = vpop.f32.mrf.mxu1 }
 0x334   : > { %7566 = vst [vmem:[#allocation25_spill] sm:$0xff] %v5784_v52 }
 0x335   : > { %v4668_v53 = vpop.f32.mrf.mxu1 }
 0x336   : > { %v749_v55 = vsel %vm287_vm1, %v4668_v53, -inf }
 0x337   : > { %750 = vmax.xlane.f32.xlu1 %v749_v55  ;;  %v707_v57 = vpop.f32.mrf.mxu1 }
 0x338   : > { %v746_v58 = vsel %vm287_vm1, %v707_v57, -inf }
 0x339   : > { %747 = vmax.xlane.f32.xlu0 %v746_v58  ;;  %v5792_v60 = vpop.f32.mrf.mxu1 }
 0x33a   : > { %v755_v11 = vsel %vm287_vm1, %v5792_v60, -inf }
 0x33b   : > { %v717_v61 = vpop.f32.mrf.mxu1 }
 0x33c   : > { %v752_v8 = vsel %vm287_vm1, %v717_v61, -inf }
 0x33d   : > { %v5794_v63 = vpop.f32.mrf.mxu1 }
 0x33e   : > { %v761_v19 = vsel %vm287_vm1, %v5794_v63, -inf }
 0x33f   : > { %v5797_v9 = vpop.f32.mrf.mxu1 }
 0x340   : > { %v758_v12 = vsel %vm287_vm1, %v5797_v9, -inf }
 0x341   : > { %v5803_v17 = vpop.f32.mrf.mxu1 }
 0x342   : > { %v767_v20 = vsel %vm287_vm1, %v5803_v17, -inf }
 0x343   : > { %v5817_v21 = vpop.f32.mrf.mxu1 }
 0x344   : > { %v764_v22 = vsel %vm287_vm1, %v5817_v21, -inf }
 0x348   : > { %1055 = vrot.lane.b32.xlu1 %v5571_v6, %s5493_s17 }
 0x34f   : > { %1057 = vrot.lane.b32.xlu0 %v5568_v5, %s5493_s17 }
 0x36c   : > { %753 = vmax.xlane.f32.xlu1 %v752_v8 }
 0x36e   : > { %756 = vmax.xlane.f32.xlu0 %v755_v11 }
 0x370   : > { %759 = vmax.xlane.f32.xlu1 %v758_v12 }
 0x372   : > { %762 = vmax.xlane.f32.xlu0 %v761_v19 }
 0x376   : > { %768 = vmax.xlane.f32.xlu0 %v767_v20 }
 0x381   : > { %1051 = vrot.lane.b32.xlu1 %v5561_v4, %s5493_s17 }
 0x38c   : > { %1053 = vrot.lane.b32.xlu0 %v5576_v7, %s5493_s17 }
 0x390   : > { %1035 = vrot.lane.b32.xlu0 %v5561_v4, %s5494_s18 }
 0x394   : > { %1039 = vrot.lane.b32.xlu0 %v5571_v6, %s5494_s18 }
 0x398   : > { %1043 = vrot.lane.b32.xlu0 %v5558_v3, %s5494_s18 }
 0x39c   : > { %1047 = vrot.lane.b32.xlu0 %v5555_v2, %s5494_s18 }
 0x3a0   : > { %1330 = vrot.lane.b32.xlu0 %v5547_v0, %s5495_s19 }
 0x3a4   : > { %1326 = vrot.lane.b32.xlu0 %v5550_v1, %s5495_s19 }
 0x3a5   : > { %765 = vmax.xlane.f32.xlu1 %v764_v22 }
 0x3a8   : > { %1324 = vrot.lane.b32.xlu0 %v5558_v3, %s5495_s19 }
 0x3ac   : > { %1320 = vrot.lane.b32.xlu0 %v5571_v6, %s5495_s19 }
 0x3b0   : > { %1316 = vrot.lane.b32.xlu0 %v5561_v4, %s5495_s19 }
 0x3b4   : > { %1519 = vrot.lane.b32.xlu0 %v5550_v1, %s5496_s20 }
 0x3b6   : > { %1037 = vrot.lane.b32.xlu1 %v5576_v7, %s5494_s18 }
 0x3ba   : > { %1041 = vrot.lane.b32.xlu1 %v5568_v5, %s5494_s18 }
 0x3be   : > { %1045 = vrot.lane.b32.xlu1 %v5550_v1, %s5494_s18 }
 0x3c0   : > { %v5824_v28 = vpop.xlane.xlu1 %750 }
 0x3c1   : > { %7567 = vst [vmem:[#allocation26_spill] sm:$0xff] %v5824_v28  ;;  %v795_v29 = vsub.f32 %v4668_v53, %v5824_v28 }
 0x3c2   : > { %v5827_v30 = vpop.xlane.xlu0 %747  ;;  %1049 = vrot.lane.b32.xlu1 %v5547_v0, %s5494_s18  ;;  %s7416_s18 = scalar_lea.vmem %s7477_s1, %s4336_s8 }
 0x3c3   : > { %v794_v31 = vsub.f32 %v707_v57, %v5827_v30  ;;  %v804_v32 = vmul.f32 1.442695, %v795_v29 }
 0x3c4   : > { %v1056_v37 = vpop.permute.xlu1 %1055 }
 0x3c5   : > { %v802_v33 = vmul.f32 1.442695, %v794_v31 }
 0x3c6   : > { %v1058_v36 = vpop.permute.xlu0 %1057  ;;  %1328 = vrot.lane.b32.xlu1 %v5555_v2, %s5495_s19 }
 0x3c7   : > { %5096 = vpow2.f32 %v802_v33 }
 0x3c8   : > { %5098 = vpow2.f32 %v804_v32 }
 0x3ca   : > { %1322 = vrot.lane.b32.xlu1 %v5568_v5, %s5495_s19 }
 0x3ce   : > { %1318 = vrot.lane.b32.xlu1 %v5576_v7, %s5495_s19 }
 0x3d2   : > { %1523 = vrot.lane.b32.xlu1 %v5547_v0, %s5496_s20 }
 0x3d4   : > { %v5831_v34 = vpop.eup %5096 }
 0x3d5   : > { %v5833_v35 = vpop.eup %5098  ;;  %4694 = vmatprep.mubr.msk.f32.mxu0 %vm287_vm1, %v5831_v34 }
 0x3d6   : > { %4695 = vmatmul.mubr.msk.f32.vlgmr.msra.gmra.mxu0 %vm287_vm1, %v5833_v35  ;;  %1521 = vrot.lane.b32.xlu1 %v5555_v2, %s5496_s20 }
 0x3d7   : > { %4707 = vmatpush3.xpose.msk.msra.mxu0 %vm149_vm0, %v5766_v40 }
 0x3d8   : > { %4708 = vmatprep.subr.msk.mxu0 %vm149_vm0, %v1064_v25 }
 0x3da   : > { %1517 = vrot.lane.b32.xlu1 %v5558_v3, %s5496_s20 }
 0x3db   : > { %4709 = vmatpush3.xpose.msk.msra.mxu0 %vm149_vm0, %v1064_v25 }
 0x3dc   : > { %4710 = vmatprep.subr.msk.mxu0 %vm149_vm0, %v1062_v27 }
 0x3df   : > { %4711 = vmatpush3.xpose.msk.msra.mxu0 %vm149_vm0, %v1062_v27 }
 0x3e0   : > { %4712 = vmatprep.subr.msk.mxu0 %vm149_vm0, %v1060_v26 }
 0x3e3   : > { %4713 = vmatpush3.xpose.msk.msra.mxu0 %vm149_vm0, %v1060_v26 }
 0x3e4   : > { %4714 = vmatprep.subr.msk.mxu0 %vm149_vm0, %v1058_v36 }
 0x3e7   : > { %4715 = vmatpush3.xpose.msk.msra.mxu0 %vm149_vm0, %v1058_v36 }
 0x3e8   : > { %4716 = vmatprep.subr.msk.mxu0 %vm149_vm0, %v1056_v37 }
 0x3eb   : > { %4717 = vmatpush3.xpose.msk.msra.mxu0 %vm149_vm0, %v1056_v37 }
 0x3f5   : > { %v5851_v38 = vpop.xlane.xlu1 %753 }
 0x3f6   : > { %7568 = vst [vmem:[#allocation27_spill] sm:$0xff] %v5851_v38  ;;  %v796_v39 = vsub.f32 %v717_v61, %v5851_v38 }
 0x3f7   : > { %v5854_v40 = vpop.xlane.xlu0 %756 }
 0x3f8   : > { %7569 = vst [vmem:[#allocation28_spill] sm:$0xff] %v5854_v40  ;;  %v806_v53 = vmul.f32 1.442695, %v796_v39  ;;  %v797_v55 = vsub.f32 %v5792_v60, %v5854_v40 }
 0x3f9   : > { %v5858_v57 = vpop.xlane.xlu1 %759 }
 0x3fa   : > { %7570 = vst [vmem:[#allocation29_spill] sm:$0xff] %v5858_v57  ;;  %v808_v58 = vmul.f32 1.442695, %v797_v55  ;;  %5100 = vpow2.f32 %v806_v53  ;;  %v798_v8 = vsub.f32 %v5797_v9, %v5858_v57 }
 0x3fb   : > { %v5862_v11 = vpop.xlane.xlu0 %762 }
 0x3fc   : > { %7571 = vst [vmem:[#allocation30_spill] sm:$0xff] %v5862_v11  ;;  %v799_v12 = vsub.f32 %v5794_v63, %v5862_v11  ;;  %5102 = vpow2.f32 %v808_v58  ;;  %v810_v61 = vmul.f32 1.442695, %v798_v8 }
 0x3fd   : > { %v1052_v22 = vpop.permute.xlu1 %1051 }
 0x3fe   : > { %v812_v19 = vmul.f32 1.442695, %v799_v12  ;;  %5104 = vpow2.f32 %v810_v61 }
 0x3ff   : > { %v5866_v20 = vpop.xlane.xlu0 %768 }
 0x400   : > { %7572 = vst [vmem:[#allocation31_spill] sm:$0xff] %v5866_v20  ;;  %5106 = vpow2.f32 %v812_v19  ;;  %v801_v27 = vsub.f32 %v5803_v17, %v5866_v20 }
 0x402   : > { %v816_v32 = vmul.f32 1.442695, %v801_v27 }
 0x403   : > { %v1054_v60 = vpop.permute.xlu0 %1053 }
 0x404   : > { %4718 = vmatprep.subr.msk.mxu0 %vm149_vm0, %v1054_v60 }
 0x405   : > { %4719 = vmatpush3.xpose.msk.msra.mxu0 %vm149_vm0, %v1054_v60 }
 0x406   : > { %4720 = vmatprep.subr.msk.mxu0 %vm149_vm0, %v1052_v22 }
 0x407   : > { %v5871_v9 = vpop.eup %5100  ;;  %v1036_v36 = vpop.permute.xlu0 %1035 }
 0x408   : > { %4697 = vmatprep.mubr.msk.f32.mxu0 %vm287_vm1, %v5871_v9 }
 0x409   : > { %4721 = vmatpush3.xpose.msk.msra.mxu0 %vm149_vm0, %v1052_v22  ;;  %v5876_v63 = vpop.eup %5102 }
 0x40a   : > { %4698 = vmatmul.mubr.msk.f32.gmra.mxu0 %vm287_vm1, %v5876_v63 }
 0x40b   : > { %v5880_v25 = vpop.eup %5104  ;;  %v1040_v17 = vpop.permute.xlu0 %1039 }
 0x40c   : > { %4700 = vmatprep.mubr.msk.f32.mxu0 %vm287_vm1, %v5880_v25 }
 0x40d   : > { %v5884_v26 = vpop.eup %5106 }
 0x40e   : > { %4701 = vmatmul.mubr.msk.f32.gmra.mxu0 %vm287_vm1, %v5884_v26 }
 0x40f   : > { %v1044_v55 = vpop.permute.xlu0 %1043 }
 0x413   : > { %v1048_v8 = vpop.permute.xlu0 %1047 }
 0x417   : > { %v1331_v61 = vpop.permute.xlu0 %1330 }
 0x418   : > { %4734 = vmatprep.subr.mxu1 %v1331_v61 }
 0x419   : > { %4735 = vmatpush3.msra.mxu1 %v1331_v61 }
 0x41b   : > { %v1327_v19 = vpop.permute.xlu0 %1326 }
 0x41f   : > { %v1325_v22 = vpop.permute.xlu0 %1324 }
 0x42e   : > { %v5898_v29 = vpop.xlane.xlu1 %765 }
 0x42f   : > { %7573 = vst [vmem:[#allocation32_spill] sm:$0xff] %v5898_v29  ;;  %v800_v31 = vsub.f32 %v5817_v21, %v5898_v29 }
 0x431   : > { %v814_v33 = vmul.f32 1.442695, %v800_v31  ;;  %v1321_v31 = vpop.permute.xlu0 %1320 }
 0x432   : > { %v1038_v53 = vpop.permute.xlu1 %1037 }
 0x433   : > { %5108 = vpow2.f32 %v814_v33 }
 0x434   : > { %5110 = vpow2.f32 %v816_v32 }
 0x435   : > { %v1317_v33 = vpop.permute.xlu0 %1316 }
 0x436   : > { %v1042_v21 = vpop.permute.xlu1 %1041 }
 0x43a   : > { %v1046_v58 = vpop.permute.xlu1 %1045 }
 0x43e   : > { %v1050_v12 = vpop.permute.xlu1 %1049 }
 0x440   : > { %v5902_v37 = vpop.eup %5108 }
 0x441   : > { %v5904_v39 = vpop.eup %5110  ;;  %4703 = vmatprep.mubr.msk.f32.mxu0 %vm287_vm1, %v5902_v37 }
 0x442   : > { %4704 = vmatmul.mubr.msk.f32.gmra.mxu0 %vm287_vm1, %v5904_v39  ;;  %v1329_v60 = vpop.permute.xlu1 %1328 }
 0x443   : > { %4722 = vmatprep.mubr.msk.f32.mxu0 %vm149_vm0, %v1036_v36  ;;  %4736 = vmatprep.subr.mxu1 %v1329_v60 }
 0x444   : > { %4737 = vmatpush3.msra.mxu1 %v1329_v60 }
 0x445   : > { %4738 = vmatprep.subr.mxu1 %v1327_v19 }
 0x446   : > { %4723 = vmatmul.mubr.msk.f32.vlgmr.msra.gmra.mxu0 %vm149_vm0, %v1038_v53  ;;  %4739 = vmatpush3.msra.mxu1 %v1327_v19  ;;  %v1323_v27 = vpop.permute.xlu1 %1322 }
 0x447   : > { %4725 = vmatprep.mubr.msk.f32.mxu0 %vm149_vm0, %v1040_v17  ;;  %4740 = vmatprep.subr.mxu1 %v1325_v22 }
 0x448   : > { %4741 = vmatpush3.msra.mxu1 %v1325_v22 }
 0x449   : > { %4742 = vmatprep.subr.mxu1 %v1323_v27 }
 0x44a   : > { %4726 = vmatmul.mubr.msk.f32.gmra.mxu0 %vm149_vm0, %v1042_v21  ;;  %4743 = vmatpush3.msra.mxu1 %v1323_v27  ;;  %v1319_v32 = vpop.permute.xlu1 %1318 }
 0x44b   : > { %4728 = vmatprep.mubr.msk.f32.mxu0 %vm149_vm0, %v1044_v55  ;;  %4744 = vmatprep.subr.mxu1 %v1321_v31 }
 0x44c   : > { %4745 = vmatpush3.msra.mxu1 %v1321_v31 }
 0x44d   : > { %4746 = vmatprep.subr.mxu1 %v1319_v32 }
 0x44e   : > { %4729 = vmatmul.mubr.msk.f32.gmra.mxu0 %vm149_vm0, %v1046_v58  ;;  %4747 = vmatpush3.msra.mxu1 %v1319_v32  ;;  %v5926_v36 = vpop.permute.xlu1 %1523 }
 0x44f   : > { %4731 = vmatprep.mubr.msk.f32.mxu0 %vm149_vm0, %v1048_v8  ;;  %4748 = vmatprep.subr.mxu1 %v1317_v33 }
 0x450   : > { %4749 = vmatpush3.msra.mxu1 %v1317_v33 }
 0x451   : > { %4762 = vmatprep.subr.msk.mxu1 %vm149_vm0, %v5926_v36 }
 0x452   : > { %4732 = vmatmul.mubr.msk.f32.gmra.mxu0 %vm149_vm0, %v1050_v12 }
 0x496   : > { %v5930_v53 = vpop.f32.mrf.mxu0 }
 0x497   : > { %7574 = vst [vmem:[#allocation33_spill] sm:$0xff] %v5930_v53 }
 0x498   : > { %v5932_v17 = vpop.f32.mrf.mxu0 }
 0x499   : > { %7575 = vst [vmem:[#allocation34_spill] sm:$0xff] %v5932_v17 }
 0x4ca   : > { %v5934_v21 = vpop.f32.mrf.mxu0 }
 0x4cb   : > { %7576 = vst [vmem:[#allocation35_spill] sm:$0xff] %v5934_v21 }
 0x4cc   : > { %v5936_v55 = vpop.f32.mrf.mxu0 }
 0x4cd   : > { %7577 = vst [vmem:[#allocation36_spill] sm:$0xff] %v5936_v55 }
 0x4ce   : > { %v5938_v58 = vpop.f32.mrf.mxu0 }
 0x4cf   : > { %7578 = vst [vmem:[#allocation37_spill] sm:$0xff] %v5938_v58 }
 0x4d0   : > { %v5940_v8 = vpop.f32.mrf.mxu0 }
 0x4d1   : > { %7579 = vst [vmem:[#allocation38_spill] sm:$0xff] %v5940_v8 }
 0x502   : > { %v5942_v12 = vpop.f32.mrf.mxu0 }
 0x503   : > { %7580 = vst [vmem:[#allocation39_spill] sm:$0xff] %v5942_v12 }
 0x504   : > { %v5944_v61 = vpop.f32.mrf.mxu0 }
 0x505   : > { %7581 = vst [vmem:[#allocation40_spill] sm:$0xff] %v5944_v61 }
 0x506   : > { %v4724_v19 = vpop.f32.mrf.mxu0 }
 0x507   : > { %v1207_v60 = vsel %vm287_vm1, %v4724_v19, -inf }
 0x508   : > { %1208 = vmax.xlane.f32.xlu1 %v1207_v60  ;;  %v1165_v22 = vpop.f32.mrf.mxu0 }
 0x509   : > { %v1204_v27 = vsel %vm287_vm1, %v1165_v22, -inf }
 0x50a   : > { %1205 = vmax.xlane.f32.xlu0 %v1204_v27  ;;  %v5952_v31 = vpop.f32.mrf.mxu0 }
 0x50b   : > { %v1213_v60 = vsel %vm287_vm1, %v5952_v31, -inf }
 0x50c   : > { %v1175_v32 = vpop.f32.mrf.mxu0 }
 0x50d   : > { %v1210_v49 = vsel %vm287_vm1, %v1175_v32, -inf }
 0x50e   : > { %v5954_v33 = vpop.f32.mrf.mxu0 }
 0x50f   : > { %v1219_v43 = vsel %vm287_vm1, %v5954_v33, -inf }
 0x510   : > { %v5957_v47 = vpop.f32.mrf.mxu0 }
 0x511   : > { %v1216_v27 = vsel %vm287_vm1, %v5957_v47, -inf }
 0x512   : > { %v5963_v52 = vpop.f32.mrf.mxu0 }
 0x513   : > { %v1225_v48 = vsel %vm287_vm1, %v5963_v52, -inf }
 0x519   : > { %1513 = vrot.lane.b32.xlu1 %v5571_v6, %s5496_s20 }
 0x520   : > { %1515 = vrot.lane.b32.xlu0 %v5568_v5, %s5496_s20 }
 0x53d   : > { %1211 = vmax.xlane.f32.xlu1 %v1210_v49  ;;  %v1522_v49 = vpop.permute.xlu1 %1521 }
 0x53f   : > { %1214 = vmax.xlane.f32.xlu0 %v1213_v60 }
 0x541   : > { %1217 = vmax.xlane.f32.xlu1 %v1216_v27  ;;  %v1518_v60 = vpop.permute.xlu1 %1517  ;;  %v1520_v27 = vpop.permute.xlu0 %1519 }
 0x543   : > { %1220 = vmax.xlane.f32.xlu0 %v1219_v43  ;;  %v5977_v43 = vpop.f32.mrf.mxu0 }
 0x547   : > { %1226 = vmax.xlane.f32.xlu0 %v1225_v48  ;;  %v1222_v48 = vsel %vm287_vm1, %v5977_v43, -inf }
 0x552   : > { %1509 = vrot.lane.b32.xlu1 %v5561_v4, %s5496_s20 }
 0x55d   : > { %1511 = vrot.lane.b32.xlu0 %v5576_v7, %s5496_s20 }
 0x561   : > { %1493 = vrot.lane.b32.xlu0 %v5561_v4, %s5497_s21 }
 0x565   : > { %1497 = vrot.lane.b32.xlu0 %v5571_v6, %s5497_s21 }
 0x569   : > { %1501 = vrot.lane.b32.xlu0 %v5558_v3, %s5497_s21 }
 0x56d   : > { %1505 = vrot.lane.b32.xlu0 %v5555_v2, %s5497_s21 }
 0x576   : > { %1223 = vmax.xlane.f32.xlu1 %v1222_v48 }
 0x587   : > { %1495 = vrot.lane.b32.xlu1 %v5576_v7, %s5497_s21 }
 0x58b   : > { %1499 = vrot.lane.b32.xlu1 %v5568_v5, %s5497_s21 }
 0x58f   : > { %1503 = vrot.lane.b32.xlu1 %v5550_v1, %s5497_s21 }
 0x591   : > { %v5984_v4 = vpop.xlane.xlu1 %1208 }
 0x592   : > { %7582 = vst [vmem:[#allocation41_spill] sm:$0xff] %v5984_v4  ;;  %v1253_v3 = vsub.f32 %v4724_v19, %v5984_v4 }
 0x593   : > { %v5987_v2 = vpop.xlane.xlu0 %1205  ;;  %1507 = vrot.lane.b32.xlu1 %v5547_v0, %s5497_s21 }
 0x594   : > { %7583 = vst [vmem:[#allocation42_spill] sm:$0xff] %v5987_v2  ;;  %v1252_v6 = vsub.f32 %v1165_v22, %v5987_v2  ;;  %v1262_v48 = vmul.f32 1.442695, %v1253_v3 }
 0x595   : > { %v1514_v1 = vpop.permute.xlu1 %1513 }
 0x596   : > { %v1260_v41 = vmul.f32 1.442695, %v1252_v6 }
 0x597   : > { %v1516_v0 = vpop.permute.xlu0 %1515 }
 0x598   : > { %5112 = vpow2.f32 %v1260_v41 }
 0x599   : > { %5114 = vpow2.f32 %v1262_v48 }
 0x5a5   : > { %v5991_v7 = vpop.eup %5112 }
 0x5a6   : > { %v5993_v5 = vpop.eup %5114  ;;  %4750 = vmatprep.mubr.msk.f32.mxu1 %vm287_vm1, %v5991_v7 }
 0x5a7   : > { %4751 = vmatmul.mubr.msk.f32.vlgmr.msra.gmra.mxu1 %vm287_vm1, %v5993_v5 }
 0x5a8   : > { %4763 = vmatpush3.xpose.msk.msra.mxu1 %vm149_vm0, %v5926_v36 }
 0x5a9   : > { %4764 = vmatprep.subr.msk.mxu1 %vm149_vm0, %v1522_v49 }
 0x5ac   : > { %4765 = vmatpush3.xpose.msk.msra.mxu1 %vm149_vm0, %v1522_v49 }
 0x5ad   : > { %4766 = vmatprep.subr.msk.mxu1 %vm149_vm0, %v1520_v27 }
 0x5b0   : > { %4767 = vmatpush3.xpose.msk.msra.mxu1 %vm149_vm0, %v1520_v27 }
 0x5b1   : > { %4768 = vmatprep.subr.msk.mxu1 %vm149_vm0, %v1518_v60 }
 0x5b4   : > { %4769 = vmatpush3.xpose.msk.msra.mxu1 %vm149_vm0, %v1518_v60 }
 0x5b5   : > { %4770 = vmatprep.subr.msk.mxu1 %vm149_vm0, %v1516_v0 }
 0x5b8   : > { %4771 = vmatpush3.xpose.msk.msra.mxu1 %vm149_vm0, %v1516_v0 }
 0x5b9   : > { %4772 = vmatprep.subr.msk.mxu1 %vm149_vm0, %v1514_v1 }
 0x5bc   : > { %4773 = vmatpush3.xpose.msk.msra.mxu1 %vm149_vm0, %v1514_v1 }
 0x5c6   : > { %v6011_v41 = vpop.xlane.xlu1 %1211 }
 0x5c7   : > { %7584 = vst [vmem:[#allocation43_spill] sm:$0xff] %v6011_v41  ;;  %v1254_v36 = vsub.f32 %v1175_v32, %v6011_v41 }
 0x5c8   : > { %v6014_v19 = vpop.xlane.xlu0 %1214 }
 0x5c9   : > { %7585 = vst [vmem:[#allocation44_spill] sm:$0xff] %v6014_v19  ;;  %v1264_v22 = vmul.f32 1.442695, %v1254_v36  ;;  %v1255_v49 = vsub.f32 %v5952_v31, %v6014_v19 }
 0x5ca   : > { %v6018_v60 = vpop.xlane.xlu1 %1217 }
 0x5cb   : > { %7586 = vst [vmem:[#allocation45_spill] sm:$0xff] %v6018_v60  ;;  %v1266_v27 = vmul.f32 1.442695, %v1255_v49  ;;  %5116 = vpow2.f32 %v1264_v22  ;;  %v1256_v3 = vsub.f32 %v5957_v47, %v6018_v60 }
 0x5cc   : > { %v6022_v6 = vpop.xlane.xlu0 %1220 }
 0x5cd   : > { %7587 = vst [vmem:[#allocation46_spill] sm:$0xff] %v6022_v6  ;;  %v1257_v48 = vsub.f32 %v5954_v33, %v6022_v6  ;;  %5118 = vpow2.f32 %v1266_v27  ;;  %v1268_v32 = vmul.f32 1.442695, %v1256_v3  ;;  %v6049_v27 = vld [vmem:[%s5544_s11 + $0x38] sm:$0xff]  ;;  %v6053_v3 = vld [vmem:[%s5544_s11 + $0x30] sm:$0xff] }
 0x5ce   : > { %v1510_v36 = vpop.permute.xlu1 %1509  ;;  %1788 = vrot.lane.b32.xlu0 %v6049_v27, %s5498_s22  ;;  %1786 = vrot.lane.b32.xlu1 %v6053_v3, %s5498_s22 }
 0x5cf   : > { %v1270_v0 = vmul.f32 1.442695, %v1257_v48  ;;  %5120 = vpow2.f32 %v1268_v32  ;;  %v6057_v48 = vld [vmem:[%s5544_s11 + $0x28] sm:$0xff]  ;;  %v6061_v32 = vld [vmem:[%s5544_s11 + $0x18] sm:$0xff] }
 0x5d0   : > { %v6026_v1 = vpop.xlane.xlu0 %1226 }
 0x5d1   : > { %7588 = vst [vmem:[#allocation47_spill] sm:$0xff] %v6026_v1  ;;  %5122 = vpow2.f32 %v1270_v0  ;;  %v6065_v0 = vld [vmem:[%s5544_s11 + $0x20] sm:$0xff]  ;;  %v1259_v42 = vsub.f32 %v5963_v52, %v6026_v1 }
 0x5d2   : > { %1784 = vrot.lane.b32.xlu0 %v6057_v48, %s5498_s22  ;;  %1780 = vrot.lane.b32.xlu1 %v6061_v32, %s5498_s22 }
 0x5d3   : > { %v1274_v18 = vmul.f32 1.442695, %v1259_v42 }
 0x5d4   : > { %v1512_v31 = vpop.permute.xlu0 %1511 }
 0x5d5   : > { %4774 = vmatprep.subr.msk.mxu1 %vm149_vm0, %v1512_v31 }
 0x5d6   : > { %4775 = vmatpush3.xpose.msk.msra.mxu1 %vm149_vm0, %v1512_v31  ;;  %1782 = vrot.lane.b32.xlu0 %v6065_v0, %s5498_s22  ;;  %v6069_v31 = vld [vmem:[%s5544_s11 + $0x8] sm:$0xff] }
 0x5d7   : > { %4776 = vmatprep.subr.msk.mxu1 %vm149_vm0, %v1510_v36  ;;  %1776 = vrot.lane.b32.xlu1 %v6069_v31, %s5498_s22 }
 0x5d8   : > { %v6031_v47 = vpop.eup %5116  ;;  %v1494_v59 = vpop.permute.xlu0 %1493 }
 0x5d9   : > { %4753 = vmatprep.mubr.msk.f32.mxu1 %vm287_vm1, %v6031_v47 }
 0x5da   : > { %4777 = vmatpush3.xpose.msk.msra.mxu1 %vm149_vm0, %v1510_v36  ;;  %v6036_v33 = vpop.eup %5118  ;;  %v6073_v36 = vld [vmem:[%s5544_s11 + $0x10] sm:$0xff] }
 0x5db   : > { %4754 = vmatmul.mubr.msk.f32.gmra.mxu1 %vm287_vm1, %v6036_v33  ;;  %1778 = vrot.lane.b32.xlu0 %v6073_v36, %s5498_s22 }
 0x5dc   : > { %v6040_v22 = vpop.eup %5120  ;;  %v1498_v52 = vpop.permute.xlu0 %1497  ;;  %1981 = vrot.lane.b32.xlu1 %v6049_v27, %s5499_s23 }
 0x5dd   : > { %4756 = vmatprep.mubr.msk.f32.mxu1 %vm287_vm1, %v6040_v22 }
 0x5de   : > { %v6044_v49 = vpop.eup %5122 }
 0x5df   : > { %4757 = vmatmul.mubr.msk.f32.gmra.mxu1 %vm287_vm1, %v6044_v49  ;;  %1774 = vrot.lane.b32.xlu0 %v6077_v45, %s5498_s22 }
 0x5e0   : > { %1979 = vrot.lane.b32.xlu1 %v6053_v3, %s5499_s23 }
 0x5e3   : > { %1977 = vrot.lane.b32.xlu0 %v6057_v48, %s5499_s23 }
 0x5e4   : > { %1975 = vrot.lane.b32.xlu1 %v6065_v0, %s5499_s23 }
 0x5ff   : > { %v6082_v10 = vpop.xlane.xlu1 %1223 }
 0x600   : > { %7589 = vst [vmem:[#allocation48_spill] sm:$0xff] %v6082_v10  ;;  %v1258_v62 = vsub.f32 %v5977_v43, %v6082_v10 }
 0x602   : > { %v1272_v56 = vmul.f32 1.442695, %v1258_v62 }
 0x603   : > { %v1496_v46 = vpop.permute.xlu1 %1495 }
 0x604   : > { %5124 = vpow2.f32 %v1272_v56  ;;  %v1502_v56 = vpop.permute.xlu0 %1501 }
 0x605   : > { %5126 = vpow2.f32 %v1274_v18 }
 0x607   : > { %v1500_v43 = vpop.permute.xlu1 %1499 }
 0x608   : > { %v1506_v18 = vpop.permute.xlu0 %1505 }
 0x60b   : > { %v1504_v62 = vpop.permute.xlu1 %1503 }
 0x60f   : > { %v1508_v42 = vpop.permute.xlu1 %1507 }
 0x611   : > { %v6086_v44 = vpop.eup %5124 }
 0x612   : > { %v6088_v54 = vpop.eup %5126  ;;  %4759 = vmatprep.mubr.msk.f32.mxu1 %vm287_vm1, %v6086_v44 }
 0x613   : > { %4760 = vmatmul.mubr.msk.f32.gmra.mxu1 %vm287_vm1, %v6088_v54 }
 0x614   : > { %4778 = vmatprep.mubr.msk.f32.mxu1 %vm149_vm0, %v1494_v59 }
 0x617   : > { %4779 = vmatmul.mubr.msk.f32.vlgmr.msra.gmra.mxu1 %vm149_vm0, %v1496_v46 }
 0x618   : > { %4781 = vmatprep.mubr.msk.f32.mxu1 %vm149_vm0, %v1498_v52 }
 0x61b   : > { %4782 = vmatmul.mubr.msk.f32.gmra.mxu1 %vm149_vm0, %v1500_v43 }
 0x61c   : > { %4784 = vmatprep.mubr.msk.f32.mxu1 %vm149_vm0, %v1502_v56 }
 0x61f   : > { %4785 = vmatmul.mubr.msk.f32.gmra.mxu1 %vm149_vm0, %v1504_v62 }
 0x620   : > { %4787 = vmatprep.mubr.msk.f32.mxu1 %vm149_vm0, %v1506_v18 }
 0x623   : > { %4788 = vmatmul.mubr.msk.f32.gmra.mxu1 %vm149_vm0, %v1508_v42 }
 0x640   : > { %v1789_v46 = vpop.permute.xlu0 %1788  ;;  %v1787_v52 = vpop.permute.xlu1 %1786 }
 0x641   : > { %4790 = vmatprep.subr.mxu0 %v1789_v46 }
 0x642   : > { %4791 = vmatpush3.msra.mxu0 %v1789_v46 }
 0x643   : > { %4792 = vmatprep.subr.mxu0 %v1787_v52 }
 0x644   : > { %v1785_v59 = vpop.permute.xlu0 %1784  ;;  %4793 = vmatpush3.msra.mxu0 %v1787_v52  ;;  %v1781_v56 = vpop.permute.xlu1 %1780 }
 0x645   : > { %4794 = vmatprep.subr.mxu0 %v1785_v59 }
 0x646   : > { %4795 = vmatpush3.msra.mxu0 %v1785_v59 }
 0x648   : > { %v1783_v43 = vpop.permute.xlu0 %1782 }
 0x649   : > { %4796 = vmatprep.subr.mxu0 %v1783_v43  ;;  %v1777_v18 = vpop.permute.xlu1 %1776 }
 0x64a   : > { %4797 = vmatpush3.msra.mxu0 %v1783_v43 }
 0x64b   : > { %4798 = vmatprep.subr.mxu0 %v1781_v56 }
 0x64c   : > { %4799 = vmatpush3.msra.mxu0 %v1781_v56 }
 0x64d   : > { %v1779_v62 = vpop.permute.xlu0 %1778 }
 0x64e   : > { %4800 = vmatprep.subr.mxu0 %v1779_v62  ;;  %v6110_v46 = vpop.permute.xlu1 %1981 }
 0x64f   : > { %4801 = vmatpush3.msra.mxu0 %v1779_v62 }
 0x650   : > { %4802 = vmatprep.subr.mxu0 %v1777_v18 }
 0x651   : > { %v1775_v42 = vpop.permute.xlu0 %1774  ;;  %4803 = vmatpush3.msra.mxu0 %v1777_v18 }
 0x652   : > { %4804 = vmatprep.subr.mxu0 %v1775_v42 }
 0x653   : > { %4805 = vmatpush3.msra.mxu0 %v1775_v42 }
 0x654   : > { %4818 = vmatprep.subr.msk.mxu0 %vm149_vm0, %v6110_v46 }
 0x667   : > { %v6114_v59 = vpop.f32.mrf.mxu1 }
 0x668   : > { %7590 = vst [vmem:[#allocation49_spill] sm:$0xff] %v6114_v59 }
 0x669   : > { %v6116_v52 = vpop.f32.mrf.mxu1 }
 0x66a   : > { %7591 = vst [vmem:[#allocation50_spill] sm:$0xff] %v6116_v52 }
 0x69b   : > { %v6118_v43 = vpop.f32.mrf.mxu1 }
 0x69c   : > { %7592 = vst [vmem:[#allocation51_spill] sm:$0xff] %v6118_v43 }
 0x69d   : > { %v6120_v56 = vpop.f32.mrf.mxu1 }
 0x69e   : > { %7593 = vst [vmem:[#allocation52_spill] sm:$0xff] %v6120_v56 }
 0x69f   : > { %v6122_v1 = vpop.f32.mrf.mxu1 }
 0x6a0   : > { %7594 = vst [vmem:[#allocation53_spill] sm:$0xff] %v6122_v1 }
 0x6a1   : > { %v6124_v62 = vpop.f32.mrf.mxu1 }
 0x6a2   : > { %7595 = vst [vmem:[#allocation54_spill] sm:$0xff] %v6124_v62 }
 0x6d3   : > { %v6126_v18 = vpop.f32.mrf.mxu1 }
 0x6d4   : > { %7596 = vst [vmem:[#allocation55_spill] sm:$0xff] %v6126_v18 }
 0x6d5   : > { %v6128_v61 = vpop.f32.mrf.mxu1 }
 0x6d6   : > { %7597 = vst [vmem:[#allocation56_spill] sm:$0xff] %v6128_v61 }
 0x6d7   : > { %v4780_v42 = vpop.f32.mrf.mxu1 }
 0x6d8   : > { %v1665_v6 = vsel %vm287_vm1, %v4780_v42, -inf }
 0x6d9   : > { %1666 = vmax.xlane.f32.xlu1 %v1665_v6  ;;  %v1623_v19 = vpop.f32.mrf.mxu1 }
 0x6da   : > { %v1662_v59 = vsel %vm287_vm1, %v1623_v19, -inf }
 0x6db   : > { %1663 = vmax.xlane.f32.xlu0 %v1662_v59  ;;  %v6136_v1 = vpop.f32.mrf.mxu1 }
 0x6dc   : > { %v1671_v6 = vsel %vm287_vm1, %v6136_v1, -inf }
 0x6dd   : > { %v1633_v43 = vpop.f32.mrf.mxu1 }
 0x6de   : > { %v1668_v61 = vsel %vm287_vm1, %v1633_v43, -inf }
 0x6df   : > { %v6138_v18 = vpop.f32.mrf.mxu1 }
 0x6e0   : > { %v1677_v52 = vsel %vm287_vm1, %v6138_v18, -inf }
 0x6e1   : > { %v6141_v62 = vpop.f32.mrf.mxu1 }
 0x6e2   : > { %v1674_v59 = vsel %vm287_vm1, %v6141_v62, -inf }
 0x6e3   : > { %v6147_v56 = vpop.f32.mrf.mxu1 }
 0x6e4   : > { %v1683_v8 = vsel %vm287_vm1, %v6147_v56, -inf }
 0x6ea   : > { %1971 = vrot.lane.b32.xlu1 %v6073_v36, %s5499_s23 }
 0x6f1   : > { %1973 = vrot.lane.b32.xlu0 %v6061_v32, %s5499_s23 }
 0x70e   : > { %1669 = vmax.xlane.f32.xlu1 %v1668_v61  ;;  %v6161_v61 = vpop.f32.mrf.mxu1 }
 0x710   : > { %1672 = vmax.xlane.f32.xlu0 %v1671_v6 }
 0x712   : > { %1675 = vmax.xlane.f32.xlu1 %v1674_v59  ;;  %v1978_v59 = vpop.permute.xlu0 %1977 }
 0x714   : > { %1678 = vmax.xlane.f32.xlu0 %v1677_v52  ;;  %v1980_v52 = vpop.permute.xlu1 %1979 }
 0x718   : > { %1684 = vmax.xlane.f32.xlu0 %v1683_v8  ;;  %v1680_v8 = vsel %vm287_vm1, %v6161_v61, -inf  ;;  %v1976_v6 = vpop.permute.xlu1 %1975 }
 0x723   : > { %1967 = vrot.lane.b32.xlu1 %v6077_v45, %s5499_s23 }
 0x72e   : > { %1969 = vrot.lane.b32.xlu0 %v6069_v31, %s5499_s23 }
 0x732   : > { %1951 = vrot.lane.b32.xlu0 %v6077_v45, %s5500_s24 }
 0x736   : > { %1955 = vrot.lane.b32.xlu0 %v6073_v36, %s5500_s24 }
 0x73a   : > { %1959 = vrot.lane.b32.xlu0 %v6065_v0, %s5500_s24 }
 0x73e   : > { %1963 = vrot.lane.b32.xlu0 %v6053_v3, %s5500_s24 }
 0x742   : > { %2246 = vrot.lane.b32.xlu0 %v6049_v27, %s5501_s25 }
 0x746   : > { %2242 = vrot.lane.b32.xlu0 %v6057_v48, %s5501_s25 }
 0x747   : > { %1681 = vmax.xlane.f32.xlu1 %v1680_v8 }
 0x74a   : > { %2240 = vrot.lane.b32.xlu0 %v6065_v0, %s5501_s25 }
 0x74e   : > { %2236 = vrot.lane.b32.xlu0 %v6073_v36, %s5501_s25 }
 0x752   : > { %2232 = vrot.lane.b32.xlu0 %v6077_v45, %s5501_s25 }
 0x756   : > { %2435 = vrot.lane.b32.xlu0 %v6057_v48, %s5502_s26 }
 0x758   : > { %1953 = vrot.lane.b32.xlu1 %v6069_v31, %s5500_s24 }
 0x75c   : > { %1957 = vrot.lane.b32.xlu1 %v6061_v32, %s5500_s24 }
 0x760   : > { %1961 = vrot.lane.b32.xlu1 %v6057_v48, %s5500_s24 }
 0x762   : > { %v6168_v12 = vpop.xlane.xlu1 %1666 }
 0x763   : > { %7598 = vst [vmem:[#allocation57_spill] sm:$0xff] %v6168_v12  ;;  %v1711_v10 = vsub.f32 %v4780_v42, %v6168_v12 }
 0x764   : > { %v6171_v53 = vpop.xlane.xlu0 %1663  ;;  %1965 = vrot.lane.b32.xlu1 %v6049_v27, %s5500_s24 }
 0x765   : > { %7599 = vst [vmem:[#allocation58_spill] sm:$0xff] %v6171_v53  ;;  %v1710_v60 = vsub.f32 %v1623_v19, %v6171_v53  ;;  %v1720_v8 = vmul.f32 1.442695, %v1711_v10 }
 0x767   : > { %v1718_v58 = vmul.f32 1.442695, %v1710_v60 }
 0x768   : > { %v1974_v10 = vpop.permute.xlu0 %1973  ;;  %2244 = vrot.lane.b32.xlu1 %v6053_v3, %s5501_s25 }
 0x769   : > { %5128 = vpow2.f32 %v1718_v58  ;;  %v1972_v58 = vpop.permute.xlu1 %1971 }
 0x76a   : > { %5130 = vpow2.f32 %v1720_v8 }
 0x76c   : > { %2238 = vrot.lane.b32.xlu1 %v6061_v32, %s5501_s25 }
 0x770   : > { %2234 = vrot.lane.b32.xlu1 %v6069_v31, %s5501_s25 }
 0x774   : > { %2439 = vrot.lane.b32.xlu1 %v6049_v27, %s5502_s26 }
 0x776   : > { %v6175_v21 = vpop.eup %5128 }
 0x777   : > { %v6177_v55 = vpop.eup %5130  ;;  %4806 = vmatprep.mubr.msk.f32.mxu0 %vm287_vm1, %v6175_v21 }
 0x778   : > { %4807 = vmatmul.mubr.msk.f32.vlgmr.msra.gmra.mxu0 %vm287_vm1, %v6177_v55  ;;  %2437 = vrot.lane.b32.xlu1 %v6053_v3, %s5502_s26 }
 0x779   : > { %4819 = vmatpush3.xpose.msk.msra.mxu0 %vm149_vm0, %v6110_v46 }
 0x77a   : > { %4820 = vmatprep.subr.msk.mxu0 %vm149_vm0, %v1980_v52 }
 0x77c   : > { %2433 = vrot.lane.b32.xlu1 %v6065_v0, %s5502_s26 }
 0x77d   : > { %4821 = vmatpush3.xpose.msk.msra.mxu0 %vm149_vm0, %v1980_v52 }
 0x77e   : > { %4822 = vmatprep.subr.msk.mxu0 %vm149_vm0, %v1978_v59 }
 0x781   : > { %4823 = vmatpush3.xpose.msk.msra.mxu0 %vm149_vm0, %v1978_v59 }
 0x782   : > { %4824 = vmatprep.subr.msk.mxu0 %vm149_vm0, %v1976_v6 }
 0x785   : > { %4825 = vmatpush3.xpose.msk.msra.mxu0 %vm149_vm0, %v1976_v6 }
 0x786   : > { %4826 = vmatprep.subr.msk.mxu0 %vm149_vm0, %v1974_v10 }
 0x789   : > { %4827 = vmatpush3.xpose.msk.msra.mxu0 %vm149_vm0, %v1974_v10 }
 0x78a   : > { %4828 = vmatprep.subr.msk.mxu0 %vm149_vm0, %v1972_v58 }
 0x78d   : > { %4829 = vmatpush3.xpose.msk.msra.mxu0 %vm149_vm0, %v1972_v58 }
 0x797   : > { %v6195_v19 = vpop.xlane.xlu1 %1669 }
 0x798   : > { %7600 = vst [vmem:[#allocation59_spill] sm:$0xff] %v6195_v19  ;;  %v1712_v60 = vsub.f32 %v1633_v43, %v6195_v19 }
 0x799   : > { %v6198_v46 = vpop.xlane.xlu0 %1672 }
 0x79a   : > { %7601 = vst [vmem:[#allocation60_spill] sm:$0xff] %v6198_v46  ;;  %v1722_v42 = vmul.f32 1.442695, %v1712_v60  ;;  %v1713_v52 = vsub.f32 %v6136_v1, %v6198_v46 }
 0x79b   : > { %v6202_v6 = vpop.xlane.xlu1 %1675 }
 0x79c   : > { %7602 = vst [vmem:[#allocation61_spill] sm:$0xff] %v6202_v6  ;;  %v1724_v59 = vmul.f32 1.442695, %v1713_v52  ;;  %5132 = vpow2.f32 %v1722_v42  ;;  %v1714_v8 = vsub.f32 %v6141_v62, %v6202_v6 }
 0x79d   : > { %v6206_v10 = vpop.xlane.xlu0 %1678 }
 0x79e   : > { %7603 = vst [vmem:[#allocation62_spill] sm:$0xff] %v6206_v10  ;;  %v1715_v58 = vsub.f32 %v6138_v18, %v6206_v10  ;;  %5134 = vpow2.f32 %v1724_v59  ;;  %v1726_v43 = vmul.f32 1.442695, %v1714_v8 }
 0x79f   : > { %v1968_v52 = vpop.permute.xlu1 %1967 }
 0x7a0   : > { %v1728_v12 = vmul.f32 1.442695, %v1715_v58  ;;  %5136 = vpow2.f32 %v1726_v43 }
 0x7a1   : > { %v6210_v60 = vpop.xlane.xlu0 %1684 }
 0x7a2   : > { %7604 = vst [vmem:[#allocation63_spill] sm:$0xff] %v6210_v60  ;;  %5138 = vpow2.f32 %v1728_v12  ;;  %v1717_v59 = vsub.f32 %v6147_v56, %v6210_v60 }
 0x7a4   : > { %v1732_v43 = vmul.f32 1.442695, %v1717_v59 }
 0x7a5   : > { %v1970_v1 = vpop.permute.xlu0 %1969 }
 0x7a6   : > { %4830 = vmatprep.subr.msk.mxu0 %vm149_vm0, %v1970_v1 }
 0x7a7   : > { %4831 = vmatpush3.xpose.msk.msra.mxu0 %vm149_vm0, %v1970_v1 }
 0x7a8   : > { %4832 = vmatprep.subr.msk.mxu0 %vm149_vm0, %v1968_v52 }
 0x7a9   : > { %v6215_v62 = vpop.eup %5132 }
 0x7aa   : > { %4809 = vmatprep.mubr.msk.f32.mxu0 %vm287_vm1, %v6215_v62 }
 0x7ab   : > { %4833 = vmatpush3.xpose.msk.msra.mxu0 %vm149_vm0, %v1968_v52  ;;  %v6220_v18 = vpop.eup %5134  ;;  %v1952_v52 = vpop.permute.xlu0 %1951 }
 0x7ac   : > { %4810 = vmatmul.mubr.msk.f32.gmra.mxu0 %vm287_vm1, %v6220_v18 }
 0x7ad   : > { %v6224_v12 = vpop.eup %5136 }
 0x7ae   : > { %4812 = vmatprep.mubr.msk.f32.mxu0 %vm287_vm1, %v6224_v12 }
 0x7af   : > { %v6228_v42 = vpop.eup %5138  ;;  %v1956_v56 = vpop.permute.xlu0 %1955 }
 0x7b0   : > { %4813 = vmatmul.mubr.msk.f32.gmra.mxu0 %vm287_vm1, %v6228_v42 }
 0x7b3   : > { %v1960_v59 = vpop.permute.xlu0 %1959 }
 0x7d0   : > { %v6242_v8 = vpop.xlane.xlu1 %1681 }
 0x7d1   : > { %7605 = vst [vmem:[#allocation64_spill] sm:$0xff] %v6242_v8  ;;  %v1716_v58 = vsub.f32 %v6161_v61, %v6242_v8 }
 0x7d3   : > { %v1730_v1 = vmul.f32 1.442695, %v1716_v58 }
 0x7d4   : > { %v1954_v6 = vpop.permute.xlu1 %1953 }
 0x7d5   : > { %5140 = vpow2.f32 %v1730_v1 }
 0x7d6   : > { %5142 = vpow2.f32 %v1732_v43  ;;  %v1964_v43 = vpop.permute.xlu0 %1963 }
 0x7d8   : > { %v1958_v61 = vpop.permute.xlu1 %1957 }
 0x7dc   : > { %v1962_v58 = vpop.permute.xlu1 %1961 }
 0x7e0   : > { %v1966_v1 = vpop.permute.xlu1 %1965 }
 0x7e2   : > { %v6246_v10 = vpop.eup %5140 }
 0x7e3   : > { %v6248_v46 = vpop.eup %5142  ;;  %4815 = vmatprep.mubr.msk.f32.mxu0 %vm287_vm1, %v6246_v10 }
 0x7e4   : > { %4816 = vmatmul.mubr.msk.f32.gmra.mxu0 %vm287_vm1, %v6248_v46 }
 0x7e5   : > { %4834 = vmatprep.mubr.msk.f32.mxu0 %vm149_vm0, %v1952_v52 }
 0x7e8   : > { %4835 = vmatmul.mubr.msk.f32.vlgmr.msra.gmra.mxu0 %vm149_vm0, %v1954_v6  ;;  %v2247_v6 = vpop.permute.xlu0 %2246 }
 0x7e9   : > { %4837 = vmatprep.mubr.msk.f32.mxu0 %vm149_vm0, %v1956_v56  ;;  %4846 = vmatprep.subr.mxu1 %v2247_v6  ;;  %v2245_v56 = vpop.permute.xlu1 %2244 }
 0x7ea   : > { %4847 = vmatpush3.msra.mxu1 %v2247_v6 }
 0x7eb   : > { %4848 = vmatprep.subr.mxu1 %v2245_v56 }
 0x7ec   : > { %4838 = vmatmul.mubr.msk.f32.gmra.mxu0 %vm149_vm0, %v1958_v61  ;;  %v2243_v52 = vpop.permute.xlu0 %2242  ;;  %4849 = vmatpush3.msra.mxu1 %v2245_v56 }
 0x7ed   : > { %4840 = vmatprep.mubr.msk.f32.mxu0 %vm149_vm0, %v1960_v59  ;;  %4850 = vmatprep.subr.mxu1 %v2243_v52  ;;  %v2239_v59 = vpop.permute.xlu1 %2238 }
 0x7ee   : > { %4851 = vmatpush3.msra.mxu1 %v2243_v52 }
 0x7f0   : > { %4841 = vmatmul.mubr.msk.f32.gmra.mxu0 %vm149_vm0, %v1962_v58  ;;  %v2241_v61 = vpop.permute.xlu0 %2240 }
 0x7f1   : > { %4843 = vmatprep.mubr.msk.f32.mxu0 %vm149_vm0, %v1964_v43  ;;  %4852 = vmatprep.subr.mxu1 %v2241_v61  ;;  %v2235_v43 = vpop.permute.xlu1 %2234 }
 0x7f2   : > { %4853 = vmatpush3.msra.mxu1 %v2241_v61 }
 0x7f3   : > { %4854 = vmatprep.subr.mxu1 %v2239_v59 }
 0x7f4   : > { %4844 = vmatmul.mubr.msk.f32.gmra.mxu0 %vm149_vm0, %v1966_v1  ;;  %v2237_v58 = vpop.permute.xlu0 %2236  ;;  %4855 = vmatpush3.msra.mxu1 %v2239_v59 }
 0x7f5   : > { %4856 = vmatprep.subr.mxu1 %v2237_v58  ;;  %v6270_v6 = vpop.permute.xlu1 %2439 }
 0x7f6   : > { %4857 = vmatpush3.msra.mxu1 %v2237_v58 }
 0x7f7   : > { %4858 = vmatprep.subr.mxu1 %v2235_v43 }
 0x7f8   : > { %v2233_v1 = vpop.permute.xlu0 %2232  ;;  %4859 = vmatpush3.msra.mxu1 %v2235_v43 }
 0x7f9   : > { %4860 = vmatprep.subr.mxu1 %v2233_v1 }
 0x7fa   : > { %4861 = vmatpush3.msra.mxu1 %v2233_v1 }
 0x7fb   : > { %4874 = vmatprep.subr.msk.mxu1 %vm149_vm0, %v6270_v6 }
 0x838   : > { %v6274_v52 = vpop.f32.mrf.mxu0 }
 0x839   : > { %7606 = vst [vmem:[#allocation65_spill] sm:$0xff] %v6274_v52 }
 0x83a   : > { %v6276_v56 = vpop.f32.mrf.mxu0 }
 0x83b   : > { %7607 = vst [vmem:[#allocation66_spill] sm:$0xff] %v6276_v56 }
 0x86c   : > { %v6278_v61 = vpop.f32.mrf.mxu0 }
 0x86d   : > { %7608 = vst [vmem:[#allocation67_spill] sm:$0xff] %v6278_v61 }
 0x86e   : > { %v6280_v59 = vpop.f32.mrf.mxu0 }
 0x86f   : > { %7609 = vst [vmem:[#allocation68_spill] sm:$0xff] %v6280_v59 }
 0x870   : > { %v6282_v60 = vpop.f32.mrf.mxu0 }
 0x871   : > { %7610 = vst [vmem:[#allocation69_spill] sm:$0xff] %v6282_v60 }
 0x872   : > { %v6284_v58 = vpop.f32.mrf.mxu0 }
 0x873   : > { %7611 = vst [vmem:[#allocation70_spill] sm:$0xff] %v6284_v58 }
 0x8a4   : > { %v6286_v43 = vpop.f32.mrf.mxu0 }
 0x8a5   : > { %7612 = vst [vmem:[#allocation71_spill] sm:$0xff] %v6286_v43 }
 0x8a6   : > { %v6288_v8 = vpop.f32.mrf.mxu0 }
 0x8a7   : > { %7613 = vst [vmem:[#allocation72_spill] sm:$0xff] %v6288_v8 }
 0x8a8   : > { %v4836_v1 = vpop.f32.mrf.mxu0 }
 0x8a9   : > { %v2123_v19 = vsel %vm287_vm1, %v4836_v1, -inf }
 0x8aa   : > { %2124 = vmax.xlane.f32.xlu1 %v2123_v19  ;;  %v2081_v53 = vpop.f32.mrf.mxu0 }
 0x8ab   : > { %v2120_v52 = vsel %vm287_vm1, %v2081_v53, -inf }
 0x8ac   : > { %2121 = vmax.xlane.f32.xlu0 %v2120_v52  ;;  %v6296_v60 = vpop.f32.mrf.mxu0 }
 0x8ad   : > { %v2129_v19 = vsel %vm287_vm1, %v6296_v60, -inf }
 0x8ae   : > { %v2091_v61 = vpop.f32.mrf.mxu0 }
 0x8af   : > { %v2126_v8 = vsel %vm287_vm1, %v2091_v61, -inf }
 0x8b0   : > { %v6298_v43 = vpop.f32.mrf.mxu0 }
 0x8b1   : > { %v2135_v56 = vsel %vm287_vm1, %v6298_v43, -inf }
 0x8b2   : > { %v6301_v58 = vpop.f32.mrf.mxu0 }
 0x8b3   : > { %v2132_v52 = vsel %vm287_vm1, %v6301_v58, -inf }
 0x8b4   : > { %v6307_v59 = vpop.f32.mrf.mxu0 }
 0x8b5   : > { %v2141_v17 = vsel %vm287_vm1, %v6307_v59, -inf }
 0x8bb   : > { %2429 = vrot.lane.b32.xlu1 %v6073_v36, %s5502_s26 }
 0x8c2   : > { %2431 = vrot.lane.b32.xlu0 %v6061_v32, %s5502_s26 }
 0x8df   : > { %2127 = vmax.xlane.f32.xlu1 %v2126_v8  ;;  %v6321_v8 = vpop.f32.mrf.mxu0 }
 0x8e1   : > { %2130 = vmax.xlane.f32.xlu0 %v2129_v19 }
 0x8e3   : > { %2133 = vmax.xlane.f32.xlu1 %v2132_v52  ;;  %v2436_v52 = vpop.permute.xlu0 %2435 }
 0x8e5   : > { %2136 = vmax.xlane.f32.xlu0 %v2135_v56  ;;  %v2438_v56 = vpop.permute.xlu1 %2437 }
 0x8e9   : > { %2142 = vmax.xlane.f32.xlu0 %v2141_v17  ;;  %v2138_v17 = vsel %vm287_vm1, %v6321_v8, -inf  ;;  %v2434_v19 = vpop.permute.xlu1 %2433 }
 0x8f4   : > { %2425 = vrot.lane.b32.xlu1 %v6077_v45, %s5502_s26 }
 0x8ff   : > { %2427 = vrot.lane.b32.xlu0 %v6069_v31, %s5502_s26 }
 0x903   : > { %2409 = vrot.lane.b32.xlu0 %v6077_v45, %s5503_s27 }
 0x907   : > { %2413 = vrot.lane.b32.xlu0 %v6073_v36, %s5503_s27 }
 0x90b   : > { %2417 = vrot.lane.b32.xlu0 %v6065_v0, %s5503_s27 }
 0x90f   : > { %2421 = vrot.lane.b32.xlu0 %v6053_v3, %s5503_s27 }
 0x913   : > { %2704 = vrot.lane.b32.xlu0 %v6049_v27, %s5504_s28 }
 0x917   : > { %2700 = vrot.lane.b32.xlu0 %v6057_v48, %s5504_s28 }
 0x918   : > { %2139 = vmax.xlane.f32.xlu1 %v2138_v17 }
 0x91b   : > { %2698 = vrot.lane.b32.xlu0 %v6065_v0, %s5504_s28 }
 0x91f   : > { %2694 = vrot.lane.b32.xlu0 %v6073_v36, %s5504_s28 }
 0x923   : > { %2690 = vrot.lane.b32.xlu0 %v6077_v45, %s5504_s28 }
 0x927   : > { %2893 = vrot.lane.b32.xlu0 %v6057_v48, %s5505_s29 }
 0x929   : > { %2411 = vrot.lane.b32.xlu1 %v6069_v31, %s5503_s27 }
 0x92d   : > { %2415 = vrot.lane.b32.xlu1 %v6061_v32, %s5503_s27 }
 0x931   : > { %2419 = vrot.lane.b32.xlu1 %v6057_v48, %s5503_s27 }
 0x933   : > { %v6328_v24 = vpop.xlane.xlu1 %2124 }
 0x934   : > { %7614 = vst [vmem:[#allocation73_spill] sm:$0xff] %v6328_v24  ;;  %v2169_v16 = vsub.f32 %v4836_v1, %v6328_v24 }
 0x935   : > { %v6331_v23 = vpop.xlane.xlu0 %2121  ;;  %2423 = vrot.lane.b32.xlu1 %v6049_v27, %s5503_s27 }
 0x936   : > { %7615 = vst [vmem:[#allocation74_spill] sm:$0xff] %v6331_v23  ;;  %v2168_v14 = vsub.f32 %v2081_v53, %v6331_v23  ;;  %v2178_v17 = vmul.f32 1.442695, %v2169_v16 }
 0x937   : > { %v2430_v16 = vpop.permute.xlu1 %2429 }
 0x938   : > { %v2176_v41 = vmul.f32 1.442695, %v2168_v14 }
 0x939   : > { %v2432_v14 = vpop.permute.xlu0 %2431  ;;  %2702 = vrot.lane.b32.xlu1 %v6053_v3, %s5504_s28 }
 0x93a   : > { %5144 = vpow2.f32 %v2176_v41 }
 0x93b   : > { %5146 = vpow2.f32 %v2178_v17 }
 0x93d   : > { %2696 = vrot.lane.b32.xlu1 %v6061_v32, %s5504_s28 }
 0x941   : > { %2692 = vrot.lane.b32.xlu1 %v6069_v31, %s5504_s28 }
 0x945   : > { %2897 = vrot.lane.b32.xlu1 %v6049_v27, %s5505_s29 }
 0x947   : > { %v6335_v15 = vpop.eup %5144 }
 0x948   : > { %v6337_v51 = vpop.eup %5146  ;;  %4862 = vmatprep.mubr.msk.f32.mxu1 %vm287_vm1, %v6335_v15 }
 0x949   : > { %4863 = vmatmul.mubr.msk.f32.vlgmr.msra.gmra.mxu1 %vm287_vm1, %v6337_v51  ;;  %2895 = vrot.lane.b32.xlu1 %v6053_v3, %s5505_s29 }
 0x94a   : > { %4875 = vmatpush3.xpose.msk.msra.mxu1 %vm149_vm0, %v6270_v6 }
 0x94b   : > { %4876 = vmatprep.subr.msk.mxu1 %vm149_vm0, %v2438_v56 }
 0x94d   : > { %2891 = vrot.lane.b32.xlu1 %v6065_v0, %s5505_s29 }
 0x94e   : > { %4877 = vmatpush3.xpose.msk.msra.mxu1 %vm149_vm0, %v2438_v56 }
 0x94f   : > { %4878 = vmatprep.subr.msk.mxu1 %vm149_vm0, %v2436_v52 }
 0x952   : > { %4879 = vmatpush3.xpose.msk.msra.mxu1 %vm149_vm0, %v2436_v52 }
 0x953   : > { %4880 = vmatprep.subr.msk.mxu1 %vm149_vm0, %v2434_v19 }
 0x956   : > { %4881 = vmatpush3.xpose.msk.msra.mxu1 %vm149_vm0, %v2434_v19 }
 0x957   : > { %4882 = vmatprep.subr.msk.mxu1 %vm149_vm0, %v2432_v14 }
 0x95a   : > { %4883 = vmatpush3.xpose.msk.msra.mxu1 %vm149_vm0, %v2432_v14 }
 0x95b   : > { %4884 = vmatprep.subr.msk.mxu1 %vm149_vm0, %v2430_v16 }
 0x95e   : > { %4885 = vmatpush3.xpose.msk.msra.mxu1 %vm149_vm0, %v2430_v16 }
 0x968   : > { %v6355_v53 = vpop.xlane.xlu1 %2127 }
 0x969   : > { %7616 = vst [vmem:[#allocation75_spill] sm:$0xff] %v6355_v53  ;;  %v2170_v41 = vsub.f32 %v2091_v61, %v6355_v53 }
 0x96a   : > { %v6358_v6 = vpop.xlane.xlu0 %2130 }
 0x96b   : > { %7617 = vst [vmem:[#allocation76_spill] sm:$0xff] %v6358_v6  ;;  %v2180_v1 = vmul.f32 1.442695, %v2170_v41  ;;  %v2171_v56 = vsub.f32 %v6296_v60, %v6358_v6 }
 0x96c   : > { %v6362_v19 = vpop.xlane.xlu1 %2133 }
 0x96d   : > { %7618 = vst [vmem:[#allocation77_spill] sm:$0xff] %v6362_v19  ;;  %v2182_v52 = vmul.f32 1.442695, %v2171_v56  ;;  %5148 = vpow2.f32 %v2180_v1  ;;  %v2172_v17 = vsub.f32 %v6301_v58, %v6362_v19 }
 0x96e   : > { %v6366_v14 = vpop.xlane.xlu0 %2136 }
 0x96f   : > { %7619 = vst [vmem:[#allocation78_spill] sm:$0xff] %v6366_v14  ;;  %v2173_v16 = vsub.f32 %v6298_v43, %v6366_v14  ;;  %5150 = vpow2.f32 %v2182_v52  ;;  %v2184_v61 = vmul.f32 1.442695, %v2172_v17 }
 0x970   : > { %v2426_v56 = vpop.permute.xlu1 %2425 }
 0x971   : > { %v2186_v24 = vmul.f32 1.442695, %v2173_v16  ;;  %5152 = vpow2.f32 %v2184_v61 }
 0x972   : > { %v6370_v41 = vpop.xlane.xlu0 %2142 }
 0x973   : > { %7620 = vst [vmem:[#allocation79_spill] sm:$0xff] %v6370_v41  ;;  %5154 = vpow2.f32 %v2186_v24  ;;  %v2175_v52 = vsub.f32 %v6307_v59, %v6370_v41 }
 0x975   : > { %v2190_v61 = vmul.f32 1.442695, %v2175_v52 }
 0x976   : > { %v2428_v60 = vpop.permute.xlu0 %2427 }
 0x977   : > { %4886 = vmatprep.subr.msk.mxu1 %vm149_vm0, %v2428_v60 }
 0x978   : > { %4887 = vmatpush3.xpose.msk.msra.mxu1 %vm149_vm0, %v2428_v60 }
 0x979   : > { %4888 = vmatprep.subr.msk.mxu1 %vm149_vm0, %v2426_v56 }
 0x97a   : > { %v6375_v58 = vpop.eup %5148 }
 0x97b   : > { %4865 = vmatprep.mubr.msk.f32.mxu1 %vm287_vm1, %v6375_v58 }
 0x97c   : > { %4889 = vmatpush3.xpose.msk.msra.mxu1 %vm149_vm0, %v2426_v56  ;;  %v6380_v43 = vpop.eup %5150  ;;  %v2410_v56 = vpop.permute.xlu0 %2409 }
 0x97d   : > { %4866 = vmatmul.mubr.msk.f32.gmra.mxu1 %vm287_vm1, %v6380_v43 }
 0x97e   : > { %v6384_v24 = vpop.eup %5152 }
 0x97f   : > { %4868 = vmatprep.mubr.msk.f32.mxu1 %vm287_vm1, %v6384_v24 }
 0x980   : > { %v6388_v1 = vpop.eup %5154  ;;  %v2414_v59 = vpop.permute.xlu0 %2413 }
 0x981   : > { %4869 = vmatmul.mubr.msk.f32.gmra.mxu1 %vm287_vm1, %v6388_v1 }
 0x984   : > { %v2418_v52 = vpop.permute.xlu0 %2417 }
 0x9a1   : > { %v6402_v17 = vpop.xlane.xlu1 %2139 }
 0x9a2   : > { %7621 = vst [vmem:[#allocation80_spill] sm:$0xff] %v6402_v17  ;;  %v2174_v16 = vsub.f32 %v6321_v8, %v6402_v17 }
 0x9a4   : > { %v2188_v60 = vmul.f32 1.442695, %v2174_v16 }
 0x9a5   : > { %v2412_v23 = vpop.permute.xlu1 %2411 }
 0x9a6   : > { %5156 = vpow2.f32 %v2188_v60 }
 0x9a7   : > { %5158 = vpow2.f32 %v2190_v61  ;;  %v2422_v61 = vpop.permute.xlu0 %2421 }
 0x9a9   : > { %v2416_v8 = vpop.permute.xlu1 %2415 }
 0x9ad   : > { %v2420_v16 = vpop.permute.xlu1 %2419 }
 0x9b1   : > { %v2424_v60 = vpop.permute.xlu1 %2423 }
 0x9b3   : > { %v6406_v14 = vpop.eup %5156 }
 0x9b4   : > { %v6408_v6 = vpop.eup %5158  ;;  %4871 = vmatprep.mubr.msk.f32.mxu1 %vm287_vm1, %v6406_v14 }
 0x9b5   : > { %4872 = vmatmul.mubr.msk.f32.gmra.mxu1 %vm287_vm1, %v6408_v6 }
 0x9b6   : > { %4890 = vmatprep.mubr.msk.f32.mxu1 %vm149_vm0, %v2410_v56 }
 0x9b9   : > { %4891 = vmatmul.mubr.msk.f32.vlgmr.msra.gmra.mxu1 %vm149_vm0, %v2412_v23  ;;  %v2705_v23 = vpop.permute.xlu0 %2704 }
 0x9ba   : > { %4893 = vmatprep.mubr.msk.f32.mxu1 %vm149_vm0, %v2414_v59  ;;  %4902 = vmatprep.subr.mxu0 %v2705_v23  ;;  %v2703_v59 = vpop.permute.xlu1 %2702 }
 0x9bb   : > { %4903 = vmatpush3.msra.mxu0 %v2705_v23 }
 0x9bc   : > { %4904 = vmatprep.subr.mxu0 %v2703_v59 }
 0x9bd   : > { %4894 = vmatmul.mubr.msk.f32.gmra.mxu1 %vm149_vm0, %v2416_v8  ;;  %v2701_v56 = vpop.permute.xlu0 %2700  ;;  %4905 = vmatpush3.msra.mxu0 %v2703_v59 }
 0x9be   : > { %4896 = vmatprep.mubr.msk.f32.mxu1 %vm149_vm0, %v2418_v52  ;;  %4906 = vmatprep.subr.mxu0 %v2701_v56  ;;  %v2697_v52 = vpop.permute.xlu1 %2696 }
 0x9bf   : > { %4907 = vmatpush3.msra.mxu0 %v2701_v56 }
 0x9c1   : > { %4897 = vmatmul.mubr.msk.f32.gmra.mxu1 %vm149_vm0, %v2420_v16  ;;  %v2699_v8 = vpop.permute.xlu0 %2698 }
 0x9c2   : > { %4899 = vmatprep.mubr.msk.f32.mxu1 %vm149_vm0, %v2422_v61  ;;  %4908 = vmatprep.subr.mxu0 %v2699_v8  ;;  %v2693_v61 = vpop.permute.xlu1 %2692 }
 0x9c3   : > { %4909 = vmatpush3.msra.mxu0 %v2699_v8 }
 0x9c4   : > { %4910 = vmatprep.subr.mxu0 %v2697_v52 }
 0x9c5   : > { %4900 = vmatmul.mubr.msk.f32.gmra.mxu1 %vm149_vm0, %v2424_v60  ;;  %v2695_v16 = vpop.permute.xlu0 %2694  ;;  %4911 = vmatpush3.msra.mxu0 %v2697_v52 }
 0x9c6   : > { %4912 = vmatprep.subr.mxu0 %v2695_v16  ;;  %v6430_v23 = vpop.permute.xlu1 %2897 }
 0x9c7   : > { %4913 = vmatpush3.msra.mxu0 %v2695_v16 }
 0x9c8   : > { %4914 = vmatprep.subr.mxu0 %v2693_v61 }
 0x9c9   : > { %v2691_v60 = vpop.permute.xlu0 %2690  ;;  %4915 = vmatpush3.msra.mxu0 %v2693_v61 }
 0x9ca   : > { %4916 = vmatprep.subr.mxu0 %v2691_v60 }
 0x9cb   : > { %4917 = vmatpush3.msra.mxu0 %v2691_v60 }
 0x9cc   : > { %4930 = vmatprep.subr.msk.mxu0 %vm149_vm0, %v6430_v23 }
 0xa09   : > { %v6434_v56 = vpop.f32.mrf.mxu1 }
 0xa0a   : > { %7622 = vst [vmem:[#allocation81_spill] sm:$0xff] %v6434_v56 }
 0xa0b   : > { %v6436_v59 = vpop.f32.mrf.mxu1 }
 0xa0c   : > { %7623 = vst [vmem:[#allocation82_spill] sm:$0xff] %v6436_v59 }
 0xa3d   : > { %v6438_v8 = vpop.f32.mrf.mxu1 }
 0xa3e   : > { %7624 = vst [vmem:[#allocation83_spill] sm:$0xff] %v6438_v8 }
 0xa3f   : > { %v6440_v52 = vpop.f32.mrf.mxu1 }
 0xa40   : > { %7625 = vst [vmem:[#allocation84_spill] sm:$0xff] %v6440_v52 }
 0xa41   : > { %v6442_v41 = vpop.f32.mrf.mxu1 }
 0xa42   : > { %7626 = vst [vmem:[#allocation85_spill] sm:$0xff] %v6442_v41 }
 0xa43   : > { %v6444_v16 = vpop.f32.mrf.mxu1 }
 0xa44   : > { %7627 = vst [vmem:[#allocation86_spill] sm:$0xff] %v6444_v16 }
 0xa75   : > { %v6446_v61 = vpop.f32.mrf.mxu1 }
 0xa76   : > { %7628 = vst [vmem:[#allocation87_spill] sm:$0xff] %v6446_v61 }
 0xa77   : > { %v6448_v17 = vpop.f32.mrf.mxu1 }
 0xa78   : > { %7629 = vst [vmem:[#allocation88_spill] sm:$0xff] %v6448_v17 }
 0xa79   : > { %v4892_v60 = vpop.f32.mrf.mxu1 }
 0xa7a   : > { %v2581_v19 = vsel %vm287_vm1, %v4892_v60, -inf }
 0xa7b   : > { %2582 = vmax.xlane.f32.xlu1 %v2581_v19  ;;  %v2539_v53 = vpop.f32.mrf.mxu1 }
 0xa7c   : > { %v2578_v56 = vsel %vm287_vm1, %v2539_v53, -inf }
 0xa7d   : > { %2579 = vmax.xlane.f32.xlu0 %v2578_v56  ;;  %v6456_v41 = vpop.f32.mrf.mxu1 }
 0xa7e   : > { %v2587_v19 = vsel %vm287_vm1, %v6456_v41, -inf }
 0xa7f   : > { %v2549_v8 = vpop.f32.mrf.mxu1 }
 0xa80   : > { %v2584_v59 = vsel %vm287_vm1, %v2549_v8, -inf }
 0xa81   : > { %v6458_v61 = vpop.f32.mrf.mxu1 }
 0xa82   : > { %v2593_v52 = vsel %vm287_vm1, %v6458_v61, -inf }
 0xa83   : > { %v6461_v17 = vpop.f32.mrf.mxu1 }
 0xa84   : > { %v2590_v56 = vsel %vm287_vm1, %v6461_v17, -inf }
 0xa85   : > { %v6467_v16 = vpop.f32.mrf.mxu1 }
 0xa86   : > { %v2599_v2 = vsel %vm287_vm1, %v6467_v16, -inf }
 0xa8c   : > { %2887 = vrot.lane.b32.xlu1 %v6073_v36, %s5505_s29 }
 0xa93   : > { %2889 = vrot.lane.b32.xlu0 %v6061_v32, %s5505_s29 }
 0xab0   : > { %2585 = vmax.xlane.f32.xlu1 %v2584_v59  ;;  %v6481_v59 = vpop.f32.mrf.mxu1 }
 0xab2   : > { %2588 = vmax.xlane.f32.xlu0 %v2587_v19 }
 0xab4   : > { %2591 = vmax.xlane.f32.xlu1 %v2590_v56  ;;  %v2894_v56 = vpop.permute.xlu0 %2893 }
 0xab6   : > { %2594 = vmax.xlane.f32.xlu0 %v2593_v52  ;;  %v2896_v52 = vpop.permute.xlu1 %2895 }
 0xaba   : > { %2600 = vmax.xlane.f32.xlu0 %v2599_v2  ;;  %v2596_v2 = vsel %vm287_vm1, %v6481_v59, -inf  ;;  %v2892_v19 = vpop.permute.xlu1 %2891 }
 0xac5   : > { %2883 = vrot.lane.b32.xlu1 %v6077_v45, %s5505_s29 }
 0xad0   : > { %2885 = vrot.lane.b32.xlu0 %v6069_v31, %s5505_s29 }
 0xad4   : > { %2867 = vrot.lane.b32.xlu0 %v6077_v45, %s5506_s30 }
 0xad8   : > { %2871 = vrot.lane.b32.xlu0 %v6073_v36, %s5506_s30 }
 0xadc   : > { %2875 = vrot.lane.b32.xlu0 %v6065_v0, %s5506_s30 }
 0xae0   : > { %2879 = vrot.lane.b32.xlu0 %v6053_v3, %s5506_s30 }
 0xae9   : > { %2597 = vmax.xlane.f32.xlu1 %v2596_v2 }
 0xafa   : > { %2869 = vrot.lane.b32.xlu1 %v6069_v31, %s5506_s30 }
 0xafe   : > { %2873 = vrot.lane.b32.xlu1 %v6061_v32, %s5506_s30 }
 0xb02   : > { %2877 = vrot.lane.b32.xlu1 %v6057_v48, %s5506_s30 }
 0xb04   : > { %v6488_v45 = vpop.xlane.xlu1 %2582 }
 0xb05   : > { %7630 = vst [vmem:[#allocation89_spill] sm:$0xff] %v6488_v45  ;;  %v2627_v0 = vsub.f32 %v4892_v60, %v6488_v45 }
 0xb06   : > { %v6491_v3 = vpop.xlane.xlu0 %2579  ;;  %2881 = vrot.lane.b32.xlu1 %v6049_v27, %s5506_s30 }
 0xb07   : > { %7631 = vst [vmem:[#allocation90_spill] sm:$0xff] %v6491_v3  ;;  %v2626_v36 = vsub.f32 %v2539_v53, %v6491_v3  ;;  %v2636_v2 = vmul.f32 1.442695, %v2627_v0 }
 0xb08   : > { %v2888_v27 = vpop.permute.xlu1 %2887 }
 0xb09   : > { %v2634_v13 = vmul.f32 1.442695, %v2626_v36 }
 0xb0b   : > { %5160 = vpow2.f32 %v2634_v13  ;;  %v2890_v13 = vpop.permute.xlu0 %2889 }
 0xb0c   : > { %5162 = vpow2.f32 %v2636_v2 }
 0xb18   : > { %v6495_v31 = vpop.eup %5160 }
 0xb19   : > { %v6497_v32 = vpop.eup %5162  ;;  %4918 = vmatprep.mubr.msk.f32.mxu0 %vm287_vm1, %v6495_v31 }
 0xb1a   : > { %4919 = vmatmul.mubr.msk.f32.vlgmr.msra.gmra.mxu0 %vm287_vm1, %v6497_v32 }
 0xb1b   : > { %4931 = vmatpush3.xpose.msk.msra.mxu0 %vm149_vm0, %v6430_v23 }
 0xb1c   : > { %4932 = vmatprep.subr.msk.mxu0 %vm149_vm0, %v2896_v52 }
 0xb1f   : > { %4933 = vmatpush3.xpose.msk.msra.mxu0 %vm149_vm0, %v2896_v52 }
 0xb20   : > { %4934 = vmatprep.subr.msk.mxu0 %vm149_vm0, %v2894_v56 }
 0xb23   : > { %4935 = vmatpush3.xpose.msk.msra.mxu0 %vm149_vm0, %v2894_v56 }
 0xb24   : > { %4936 = vmatprep.subr.msk.mxu0 %vm149_vm0, %v2892_v19 }
 0xb27   : > { %4937 = vmatpush3.xpose.msk.msra.mxu0 %vm149_vm0, %v2892_v19 }
 0xb28   : > { %4938 = vmatprep.subr.msk.mxu0 %vm149_vm0, %v2890_v13 }
 0xb2b   : > { %4939 = vmatpush3.xpose.msk.msra.mxu0 %vm149_vm0, %v2890_v13 }
 0xb2c   : > { %4940 = vmatprep.subr.msk.mxu0 %vm149_vm0, %v2888_v27 }
 0xb2f   : > { %4941 = vmatpush3.xpose.msk.msra.mxu0 %vm149_vm0, %v2888_v27 }
 0xb39   : > { %v6515_v48 = vpop.xlane.xlu1 %2585 }
 0xb3a   : > { %7632 = vst [vmem:[#allocation91_spill] sm:$0xff] %v6515_v48  ;;  %v2628_v53 = vsub.f32 %v2549_v8, %v6515_v48 }
 0xb3b   : > { %v6518_v23 = vpop.xlane.xlu0 %2588 }
 0xb3c   : > { %7633 = vst [vmem:[#allocation92_spill] sm:$0xff] %v6518_v23  ;;  %v2638_v60 = vmul.f32 1.442695, %v2628_v53  ;;  %v2629_v52 = vsub.f32 %v6456_v41, %v6518_v23 }
 0xb3d   : > { %v6522_v19 = vpop.xlane.xlu1 %2591 }
 0xb3e   : > { %7634 = vst [vmem:[#allocation93_spill] sm:$0xff] %v6522_v19  ;;  %v2640_v56 = vmul.f32 1.442695, %v2629_v52  ;;  %5164 = vpow2.f32 %v2638_v60  ;;  %v2630_v0 = vsub.f32 %v6461_v17, %v6522_v19 }
 0xb3f   : > { %v6526_v36 = vpop.xlane.xlu0 %2594 }
 0xb40   : > { %7635 = vst [vmem:[#allocation94_spill] sm:$0xff] %v6526_v36  ;;  %v2631_v2 = vsub.f32 %v6458_v61, %v6526_v36  ;;  %5166 = vpow2.f32 %v2640_v56  ;;  %v2642_v8 = vmul.f32 1.442695, %v2630_v0  ;;  %v6553_v56 = vld [vmem:[%s5544_s11 + $0x38] sm:$0xff]  ;;  %v6557_v0 = vld [vmem:[%s5544_s11 + $0x30] sm:$0xff]  ;;  %v6581_v36 = vld [vmem:[%s5544_s11] sm:$0xff] }
 0xb41   : > { %v2884_v53 = vpop.permute.xlu1 %2883  ;;  %3162 = vrot.lane.b32.xlu0 %v6553_v56, %s5507_s2  ;;  %3160 = vrot.lane.b32.xlu1 %v6557_v0, %s5507_s2 }
 0xb42   : > { %v2644_v13 = vmul.f32 1.442695, %v2631_v2  ;;  %5168 = vpow2.f32 %v2642_v8  ;;  %v6561_v2 = vld [vmem:[%s5544_s11 + $0x28] sm:$0xff]  ;;  %v6565_v8 = vld [vmem:[%s5544_s11 + $0x18] sm:$0xff] }
 0xb43   : > { %v6530_v27 = vpop.xlane.xlu0 %2600 }
 0xb44   : > { %7636 = vst [vmem:[#allocation95_spill] sm:$0xff] %v6530_v27  ;;  %5170 = vpow2.f32 %v2644_v13  ;;  %v6569_v13 = vld [vmem:[%s5544_s11 + $0x20] sm:$0xff]  ;;  %v2633_v23 = vsub.f32 %v6467_v16, %v6530_v27 }
 0xb45   : > { %3158 = vrot.lane.b32.xlu0 %v6561_v2, %s5507_s2  ;;  %3154 = vrot.lane.b32.xlu1 %v6565_v8, %s5507_s2 }
 0xb46   : > { %v2648_v48 = vmul.f32 1.442695, %v2633_v23 }
 0xb47   : > { %v2886_v41 = vpop.permute.xlu0 %2885 }
 0xb48   : > { %4942 = vmatprep.subr.msk.mxu0 %vm149_vm0, %v2886_v41 }
 0xb49   : > { %4943 = vmatpush3.xpose.msk.msra.mxu0 %vm149_vm0, %v2886_v41  ;;  %3156 = vrot.lane.b32.xlu0 %v6569_v13, %s5507_s2  ;;  %v6573_v41 = vld [vmem:[%s5544_s11 + $0x8] sm:$0xff] }
 0xb4a   : > { %4944 = vmatprep.subr.msk.mxu0 %vm149_vm0, %v2884_v53  ;;  %3150 = vrot.lane.b32.xlu1 %v6573_v41, %s5507_s2 }
 0xb4b   : > { %v6535_v17 = vpop.eup %5164  ;;  %v2868_v29 = vpop.permute.xlu0 %2867 }
 0xb4c   : > { %4921 = vmatprep.mubr.msk.f32.mxu0 %vm287_vm1, %v6535_v17 }
 0xb4d   : > { %4945 = vmatpush3.xpose.msk.msra.mxu0 %vm149_vm0, %v2884_v53  ;;  %v6540_v61 = vpop.eup %5166  ;;  %v6577_v53 = vld [vmem:[%s5544_s11 + $0x10] sm:$0xff]  ;;  %s5513_s11 = smov 12  }
 0xb4e   : > { %4922 = vmatmul.mubr.msk.f32.gmra.mxu0 %vm287_vm1, %v6540_v61  ;;  %3152 = vrot.lane.b32.xlu0 %v6577_v53, %s5507_s2 }
 0xb4f   : > { %v6544_v60 = vpop.eup %5168  ;;  %v2872_v16 = vpop.permute.xlu0 %2871  ;;  %3355 = vrot.lane.b32.xlu1 %v6553_v56, %s5508_s3 }
 0xb50   : > { %4924 = vmatprep.mubr.msk.f32.mxu0 %vm287_vm1, %v6544_v60 }
 0xb51   : > { %v6548_v52 = vpop.eup %5170 }
 0xb52   : > { %7637 = vst [vmem:[#allocation96_spill] sm:$0xff] %v6548_v52  ;;  %4925 = vmatmul.mubr.msk.f32.gmra.mxu0 %vm287_vm1, %v6548_v52  ;;  %3148 = vrot.lane.b32.xlu0 %v6581_v36, %s5507_s2 }
 0xb53   : > { %3353 = vrot.lane.b32.xlu1 %v6557_v0, %s5508_s3 }
 0xb56   : > { %3351 = vrot.lane.b32.xlu0 %v6561_v2, %s5508_s3 }
 0xb57   : > { %3349 = vrot.lane.b32.xlu1 %v6569_v13, %s5508_s3 }
 0xb72   : > { %v6586_v45 = vpop.xlane.xlu1 %2597 }
 0xb73   : > { %7638 = vst [vmem:[#allocation97_spill] sm:$0xff] %v6586_v45  ;;  %v2632_v19 = vsub.f32 %v6481_v59, %v6586_v45 }
 0xb75   : > { %v2646_v3 = vmul.f32 1.442695, %v2632_v19 }
 0xb76   : > { %v2870_v57 = vpop.permute.xlu1 %2869 }
 0xb77   : > { %5172 = vpow2.f32 %v2646_v3  ;;  %v2876_v3 = vpop.permute.xlu0 %2875 }
 0xb78   : > { %5174 = vpow2.f32 %v2648_v48 }
 0xb7a   : > { %v2874_v59 = vpop.permute.xlu1 %2873 }
 0xb7b   : > { %v2880_v23 = vpop.permute.xlu0 %2879 }
 0xb7e   : > { %v2878_v48 = vpop.permute.xlu1 %2877 }
 0xb82   : > { %v2882_v19 = vpop.permute.xlu1 %2881 }
 0xb84   : > { %v6590_v4 = vpop.eup %5172 }
 0xb85   : > { %v6592_v50 = vpop.eup %5174  ;;  %4927 = vmatprep.mubr.msk.f32.mxu0 %vm287_vm1, %v6590_v4 }
 0xb86   : > { %7639 = vst [vmem:[#allocation98_spill] sm:$0xff] %v6592_v50  ;;  %4928 = vmatmul.mubr.msk.f32.gmra.mxu0 %vm287_vm1, %v6592_v50 }
 0xb87   : > { %4946 = vmatprep.mubr.msk.f32.mxu0 %vm149_vm0, %v2868_v29 }
 0xb8a   : > { %4947 = vmatmul.mubr.msk.f32.vlgmr.msra.gmra.mxu0 %vm149_vm0, %v2870_v57 }
 0xb8b   : > { %4949 = vmatprep.mubr.msk.f32.mxu0 %vm149_vm0, %v2872_v16 }
 0xb8e   : > { %4950 = vmatmul.mubr.msk.f32.gmra.mxu0 %vm149_vm0, %v2874_v59 }
 0xb8f   : > { %4952 = vmatprep.mubr.msk.f32.mxu0 %vm149_vm0, %v2876_v3 }
 0xb92   : > { %4953 = vmatmul.mubr.msk.f32.gmra.mxu0 %vm149_vm0, %v2878_v48 }
 0xb93   : > { %4955 = vmatprep.mubr.msk.f32.mxu0 %vm149_vm0, %v2880_v23 }
 0xb96   : > { %4956 = vmatmul.mubr.msk.f32.gmra.mxu0 %vm149_vm0, %v2882_v19 }
 0xbb3   : > { %v3163_v57 = vpop.permute.xlu0 %3162  ;;  %v3161_v16 = vpop.permute.xlu1 %3160 }
 0xbb4   : > { %4958 = vmatprep.subr.mxu1 %v3163_v57 }
 0xbb5   : > { %4959 = vmatpush3.msra.mxu1 %v3163_v57 }
 0xbb6   : > { %4960 = vmatprep.subr.mxu1 %v3161_v16 }
 0xbb7   : > { %v3159_v29 = vpop.permute.xlu0 %3158  ;;  %4961 = vmatpush3.msra.mxu1 %v3161_v16  ;;  %v3155_v3 = vpop.permute.xlu1 %3154 }
 0xbb8   : > { %4962 = vmatprep.subr.mxu1 %v3159_v29 }
 0xbb9   : > { %4963 = vmatpush3.msra.mxu1 %v3159_v29 }
 0xbbb   : > { %v3157_v59 = vpop.permute.xlu0 %3156 }
 0xbbc   : > { %4964 = vmatprep.subr.mxu1 %v3157_v59  ;;  %v3151_v23 = vpop.permute.xlu1 %3150 }
 0xbbd   : > { %4965 = vmatpush3.msra.mxu1 %v3157_v59 }
 0xbbe   : > { %4966 = vmatprep.subr.mxu1 %v3155_v3 }
 0xbbf   : > { %4967 = vmatpush3.msra.mxu1 %v3155_v3 }
 0xbc0   : > { %v3153_v48 = vpop.permute.xlu0 %3152 }
 0xbc1   : > { %4968 = vmatprep.subr.mxu1 %v3153_v48  ;;  %v6614_v57 = vpop.permute.xlu1 %3355 }
 0xbc2   : > { %4969 = vmatpush3.msra.mxu1 %v3153_v48 }
 0xbc3   : > { %4970 = vmatprep.subr.mxu1 %v3151_v23 }
 0xbc4   : > { %v3149_v19 = vpop.permute.xlu0 %3148  ;;  %4971 = vmatpush3.msra.mxu1 %v3151_v23 }
 0xbc5   : > { %4972 = vmatprep.subr.mxu1 %v3149_v19 }
 0xbc6   : > { %4973 = vmatpush3.msra.mxu1 %v3149_v19 }
 0xbc7   : > { %4986 = vmatprep.subr.msk.mxu1 %vm149_vm0, %v6614_v57 }
 0xbda   : > { %v6618_v29 = vpop.f32.mrf.mxu0 }
 0xbdb   : > { %7640 = vst [vmem:[#allocation99_spill] sm:$0xff] %v6618_v29 }
 0xbdc   : > { %v6620_v16 = vpop.f32.mrf.mxu0 }
 0xbdd   : > { %7641 = vst [vmem:[#allocation100_spill] sm:$0xff] %v6620_v16 }
 0xc0e   : > { %v6622_v59 = vpop.f32.mrf.mxu0 }
 0xc0f   : > { %7642 = vst [vmem:[#allocation101_spill] sm:$0xff] %v6622_v59 }
 0xc10   : > { %v6624_v3 = vpop.f32.mrf.mxu0 }
 0xc11   : > { %7643 = vst [vmem:[#allocation102_spill] sm:$0xff] %v6624_v3 }
 0xc12   : > { %v6626_v27 = vpop.f32.mrf.mxu0 }
 0xc13   : > { %7644 = vst [vmem:[#allocation103_spill] sm:$0xff] %v6626_v27 }
 0xc14   : > { %v6628_v48 = vpop.f32.mrf.mxu0 }
 0xc15   : > { %7645 = vst [vmem:[#allocation104_spill] sm:$0xff] %v6628_v48 }
 0xc46   : > { %v6630_v23 = vpop.f32.mrf.mxu0 }
 0xc47   : > { %7646 = vst [vmem:[#allocation105_spill] sm:$0xff] %v6630_v23 }
 0xc48   : > { %v6632_v45 = vpop.f32.mrf.mxu0 }
 0xc49   : > { %7647 = vst [vmem:[#allocation106_spill] sm:$0xff] %v6632_v45 }
 0xc4a   : > { %v4948_v19 = vpop.f32.mrf.mxu0 }
 0xc4b   : > { %v3039_v20 = vsel %vm287_vm1, %v4948_v19, -inf }
 0xc4c   : > { %3040 = vmax.xlane.f32.xlu1 %v3039_v20  ;;  %v2997_v28 = vpop.f32.mrf.mxu0 }
 0xc4d   : > { %v3036_v29 = vsel %vm287_vm1, %v2997_v28, -inf }
 0xc4e   : > { %3037 = vmax.xlane.f32.xlu0 %v3036_v29  ;;  %v6640_v27 = vpop.f32.mrf.mxu0 }
 0xc4f   : > { %v3045_v29 = vsel %vm287_vm1, %v6640_v27, -inf }
 0xc50   : > { %v6642_v59 = vpop.f32.mrf.mxu0 }
 0xc51   : > { %v3042_v45 = vsel %vm287_vm1, %v6642_v59, -inf }
 0xc52   : > { %v6644_v23 = vpop.f32.mrf.mxu0 }
 0xc53   : > { %v3051_v16 = vsel %vm287_vm1, %v6644_v23, -inf }
 0xc54   : > { %v6648_v20 = vpop.f32.mrf.mxu0 }
 0xc55   : > { %v3048_v48 = vsel %vm287_vm1, %v6648_v20, -inf }
 0xc56   : > { %v6654_v3 = vpop.f32.mrf.mxu0 }
 0xc57   : > { %v3057_v11 = vsel %vm287_vm1, %v6654_v3, -inf }
 0xc5d   : > { %3345 = vrot.lane.b32.xlu1 %v6577_v53, %s5508_s3 }
 0xc64   : > { %3347 = vrot.lane.b32.xlu0 %v6565_v8, %s5508_s3 }
 0xc81   : > { %3043 = vmax.xlane.f32.xlu1 %v3042_v45 }
 0xc83   : > { %3046 = vmax.xlane.f32.xlu0 %v3045_v29  ;;  %v3352_v29 = vpop.permute.xlu0 %3351 }
 0xc85   : > { %3049 = vmax.xlane.f32.xlu1 %v3048_v48 }
 0xc87   : > { %3052 = vmax.xlane.f32.xlu0 %v3051_v16  ;;  %v3354_v16 = vpop.permute.xlu1 %3353 }
 0xc8b   : > { %3058 = vmax.xlane.f32.xlu0 %v3057_v11  ;;  %v6670_v11 = vpop.f32.mrf.mxu0  ;;  %v3350_v48 = vpop.permute.xlu1 %3349 }
 0xc8c   : > { %v3054_v45 = vsel %vm287_vm1, %v6670_v11, -inf }
 0xc96   : > { %3341 = vrot.lane.b32.xlu1 %v6581_v36, %s5508_s3 }
 0xca1   : > { %3343 = vrot.lane.b32.xlu0 %v6573_v41, %s5508_s3 }
 0xca5   : > { %3325 = vrot.lane.b32.xlu0 %v6581_v36, %s5509_s4 }
 0xca9   : > { %3329 = vrot.lane.b32.xlu0 %v6577_v53, %s5509_s4 }
 0xcad   : > { %3333 = vrot.lane.b32.xlu0 %v6569_v13, %s5509_s4 }
 0xcb1   : > { %3337 = vrot.lane.b32.xlu0 %v6557_v0, %s5509_s4 }
 0xcb5   : > { %3618 = vrot.lane.b32.xlu0 %v6557_v0, %s5510_s5 }
 0xcb9   : > { %3612 = vrot.lane.b32.xlu0 %v6565_v8, %s5510_s5 }
 0xcba   : > { %3055 = vmax.xlane.f32.xlu1 %v3054_v45 }
 0xcbd   : > { %3608 = vrot.lane.b32.xlu0 %v6573_v41, %s5510_s5 }
 0xccb   : > { %3327 = vrot.lane.b32.xlu1 %v6573_v41, %s5509_s4  ;;  %v832_v41 = vsel %vm287_vm1, %v5871_v9, 0.0  ;;  %v847_v9 = vsel %vm287_vm1, %v5904_v39, 0.0 }
 0xccf   : > { %3331 = vrot.lane.b32.xlu1 %v6565_v8, %s5509_s4  ;;  %v826_v8 = vsel %vm287_vm1, %v5831_v34, 0.0  ;;  %v841_v34 = vsel %vm287_vm1, %v5884_v26, 0.0 }
 0xcd3   : > { %3335 = vrot.lane.b32.xlu1 %v6561_v2, %s5509_s4 }
 0xcd5   : > { %v6681_v0 = vpop.xlane.xlu1 %3040 }
 0xcd6   : > { %v3085_v40 = vsub.f32 %v4948_v19, %v6681_v0 }
 0xcd7   : > { %v6684_v50 = vpop.xlane.xlu0 %3037  ;;  %3339 = vrot.lane.b32.xlu1 %v6553_v56, %s5509_s4 }
 0xcd8   : > { %v3084_v45 = vsub.f32 %v2997_v28, %v6684_v50  ;;  %v3094_v38 = vmul.f32 1.442695, %v3085_v40  ;;  %v835_v28 = vsel %vm287_vm1, %v5876_v63, 0.0  ;;  %v1287_v63 = vsel %vm287_vm1, %v5993_v5, 0.0 }
 0xcd9   : > { %v3346_v39 = vpop.permute.xlu1 %3345 }
 0xcda   : > { %v3092_v52 = vmul.f32 1.442695, %v3084_v45  ;;  %v844_v45 = vsel %vm287_vm1, %v5902_v37, 0.0  ;;  %v1290_v37 = vsel %vm287_vm1, %v6031_v47, 0.0 }
 0xcdb   : > { %3620 = vrot.lane.b32.xlu1 %v6553_v56, %s5510_s5  ;;  %v3348_v26 = vpop.permute.xlu0 %3347 }
 0xcdc   : > { %827 = vadd.xlane.f32.xlu0 %v826_v8  ;;  %5176 = vpow2.f32 %v3092_v52 }
 0xcdd   : > { %5178 = vpow2.f32 %v3094_v38 }
 0xcdf   : > { %3616 = vrot.lane.b32.xlu1 %v6561_v2, %s5510_s5 }
 0xce0   : > { %833 = vadd.xlane.f32.xlu0 %v832_v41 }
 0xce3   : > { %3614 = vrot.lane.b32.xlu1 %v6569_v13, %s5510_s5 }
 0xce4   : > { %836 = vadd.xlane.f32.xlu0 %v835_v28 }
 0xce7   : > { %3610 = vrot.lane.b32.xlu1 %v6577_v53, %s5510_s5  ;;  %v829_v53 = vsel %vm287_vm1, %v5833_v35, 0.0 }
 0xce8   : > { %842 = vadd.xlane.f32.xlu0 %v841_v34 }
 0xce9   : > { %v6704_v38 = vpop.eup %5176 }
 0xcea   : > { %v6706_v40 = vpop.eup %5178  ;;  %4974 = vmatprep.mubr.msk.f32.mxu1 %vm287_vm1, %v6704_v38 }
 0xceb   : > { %3606 = vrot.lane.b32.xlu1 %v6581_v36, %s5510_s5  ;;  %4975 = vmatmul.mubr.msk.f32.vlgmr.msra.gmra.mxu1 %vm287_vm1, %v6706_v40 }
 0xcec   : > { %848 = vadd.xlane.f32.xlu0 %v847_v9  ;;  %4987 = vmatpush3.xpose.msk.msra.mxu1 %vm149_vm0, %v6614_v57 }
 0xced   : > { %4988 = vmatprep.subr.msk.mxu1 %vm149_vm0, %v3354_v16 }
 0xcf0   : > { %1288 = vadd.xlane.f32.xlu0 %v1287_v63  ;;  %4989 = vmatpush3.xpose.msk.msra.mxu1 %vm149_vm0, %v3354_v16 }
 0xcf1   : > { %4990 = vmatprep.subr.msk.mxu1 %vm149_vm0, %v3352_v29 }
 0xcf4   : > { %4991 = vmatpush3.xpose.msk.msra.mxu1 %vm149_vm0, %v3352_v29 }
 0xcf5   : > { %4992 = vmatprep.subr.msk.mxu1 %vm149_vm0, %v3350_v48 }
 0xcf8   : > { %4993 = vmatpush3.xpose.msk.msra.mxu1 %vm149_vm0, %v3350_v48 }
 0xcf9   : > { %4994 = vmatprep.subr.msk.mxu1 %vm149_vm0, %v3348_v26 }
 0xcfc   : > { %4995 = vmatpush3.xpose.msk.msra.mxu1 %vm149_vm0, %v3348_v26 }
 0xcfd   : > { %4996 = vmatprep.subr.msk.mxu1 %vm149_vm0, %v3346_v39 }
 0xd00   : > { %4997 = vmatpush3.xpose.msk.msra.mxu1 %vm149_vm0, %v3346_v39 }
 0xd0a   : > { %v6730_v5 = vpop.xlane.xlu1 %3043 }
 0xd0b   : > { %v3086_v36 = vsub.f32 %v6642_v59, %v6730_v5 }
 0xd0c   : > { %v6734_v52 = vpop.xlane.xlu0 %3046 }
 0xd0d   : > { %v3096_v56 = vmul.f32 1.442695, %v3086_v36  ;;  %v3087_v2 = vsub.f32 %v6640_v27, %v6734_v52  ;;  %v838_v27 = vsel %vm287_vm1, %v5880_v25, 0.0 }
 0xd0e   : > { %v6738_v13 = vpop.xlane.xlu1 %3049 }
 0xd0f   : > { %v3098_v57 = vmul.f32 1.442695, %v3087_v2  ;;  %830 = vadd.xlane.f32.xlu1 %v829_v53  ;;  %5180 = vpow2.f32 %v3096_v56  ;;  %v3088_v19 = vsub.f32 %v6648_v20, %v6738_v13 }
 0xd10   : > { %v6744_v16 = vpop.xlane.xlu0 %3052 }
 0xd11   : > { %v3089_v59 = vsub.f32 %v6644_v23, %v6744_v16  ;;  %5182 = vpow2.f32 %v3098_v57  ;;  %v3100_v48 = vmul.f32 1.442695, %v3088_v19  ;;  %v1284_v23 = vsel %vm287_vm1, %v5991_v7, 0.0 }
 0xd12   : > { %v3342_v8 = vpop.permute.xlu1 %3341 }
 0xd13   : > { %v3102_v29 = vmul.f32 1.442695, %v3089_v59  ;;  %839 = vadd.xlane.f32.xlu1 %v838_v27  ;;  %5184 = vpow2.f32 %v3100_v48 }
 0xd14   : > { %v6750_v35 = vpop.xlane.xlu0 %3058 }
 0xd15   : > { %5186 = vpow2.f32 %v3102_v29  ;;  %v3091_v47 = vsub.f32 %v6654_v3, %v6750_v35 }
 0xd17   : > { %845 = vadd.xlane.f32.xlu1 %v844_v45  ;;  %v3106_v26 = vmul.f32 1.442695, %v3091_v47 }
 0xd18   : > { %v3344_v20 = vpop.permute.xlu0 %3343 }
 0xd19   : > { %4998 = vmatprep.subr.msk.mxu1 %vm149_vm0, %v3344_v20 }
 0xd1a   : > { %4999 = vmatpush3.xpose.msk.msra.mxu1 %vm149_vm0, %v3344_v20 }
 0xd1b   : > { %1285 = vadd.xlane.f32.xlu1 %v1284_v23  ;;  %5000 = vmatprep.subr.msk.mxu1 %vm149_vm0, %v3342_v8 }
 0xd1c   : > { %v6759_v25 = vpop.eup %5180  ;;  %v3326_v34 = vpop.permute.xlu0 %3325 }
 0xd1d   : > { %4977 = vmatprep.mubr.msk.f32.mxu1 %vm287_vm1, %v6759_v25 }
 0xd1e   : > { %5001 = vmatpush3.xpose.msk.msra.mxu1 %vm149_vm0, %v3342_v8  ;;  %v6766_v41 = vpop.eup %5182 }
 0xd1f   : > { %1291 = vadd.xlane.f32.xlu1 %v1290_v37  ;;  %4978 = vmatmul.mubr.msk.f32.gmra.mxu1 %vm287_vm1, %v6766_v41 }
 0xd20   : > { %v6770_v7 = vpop.eup %5184  ;;  %v3330_v36 = vpop.permute.xlu0 %3329 }
 0xd21   : > { %4980 = vmatprep.mubr.msk.f32.mxu1 %vm287_vm1, %v6770_v7 }
 0xd22   : > { %v6774_v28 = vpop.eup %5186 }
 0xd23   : > { %4981 = vmatmul.mubr.msk.f32.gmra.mxu1 %vm287_vm1, %v6774_v28 }
 0xd24   : > { %v3334_v53 = vpop.permute.xlu0 %3333 }
 0xd28   : > { %v3338_v19 = vpop.permute.xlu0 %3337 }
 0xd43   : > { %v6780_v9 = vpop.xlane.xlu1 %3055 }
 0xd44   : > { %v3090_v63 = vsub.f32 %v6670_v11, %v6780_v9  ;;  %v3619_v11 = vpop.permute.xlu0 %3618 }
 0xd46   : > { %v3104_v39 = vmul.f32 1.442695, %v3090_v63 }
 0xd47   : > { %v3328_v56 = vpop.permute.xlu1 %3327 }
 0xd48   : > { %5188 = vpow2.f32 %v3104_v39  ;;  %v3613_v45 = vpop.permute.xlu0 %3612 }
 0xd49   : > { %5190 = vpow2.f32 %v3106_v26 }
 0xd4b   : > { %v3332_v2 = vpop.permute.xlu1 %3331 }
 0xd4c   : > { %v3609_v23 = vpop.permute.xlu0 %3608 }
 0xd4f   : > { %v3336_v57 = vpop.permute.xlu1 %3335 }
 0xd53   : > { %v3340_v59 = vpop.permute.xlu1 %3339 }
 0xd55   : > { %v6784_v48 = vpop.eup %5188 }
 0xd56   : > { %v6786_v27 = vpop.eup %5190  ;;  %4983 = vmatprep.mubr.msk.f32.mxu1 %vm287_vm1, %v6784_v48 }
 0xd57   : > { %v3621_v3 = vpop.permute.xlu1 %3620  ;;  %4984 = vmatmul.mubr.msk.f32.gmra.mxu1 %vm287_vm1, %v6786_v27 }
 0xd58   : > { %5014 = vmatprep.subr.mxu0 %v3621_v3  ;;  %5002 = vmatprep.mubr.msk.f32.mxu1 %vm149_vm0, %v3326_v34 }
 0xd59   : > { %5015 = vmatpush3.msra.mxu0 %v3621_v3 }
 0xd5a   : > { %5016 = vmatprep.subr.mxu0 %v3619_v11 }
 0xd5b   : > { %v3617_v29 = vpop.permute.xlu1 %3616  ;;  %5017 = vmatpush3.msra.mxu0 %v3619_v11  ;;  %5003 = vmatmul.mubr.msk.f32.vlgmr.msra.gmra.mxu1 %vm149_vm0, %v3328_v56 }
 0xd5c   : > { %5018 = vmatprep.subr.mxu0 %v3617_v29  ;;  %5005 = vmatprep.mubr.msk.f32.mxu1 %vm149_vm0, %v3330_v36 }
 0xd5d   : > { %5019 = vmatpush3.msra.mxu0 %v3617_v29 }
 0xd5f   : > { %v3615_v20 = vpop.permute.xlu1 %3614  ;;  %5006 = vmatmul.mubr.msk.f32.gmra.mxu1 %vm149_vm0, %v3332_v2 }
 0xd60   : > { %5020 = vmatprep.subr.mxu0 %v3615_v20  ;;  %5008 = vmatprep.mubr.msk.f32.mxu1 %vm149_vm0, %v3334_v53 }
 0xd61   : > { %5021 = vmatpush3.msra.mxu0 %v3615_v20 }
 0xd62   : > { %5022 = vmatprep.subr.mxu0 %v3613_v45 }
 0xd63   : > { %v3611_v8 = vpop.permute.xlu1 %3610  ;;  %5023 = vmatpush3.msra.mxu0 %v3613_v45  ;;  %5009 = vmatmul.mubr.msk.f32.gmra.mxu1 %vm149_vm0, %v3336_v57 }
 0xd64   : > { %5024 = vmatprep.subr.mxu0 %v3611_v8  ;;  %5011 = vmatprep.mubr.msk.f32.mxu1 %vm149_vm0, %v3338_v19 }
 0xd65   : > { %5025 = vmatpush3.msra.mxu0 %v3611_v8 }
 0xd66   : > { %5026 = vmatprep.subr.mxu0 %v3609_v23 }
 0xd67   : > { %v3607_v37 = vpop.permute.xlu1 %3606  ;;  %5027 = vmatpush3.msra.mxu0 %v3609_v23  ;;  %5012 = vmatmul.mubr.msk.f32.gmra.mxu1 %vm149_vm0, %v3340_v59 }
 0xd68   : > { %5028 = vmatprep.subr.mxu0 %v3607_v37 }
 0xd69   : > { %5029 = vmatpush3.msra.mxu0 %v3607_v37 }
 0xdab   : > { %v6800_v34 = vpop.f32.mrf.mxu1 }
 0xdac   : > { %7648 = vst [vmem:[#allocation107_spill] sm:$0xff] %v6800_v34 }
 0xdad   : > { %v6802_v47 = vpop.f32.mrf.mxu1 }
 0xddf   : > { %v6804_v63 = vpop.f32.mrf.mxu1 }
 0xde0   : > { %7649 = vst [vmem:[#allocation108_spill] sm:$0xff] %v6804_v63 }
 0xde1   : > { %v6806_v26 = vpop.f32.mrf.mxu1 }
 0xde3   : > { %v6808_v39 = vpop.f32.mrf.mxu1 }
 0xde4   : > { %7650 = vst [vmem:[#allocation109_spill] sm:$0xff] %v6808_v39 }
 0xde5   : > { %v6810_v36 = vpop.f32.mrf.mxu1 }
 0xe17   : > { %v6812_v56 = vpop.f32.mrf.mxu1 }
 0xe18   : > { %7651 = vst [vmem:[#allocation110_spill] sm:$0xff] %v6812_v56  ;;  %v1302_v56 = vsel %vm287_vm1, %v6086_v44, 0.0  ;;  %v1754_v44 = vsel %vm287_vm1, %v6224_v12, 0.0  ;;  %v1757_v12 = vsel %vm287_vm1, %v6228_v42, 0.0  ;;  %v2658_v42 = vsel %vm287_vm1, %v6495_v31, 0.0 }
 0xe19   : > { %v6814_v2 = vpop.f32.mrf.mxu1 }
 0xe1b   : > { %v6816_v53 = vpop.f32.mrf.mxu1 }
 0xe1c   : > { %v3497_v57 = vsel %vm287_vm1, %v6816_v53, -inf }
 0xe1d   : > { %3498 = vmax.xlane.f32.xlu1 %v3497_v57  ;;  %v6820_v19 = vpop.f32.mrf.mxu1  ;;  %v1296_v57 = vsel %vm287_vm1, %v6040_v22, 0.0  ;;  %v1748_v22 = vsel %vm287_vm1, %v6215_v62, 0.0  ;;  %v1751_v62 = vsel %vm287_vm1, %v6220_v18, 0.0  ;;  %v2203_v18 = vsel %vm287_vm1, %v6337_v51, 0.0 }
 0xe1e   : > { %v3494_v59 = vsel %vm287_vm1, %v6820_v19, -inf  ;;  %v2670_v51 = vsel %vm287_vm1, %v6544_v60, 0.0  ;;  %v2676_v60 = vsel %vm287_vm1, %v6590_v4, 0.0  ;;  %v3122_v4 = vsel %vm287_vm1, %v6759_v25, 0.0 }
 0xe1f   : > { %3495 = vmax.xlane.f32.xlu0 %v3494_v59  ;;  %v6824_v3 = vpop.f32.mrf.mxu1 }
 0xe20   : > { %v3503_v11 = vsel %vm287_vm1, %v6824_v3, -inf }
 0xe21   : > { %v6828_v29 = vpop.f32.mrf.mxu1 }
 0xe22   : > { %v3500_v8 = vsel %vm287_vm1, %v6828_v29, -inf }
 0xe23   : > { %3504 = vmax.xlane.f32.xlu0 %v3503_v11  ;;  %v6830_v45 = vpop.f32.mrf.mxu1 }
 0xe24   : > { %v3509_v37 = vsel %vm287_vm1, %v6830_v45, -inf }
 0xe25   : > { %v6832_v20 = vpop.f32.mrf.mxu1 }
 0xe26   : > { %v3506_v23 = vsel %vm287_vm1, %v6832_v20, -inf }
 0xe27   : > { %3501 = vmax.xlane.f32.xlu0 %v3500_v8  ;;  %3507 = vmax.xlane.f32.xlu1 %v3506_v23  ;;  %v6842_v59 = vpop.f32.mrf.mxu1  ;;  %v1742_v8 = vsel %vm287_vm1, %v6175_v21, 0.0  ;;  %v1293_v23 = vsel %vm287_vm1, %v6036_v33, 0.0  ;;  %v1760_v21 = vsel %vm287_vm1, %v6246_v10, 0.0  ;;  %v1745_v33 = vsel %vm287_vm1, %v6177_v55, 0.0 }
 0xe28   : > { %v3515_v11 = vsel %vm287_vm1, %v6842_v59, -inf  ;;  %v2212_v55 = vsel %vm287_vm1, %v6384_v24, 0.0  ;;  %v1763_v10 = vsel %vm287_vm1, %v6248_v46, 0.0  ;;  %v2664_v46 = vsel %vm287_vm1, %v6535_v17, 0.0 }
 0xe29   : > { %v2215_v24 = vsel %vm287_vm1, %v6388_v1, 0.0  ;;  %v6892_v31 = vpop.f32.mrf.mxu1  ;;  %v2661_v17 = vsel %vm287_vm1, %v6497_v32, 0.0  ;;  %v2667_v1 = vsel %vm287_vm1, %v6540_v61, 0.0 }
 0xe2b   : > { %3510 = vmax.xlane.f32.xlu0 %v3509_v37  ;;  %1297 = vadd.xlane.f32.xlu1 %v1296_v57  ;;  %v1299_v37 = vsel %vm287_vm1, %v6044_v49, 0.0  ;;  %v2200_v49 = vsel %vm287_vm1, %v6335_v15, 0.0  ;;  %v2218_v15 = vsel %vm287_vm1, %v6406_v14, 0.0  ;;  %v2221_v14 = vsel %vm287_vm1, %v6408_v6, 0.0  ;;  %v7652_v57 = vld [vmem:[#allocation96_spill] sm:$0xff] }
 0xe2c   : > { %v770_v6 = vsub.f32 -inf, %v5827_v30 }
 0xe2e   : > { %v778_v32 = vmul.f32 1.442695, %v770_v6 }
 0xe2f   : > { %1303 = vadd.xlane.f32.xlu1 %v1302_v56  ;;  %3516 = vmax.xlane.f32.xlu0 %v3515_v11  ;;  %v1305_v56 = vsel %vm287_vm1, %v6088_v54, 0.0  ;;  %v2206_v54 = vsel %vm287_vm1, %v6375_v58, 0.0  ;;  %v2209_v58 = vsel %vm287_vm1, %v6380_v43, 0.0  ;;  %v3512_v43 = vsel %vm287_vm1, %v6892_v31, -inf }
 0xe30   : > { %v2673_v11 = vsel %vm287_vm1, %v7652_v57, 0.0  ;;  %5192 = vpow2.f32 %v778_v32  ;;  %v3137_v57 = vsel %vm287_vm1, %v6786_v27, 0.0 }
 0xe33   : > { %1743 = vadd.xlane.f32.xlu1 %v1742_v8  ;;  %1294 = vadd.xlane.f32.xlu0 %v1293_v23  ;;  %v3116_v8 = vsel %vm287_vm1, %v6704_v38, 0.0  ;;  %v7653_v23 = vld [vmem:[#allocation27_spill] sm:$0xff]  ;;  %v3119_v38 = vsel %vm287_vm1, %v6706_v40, 0.0 }
 0xe37   : > { %1749 = vadd.xlane.f32.xlu1 %v1748_v22  ;;  %1300 = vadd.xlane.f32.xlu0 %v1299_v37  ;;  %v772_v22 = vsub.f32 -inf, %v7653_v23  ;;  %v7654_v37 = vld [vmem:[#allocation98_spill] sm:$0xff] }
 0xe38   : > { %v2679_v61 = vsel %vm287_vm1, %v7654_v37, 0.0  ;;  %v7664_v37 = vld [vmem:[#allocation42_spill] sm:$0xff] }
 0xe39   : > { %v782_v30 = vmul.f32 1.442695, %v772_v22 }
 0xe3b   : > { %1755 = vadd.xlane.f32.xlu1 %v1754_v44  ;;  %1306 = vadd.xlane.f32.xlu0 %v1305_v56  ;;  %v7655_v44 = vld [vmem:[#allocation28_spill] sm:$0xff]  ;;  %5194 = vpow2.f32 %v782_v30 }
 0xe3c   : > { %v773_v56 = vsub.f32 -inf, %v7655_v44  ;;  %v7665_v44 = vld [vmem:[#allocation5_spill] sm:$0xff] }
 0xe3f   : > { %1761 = vadd.xlane.f32.xlu1 %v1760_v21  ;;  %1746 = vadd.xlane.f32.xlu0 %v1745_v33  ;;  %v3128_v21 = vsel %vm287_vm1, %v6770_v7, 0.0  ;;  %v784_v33 = vmul.f32 1.442695, %v773_v56  ;;  %v7658_v7 = vld [vmem:[#allocation31_spill] sm:$0xff]  ;;  %v371_v56 = vsel %vm287_vm1, %v7665_v44, 0.0 }
 0xe41   : > { %5196 = vpow2.f32 %v784_v33  ;;  %v831_v33 = vpop.xlane.xlu1 %830 }
 0xe43   : > { %2201 = vadd.xlane.f32.xlu1 %v2200_v49  ;;  %1752 = vadd.xlane.f32.xlu0 %v1751_v62  ;;  %v7656_v49 = vld [vmem:[#allocation30_spill] sm:$0xff] }
 0xe44   : > { %v775_v62 = vsub.f32 -inf, %v7656_v49 }
 0xe46   : > { %v788_v40 = vmul.f32 1.442695, %v775_v62 }
 0xe47   : > { %2207 = vadd.xlane.f32.xlu1 %v2206_v54  ;;  %1758 = vadd.xlane.f32.xlu0 %v1757_v12  ;;  %v7657_v54 = vld [vmem:[#allocation26_spill] sm:$0xff]  ;;  %v828_v12 = vpop.xlane.xlu0 %827 }
 0xe48   : > { %v771_v25 = vsub.f32 -inf, %v7657_v54  ;;  %5198 = vpow2.f32 %v788_v40  ;;  %v7667_v54 = vld [vmem:[#allocation43_spill] sm:$0xff]  ;;  %v7669_v40 = vld [vmem:[#allocation16_spill] sm:$0xff] }
 0xe4b   : > { %2213 = vadd.xlane.f32.xlu1 %v2212_v55  ;;  %1764 = vadd.xlane.f32.xlu0 %v1763_v10  ;;  %v3125_v55 = vsel %vm287_vm1, %v6766_v41, 0.0  ;;  %v3134_v10 = vsel %vm287_vm1, %v6784_v48, 0.0  ;;  %v7661_v48 = vld [vmem:[#allocation41_spill] sm:$0xff] }
 0xe4f   : > { %2219 = vadd.xlane.f32.xlu1 %v2218_v15  ;;  %2204 = vadd.xlane.f32.xlu0 %v2203_v18  ;;  %v777_v15 = vsub.f32 -inf, %v7658_v7  ;;  %v780_v18 = vmul.f32 1.442695, %v771_v25  ;;  %v1230_v25 = vsub.f32 -inf, %v7667_v54  ;;  %v386_v7 = vsel %vm287_vm1, %v7669_v40, 0.0  ;;  %v7673_v40 = vld [vmem:[#allocation36_spill] sm:$0xff] }
 0xe51   : > { %v792_v41 = vmul.f32 1.442695, %v777_v15  ;;  %5200 = vpow2.f32 %v780_v18 }
 0xe53   : > { %2659 = vadd.xlane.f32.xlu1 %v2658_v42  ;;  %2210 = vadd.xlane.f32.xlu0 %v2209_v58  ;;  %v7659_v42 = vld [vmem:[#allocation29_spill] sm:$0xff]  ;;  %5202 = vpow2.f32 %v792_v41  ;;  %v7670_v41 = vld [vmem:[#allocation14_spill] sm:$0xff] }
 0xe54   : > { %v774_v58 = vsub.f32 -inf, %v7659_v42 }
 0xe57   : > { %2665 = vadd.xlane.f32.xlu1 %v2664_v46  ;;  %2216 = vadd.xlane.f32.xlu0 %v2215_v24  ;;  %v3131_v46 = vsel %vm287_vm1, %v6774_v28, 0.0  ;;  %v7660_v24 = vld [vmem:[#allocation4_spill] sm:$0xff] }
 0xe5b   : > { %2671 = vadd.xlane.f32.xlu1 %v2670_v51  ;;  %2222 = vadd.xlane.f32.xlu0 %v2221_v14  ;;  %v368_v51 = vsel %vm287_vm1, %v7660_v24, 0.0  ;;  %v834_v14 = vpop.xlane.xlu0 %833 }
 0xe5f   : > { %2662 = vadd.xlane.f32.xlu0 %v2661_v17  ;;  %3513 = vmax.xlane.f32.xlu1 %v3512_v43  ;;  %v1229_v43 = vsub.f32 -inf, %v7661_v48  ;;  %v5193_v17 = vpop.eup %5192 }
 0xe60   : > { %v5195_v23 = vpop.eup %5194 }
 0xe61   : > { %v1238_v32 = vmul.f32 1.442695, %v1229_v43  ;;  %v5197_v49 = vpop.eup %5196 }
 0xe62   : > { %v821_v18 = vmul.f32 0.0, %v5197_v49  ;;  %v5199_v42 = vpop.eup %5198 }
 0xe63   : > { %2668 = vadd.xlane.f32.xlu0 %v2667_v1  ;;  %2677 = vadd.xlane.f32.xlu1 %v2676_v60  ;;  %v786_v1 = vmul.f32 1.442695, %v774_v58  ;;  %v7662_v60 = vld [vmem:[#allocation32_spill] sm:$0xff]  ;;  %v1240_v58 = vmul.f32 1.442695, %v1230_v25  ;;  %v823_v48 = vmul.f32 0.0, %v5199_v42 }
 0xe64   : > { %v776_v6 = vsub.f32 -inf, %v7662_v60 }
 0xe65   : > { %5204 = vpow2.f32 %v786_v1 }
 0xe66   : > { %v790_v22 = vmul.f32 1.442695, %v776_v6  ;;  %5206 = vpow2.f32 %v1238_v32 }
 0xe67   : > { %2674 = vadd.xlane.f32.xlu0 %v2673_v11  ;;  %3117 = vadd.xlane.f32.xlu1 %v3116_v8  ;;  %v7663_v11 = vld [vmem:[#allocation11_spill] sm:$0xff]  ;;  %v818_v8 = vmul.f32 0.0, %v5193_v17 }
 0xe68   : > { %v374_v28 = vsel %vm287_vm1, %v7663_v11, 0.0  ;;  %5208 = vpow2.f32 %v790_v22 }
 0xe69   : > { %v850_v30 = vadd.f32 %v828_v12, %v818_v8 }
 0xe6b   : > { %2680 = vadd.xlane.f32.xlu0 %v2679_v61  ;;  %3123 = vadd.xlane.f32.xlu1 %v3122_v4  ;;  %v1228_v61 = vsub.f32 -inf, %v7664_v37  ;;  %v837_v4 = vpop.xlane.xlu0 %836  ;;  %5210 = vrcp.f32 %v850_v30 }
 0xe6c   : > { %v853_v24 = vadd.f32 %v837_v4, %v821_v18 }
 0xe6d   : > { %v1236_v62 = vmul.f32 1.442695, %v1228_v61 }
 0xe6f   : > { %3120 = vadd.xlane.f32.xlu0 %v3119_v38  ;;  %3129 = vadd.xlane.f32.xlu1 %v3128_v21  ;;  %v7666_v38 = vld [vmem:[#allocation13_spill] sm:$0xff]  ;;  %v820_v21 = vmul.f32 0.0, %v5195_v23  ;;  %v843_v15 = vpop.xlane.xlu0 %842  ;;  %5212 = vpow2.f32 %v1236_v62 }
 0xe70   : > { %v380_v27 = vsel %vm287_vm1, %v7666_v38, 0.0  ;;  %v855_v6 = vadd.f32 %v843_v15, %v823_v48  ;;  %v7672_v38 = vld [vmem:[#allocation34_spill] sm:$0xff] }
 0xe73   : > { %3126 = vadd.xlane.f32.xlu0 %v3125_v55  ;;  %3135 = vadd.xlane.f32.xlu1 %v3134_v10  ;;  %v852_v55 = vadd.f32 %v834_v14, %v820_v21  ;;  %v7668_v10 = vld [vmem:[#allocation12_spill] sm:$0xff]  ;;  %v383_v14 = vsel %vm287_vm1, %v7670_v41, 0.0  ;;  %v849_v1 = vpop.xlane.xlu0 %848 }
 0xe74   : > { %v377_v12 = vsel %vm287_vm1, %v7668_v10, 0.0 }
 0xe75   : > { %5214 = vrcp.f32 %v852_v55 }
 0xe76   : > { %5216 = vpow2.f32 %v1240_v58 }
 0xe77   : > { %3132 = vadd.xlane.f32.xlu0 %v3131_v46  ;;  %369 = vadd.xlane.f32.xlu1 %v368_v51  ;;  %v5201_v46 = vpop.eup %5200  ;;  %v840_v51 = vpop.xlane.xlu1 %839  ;;  %5218 = vrcp.f32 %v853_v24  ;;  %v7674_v24 = vld [vmem:[#allocation35_spill] sm:$0xff] }
 0xe78   : > { %v5203_v43 = vpop.eup %5202  ;;  %v819_v17 = vmul.f32 0.0, %v5201_v46  ;;  %5220 = vrcp.f32 %v855_v6  ;;  %v1289_v44 = vpop.xlane.xlu0 %1288  ;;  %v7675_v6 = vld [vmem:[#allocation37_spill] sm:$0xff] }
 0xe79   : > { %v5205_v60 = vpop.eup %5204  ;;  %v825_v32 = vmul.f32 0.0, %v5203_v43 }
 0xe7a   : > { %v5207_v22 = vpop.eup %5206  ;;  %v822_v37 = vmul.f32 0.0, %v5205_v60 }
 0xe7b   : > { %3138 = vadd.xlane.f32.xlu0 %v3137_v57  ;;  %375 = vadd.xlane.f32.xlu1 %v374_v28  ;;  %v7671_v57 = vld [vmem:[#allocation17_spill] sm:$0xff]  ;;  %v851_v28 = vadd.f32 %v831_v33, %v819_v17  ;;  %v846_v23 = vpop.xlane.xlu1 %845  ;;  %v5209_v61 = vpop.eup %5208  ;;  %v857_v4 = vadd.f32 %v849_v1, %v825_v32  ;;  %v1277_v49 = vmul.f32 0.0, %v5207_v22 }
 0xe7c   : > { %v389_v11 = vsel %vm287_vm1, %v7671_v57, 0.0  ;;  %v5211_v30 = vpop.eup %5210  ;;  %v824_v62 = vmul.f32 0.0, %v5209_v61  ;;  %v1016_v57 = vadd.f32 %v7675_v6, %v823_v48 }
 0xe7d   : > { %5222 = vrcp.f32 %v851_v28  ;;  %v5213_v54 = vpop.eup %5212  ;;  %v1309_v25 = vadd.f32 %v1289_v44, %v1277_v49 }
 0xe7e   : > { %5224 = vrcp.f32 %v857_v4  ;;  %v1276_v15 = vmul.f32 0.0, %v5213_v54 }
 0xe7f   : > { %372 = vadd.xlane.f32.xlu0 %v371_v56  ;;  %381 = vadd.xlane.f32.xlu1 %v380_v27  ;;  %v854_v56 = vadd.f32 %v840_v51, %v822_v37  ;;  %v1011_v27 = vadd.f32 %v7672_v38, %v818_v8  ;;  %v1286_v33 = vpop.xlane.xlu1 %1285  ;;  %v1014_v51 = vadd.f32 %v7674_v24, %v821_v18  ;;  %v7678_v18 = vld [vmem:[#allocation48_spill] sm:$0xff]  ;;  %v7679_v38 = vld [vmem:[#allocation39_spill] sm:$0xff] }
 0xe80   : > { %v1308_v46 = vadd.f32 %v1286_v33, %v1276_v15  ;;  %v7681_v33 = vld [vmem:[#allocation44_spill] sm:$0xff] }
 0xe81   : > { %v1027_v55 = vmul.f32 %v5211_v30, %v1011_v27  ;;  %5226 = vrcp.f32 %v854_v56  ;;  %v1234_v30 = vsub.f32 -inf, %v7678_v18  ;;  %v1018_v27 = vadd.f32 %v7679_v38, %v825_v32  ;;  %v7684_v32 = vld [vmem:[#allocation49_spill] sm:$0xff]  ;;  %v7690_v18 = vld [vmem:[#allocation47_spill] sm:$0xff] }
 0xe82   : > { %v5215_v10 = vpop.eup %5214  ;;  %5228 = vrcp.f32 %v1309_v25  ;;  %v7680_v25 = vld [vmem:[#allocation38_spill] sm:$0xff]  ;;  %v1470_v24 = vadd.f32 %v7684_v32, %v1277_v49 }
 0xe83   : > { %378 = vadd.xlane.f32.xlu0 %v377_v12  ;;  %387 = vadd.xlane.f32.xlu1 %v386_v7  ;;  %v856_v12 = vadd.f32 %v846_v23, %v824_v62  ;;  %v1013_v7 = vadd.f32 %v7673_v40, %v820_v21  ;;  %v5217_v42 = vpop.eup %5216  ;;  %v1292_v41 = vpop.xlane.xlu1 %1291  ;;  %v7677_v23 = vld [vmem:[#allocation33_spill] sm:$0xff]  ;;  %v1015_v48 = vadd.f32 %v7680_v25, %v822_v37 }
 0xe84   : > { %v5219_v8 = vpop.eup %5218  ;;  %v1012_v22 = vadd.f32 %v7677_v23, %v819_v17  ;;  %v7692_v25 = vld [vmem:[#allocation57_spill] sm:$0xff] }
 0xe85   : > { %v1029_v58 = vmul.f32 %v5215_v10, %v1013_v7  ;;  %5230 = vrcp.f32 %v856_v12  ;;  %v1030_v43 = vmul.f32 %v5219_v8, %v1014_v51  ;;  %v5221_v1 = vpop.eup %5220  ;;  %v7682_v10 = vld [vmem:[#allocation58_spill] sm:$0xff]  ;;  %v1248_v7 = vmul.f32 1.442695, %v1234_v30  ;;  %v7685_v51 = vld [vmem:[#allocation40_spill] sm:$0xff] }
 0xe86   : > { %5232 = vrcp.f32 %v1308_v46  ;;  %v1032_v61 = vmul.f32 %v5221_v1, %v1016_v57  ;;  %v1686_v17 = vsub.f32 -inf, %v7682_v10  ;;  %v7683_v8 = vld [vmem:[#allocation46_spill] sm:$0xff]  ;;  %v1017_v37 = vadd.f32 %v7685_v51, %v824_v62 }
 0xe87   : > { %384 = vadd.xlane.f32.xlu0 %v383_v14  ;;  %v1278_v14 = vmul.f32 0.0, %v5217_v42  ;;  %v1233_v46 = vsub.f32 -inf, %v7683_v8  ;;  %v7689_v62 = vld [vmem:[#allocation50_spill] sm:$0xff]  ;;  %v1235_v30 = vsub.f32 -inf, %v7690_v18 }
 0xe89   : > { %v1310_v21 = vadd.f32 %v1292_v41, %v1278_v14  ;;  %v1246_v49 = vmul.f32 1.442695, %v1233_v46 }
 0xe8a   : > { %v5223_v60 = vpop.eup %5222 }
 0xe8b   : > { %390 = vadd.xlane.f32.xlu0 %v389_v11  ;;  %v7676_v11 = vld [vmem:[#allocation45_spill] sm:$0xff]  ;;  %v5225_v4 = vpop.eup %5224  ;;  %5234 = vrcp.f32 %v1310_v21  ;;  %v1028_v44 = vmul.f32 %v5223_v60, %v1012_v22  ;;  %v1694_v21 = vmul.f32 1.442695, %v1686_v17  ;;  %v1469_v22 = vadd.f32 %v7689_v62, %v1276_v15  ;;  %v7694_v15 = vld [vmem:[#allocation52_spill] sm:$0xff] }
 0xe8c   : > { %v1232_v28 = vsub.f32 -inf, %v7676_v11  ;;  %v1034_v12 = vmul.f32 %v5225_v4, %v1018_v27  ;;  %v1250_v17 = vmul.f32 1.442695, %v1235_v30 }
 0xe8e   : > { %v5227_v56 = vpop.eup %5226  ;;  %v1244_v54 = vmul.f32 1.442695, %v1232_v28 }
 0xe8f   : > { %v5229_v40 = vpop.eup %5228  ;;  %v1031_v42 = vmul.f32 %v5227_v56, %v1015_v48  ;;  %v1687_v48 = vsub.f32 -inf, %v7692_v25 }
 0xe90   : > { %5236 = vpow2.f32 %v1244_v54  ;;  %v1486_v6 = vmul.f32 %v5229_v40, %v1470_v24 }
 0xe91   : > { %5238 = vpow2.f32 %v1248_v7 }
 0xe94   : > { %3791 = vrot.lane.b32.xlu1 %v1027_v55, %s5511_s9  ;;  %v1231_v55 = vsub.f32 -inf, %v7681_v33 }
 0xe96   : > { %v1242_v41 = vmul.f32 1.442695, %v1231_v55  ;;  %v1471_v55 = vadd.f32 %v7694_v15, %v1278_v14  ;;  %v7698_v14 = vld [vmem:[#allocation60_spill] sm:$0xff]  ;;  %v7704_v15 = vld [vmem:[#allocation77_spill] sm:$0xff] }
 0xe97   : > { %v1689_v32 = vsub.f32 -inf, %v7698_v14 }
 0xe98   : > { %3795 = vrot.lane.b32.xlu1 %v1029_v58, %s5511_s9  ;;  %v5231_v58 = vpop.eup %5230  ;;  %5240 = vpow2.f32 %v1242_v41 }
 0xe99   : > { %v1033_v11 = vmul.f32 %v5231_v58, %v1017_v37  ;;  %v5233_v28 = vpop.eup %5232  ;;  %5242 = vpow2.f32 %v1694_v21 }
 0xe9a   : > { %v1485_v27 = vmul.f32 %v5233_v28, %v1469_v22  ;;  %v5235_v54 = vpop.eup %5234  ;;  %5244 = vpow2.f32 %v1246_v49  ;;  %v7700_v28 = vld [vmem:[#allocation62_spill] sm:$0xff] }
 0xe9b   : > { %v1487_v7 = vmul.f32 %v5235_v54, %v1471_v55  ;;  %v2148_v55 = vsub.f32 -inf, %v7704_v15  ;;  %v7707_v15 = vld [vmem:[#allocation91_spill] sm:$0xff] }
 0xe9c   : > { %3797 = vrot.lane.b32.xlu1 %v1030_v43, %s5511_s9  ;;  %v7686_v43 = vld [vmem:[#allocation59_spill] sm:$0xff] }
 0xe9d   : > { %v1688_v1 = vsub.f32 -inf, %v7686_v43  ;;  %v5237_v46 = vpop.eup %5236 }
 0xe9e   : > { %v5239_v43 = vpop.eup %5238 }
 0xea0   : > { %3801 = vrot.lane.b32.xlu1 %v1032_v61, %s5511_s9  ;;  %v1698_v61 = vmul.f32 1.442695, %v1688_v1  ;;  %v7002_v1 = vmul.f32 0.0, %v5237_v46 }
 0xea1   : > { %3793 = vrot.lane.b32.xlu0 %v1028_v44, %s5511_s9 }
 0xea2   : > { %5246 = vpow2.f32 %v1698_v61 }
 0xea4   : > { %3805 = vrot.lane.b32.xlu1 %v1034_v12, %s5511_s9 }
 0xea5   : > { %3799 = vrot.lane.b32.xlu0 %v1031_v42, %s5511_s9  ;;  %v1696_v42 = vmul.f32 1.442695, %v1687_v48  ;;  %v5241_v62 = vpop.eup %5240 }
 0xea6   : > { %v6971_v60 = vpop.xlane.xlu1 %3498  ;;  %v5243_v61 = vpop.eup %5242 }
 0xea7   : > { %7687 = vst [vmem:[#allocation96_spill] sm:$0xff] %v6971_v60  ;;  %v3543_v57 = vsub.f32 %v6816_v53, %v6971_v60  ;;  %v7691_v53 = vld [vmem:[#allocation61_spill] sm:$0xff] }
 0xea8   : > { %v6975_v23 = vpop.xlane.xlu0 %3495  ;;  %3825 = vrot.lane.b32.xlu1 %v1486_v6, %s5512_s10  ;;  %v1690_v44 = vsub.f32 -inf, %v7691_v53 }
 0xea9   : > { %7688 = vst [vmem:[#allocation27_spill] sm:$0xff] %v6975_v23  ;;  %v3542_v4 = vsub.f32 %v6820_v19, %v6975_v23  ;;  %3803 = vrot.lane.b32.xlu0 %v1033_v11, %s5511_s9  ;;  %v3552_v56 = vmul.f32 1.442695, %v3543_v57  ;;  %v7695_v19 = vld [vmem:[#allocation64_spill] sm:$0xff]  ;;  %v1700_v11 = vmul.f32 1.442695, %v1689_v32 }
 0xeaa   : > { %v1692_v10 = vsub.f32 -inf, %v7695_v19  ;;  %v1702_v12 = vmul.f32 1.442695, %v1690_v44  ;;  %v2160_v32 = vmul.f32 1.442695, %v2148_v55  ;;  %v2604_v55 = vsub.f32 -inf, %v7707_v15 }
 0xeab   : > { %v3550_v38 = vmul.f32 1.442695, %v3542_v4  ;;  %v7010_v4 = vmul.f32 0.0, %v5239_v43 }
 0xeac   : > { %v6985_v33 = vpop.xlane.xlu0 %3504  ;;  %v1706_v24 = vmul.f32 1.442695, %v1692_v10  ;;  %v7020_v10 = vmul.f32 0.0, %v5241_v62 }
 0xead   : > { %7693 = vst [vmem:[#allocation98_spill] sm:$0xff] %v6985_v33  ;;  %3823 = vrot.lane.b32.xlu0 %v1485_v27, %s5512_s10  ;;  %5248 = vpow2.f32 %v3550_v38  ;;  %v3545_v40 = vsub.f32 %v6824_v3, %v6985_v33  ;;  %v7703_v27 = vld [vmem:[#allocation63_spill] sm:$0xff] }
 0xeae   : > { %5250 = vpow2.f32 %v3552_v56  ;;  %v5245_v56 = vpop.eup %5244 }
 0xeaf   : > { %5252 = vpow2.f32 %v1250_v17  ;;  %v3556_v3 = vmul.f32 1.442695, %v3545_v40  ;;  %v5247_v25 = vpop.eup %5246  ;;  %v7022_v17 = vmul.f32 0.0, %v5243_v61 }
 0xeb0   : > { %v6992_v58 = vpop.xlane.xlu0 %3501  ;;  %v6994_v8 = vpop.xlane.xlu1 %3507  ;;  %5254 = vpow2.f32 %v1702_v12 }
 0xeb1   : > { %7696 = vst [vmem:[#allocation28_spill] sm:$0xff] %v6992_v58  ;;  %7697 = vst [vmem:[#allocation30_spill] sm:$0xff] %v6994_v8  ;;  %v3544_v51 = vsub.f32 %v6828_v29, %v6992_v58  ;;  %3827 = vrot.lane.b32.xlu0 %v1487_v7, %s5512_s10  ;;  %v3546_v37 = vsub.f32 %v6832_v20, %v6994_v8  ;;  %5256 = vpow2.f32 %v1696_v42  ;;  %v1691_v29 = vsub.f32 -inf, %v7700_v28  ;;  %v7701_v20 = vld [vmem:[#allocation75_spill] sm:$0xff] }
 0xeb2   : > { %5258 = vpow2.f32 %v1706_v24  ;;  %v2146_v22 = vsub.f32 -inf, %v7701_v20  ;;  %v7705_v24 = vld [vmem:[#allocation80_spill] sm:$0xff]  ;;  %v7706_v20 = vld [vmem:[#allocation90_spill] sm:$0xff] }
 0xeb3   : > { %v3554_v41 = vmul.f32 1.442695, %v3544_v51  ;;  %v3558_v21 = vmul.f32 1.442695, %v3546_v37  ;;  %v1704_v38 = vmul.f32 1.442695, %v1691_v29 }
 0xeb4   : > { %v7004_v6 = vpop.xlane.xlu0 %3510  ;;  %v1298_v57 = vpop.xlane.xlu1 %1297  ;;  %v2156_v48 = vmul.f32 1.442695, %v2146_v22  ;;  %v2150_v51 = vsub.f32 -inf, %v7705_v24  ;;  %v2602_v22 = vsub.f32 -inf, %v7706_v20 }
 0xeb5   : > { %7699 = vst [vmem:[#allocation26_spill] sm:$0xff] %v7004_v6  ;;  %v3547_v49 = vsub.f32 %v6830_v45, %v7004_v6  ;;  %5260 = vpow2.f32 %v3554_v41  ;;  %v1312_v30 = vadd.f32 %v1298_v57, %v7002_v1  ;;  %v1693_v45 = vsub.f32 -inf, %v7703_v27 }
 0xeb6   : > { %5262 = vpow2.f32 %v3556_v3  ;;  %v7033_v3 = vmul.f32 0.0, %v5245_v56  ;;  %v7035_v41 = vmul.f32 0.0, %v5247_v25  ;;  %v2164_v62 = vmul.f32 1.442695, %v2150_v51 }
 0xeb7   : > { %v3560_v18 = vmul.f32 1.442695, %v3547_v49  ;;  %5264 = vpow2.f32 %v3558_v21  ;;  %v1708_v42 = vmul.f32 1.442695, %v1693_v45 }
 0xeb8   : > { %v7013_v53 = vpop.xlane.xlu0 %3516  ;;  %v1304_v44 = vpop.xlane.xlu1 %1303  ;;  %5266 = vpow2.f32 %v1700_v11 }
 0xeb9   : > { %7702 = vst [vmem:[#allocation31_spill] sm:$0xff] %v7013_v53  ;;  %v1314_v54 = vadd.f32 %v1304_v44, %v7010_v4  ;;  %5268 = vpow2.f32 %v3560_v18 }
 0xeba   : > { %v7018_v19 = vpop.eup %5248  ;;  %5270 = vrcp.f32 %v1312_v30 }
 0xebb   : > { %v7024_v12 = vpop.eup %5250  ;;  %5272 = vrcp.f32 %v1314_v54  ;;  %5030 = vmatprep.mubr.msk.f32.mxu0 %vm287_vm1, %v7018_v19 }
 0xebc   : > { %v1295_v40 = vpop.xlane.xlu0 %1294  ;;  %v1744_v7 = vpop.xlane.xlu1 %1743  ;;  %5274 = vpow2.f32 %v1704_v38  ;;  %5031 = vmatmul.mubr.msk.f32.vlgmr.msra.gmra.mxu0 %vm287_vm1, %v7024_v12 }
 0xebd   : > { %v1311_v46 = vadd.f32 %v1295_v40, %v7020_v10  ;;  %v1766_v14 = vadd.f32 %v1744_v7, %v7022_v17  ;;  %5276 = vpow2.f32 %v2156_v48  ;;  %v5253_v37 = vpop.eup %5252  ;;  %v2610_v48 = vmul.f32 1.442695, %v2602_v22  ;;  %v7708_v7 = vld [vmem:[#allocation54_spill] sm:$0xff]  ;;  %v7711_v22 = vld [vmem:[#allocation51_spill] sm:$0xff] }
 0xebe   : > { %v5255_v43 = vpop.eup %5254  ;;  %v7042_v18 = vmul.f32 0.0, %v5253_v37 }
 0xebf   : > { %5278 = vrcp.f32 %v1311_v46  ;;  %v5257_v11 = vpop.eup %5256  ;;  %v7044_v30 = vmul.f32 0.0, %v5255_v43  ;;  %v7709_v43 = vld [vmem:[#allocation56_spill] sm:$0xff] }
 0xec0   : > { %5280 = vrcp.f32 %v1766_v14  ;;  %v1301_v21 = vpop.xlane.xlu0 %1300  ;;  %v1750_v57 = vpop.xlane.xlu1 %1749  ;;  %v7063_v46 = vmul.f32 0.0, %v5257_v11 }
 0xec1   : > { %5282 = vpow2.f32 %v1708_v42  ;;  %v1313_v28 = vadd.f32 %v1301_v21, %v7033_v3  ;;  %v1768_v29 = vadd.f32 %v1750_v57, %v7035_v41  ;;  %v5259_v49 = vpop.eup %5258  ;;  %v1473_v42 = vadd.f32 %v7708_v7, %v7002_v1 }
 0xec2   : > { %5284 = vpow2.f32 %v2160_v32  ;;  %v7040_v61 = vpop.eup %5260  ;;  %v7065_v14 = vmul.f32 0.0, %v5259_v49  ;;  %v1475_v21 = vadd.f32 %v7709_v43, %v7010_v4  ;;  %v7710_v49 = vld [vmem:[#allocation93_spill] sm:$0xff] }
 0xec3   : > { %5286 = vrcp.f32 %v1313_v28  ;;  %v7046_v44 = vpop.eup %5262  ;;  %5033 = vmatprep.mubr.msk.f32.mxu0 %vm287_vm1, %v7040_v61 }
 0xec4   : > { %5288 = vrcp.f32 %v1768_v29  ;;  %v1307_v56 = vpop.xlane.xlu0 %1306  ;;  %v1756_v38 = vpop.xlane.xlu1 %1755  ;;  %5034 = vmatmul.mubr.msk.f32.gmra.mxu0 %vm287_vm1, %v7046_v44  ;;  %v2614_v29 = vmul.f32 1.442695, %v2604_v55 }
 0xec5   : > { %v7050_v27 = vpop.eup %5264  ;;  %v1315_v45 = vadd.f32 %v1307_v56, %v7042_v18  ;;  %v1770_v54 = vadd.f32 %v1756_v38, %v7044_v30  ;;  %5290 = vpow2.f32 %v2164_v62  ;;  %v2606_v62 = vsub.f32 -inf, %v7710_v49 }
 0xec6   : > { %v5267_v25 = vpop.eup %5266  ;;  %5036 = vmatprep.mubr.msk.f32.mxu0 %vm287_vm1, %v7050_v27  ;;  %v1472_v56 = vadd.f32 %v7711_v22, %v7020_v10  ;;  %v7713_v10 = vld [vmem:[#allocation53_spill] sm:$0xff]  ;;  %v7714_v22 = vld [vmem:[#allocation68_spill] sm:$0xff] }
 0xec7   : > { %v7059_v40 = vpop.eup %5268  ;;  %5292 = vrcp.f32 %v1315_v45  ;;  %v7076_v38 = vmul.f32 0.0, %v5267_v25  ;;  %v1474_v25 = vadd.f32 %v7713_v10, %v7033_v3 }
 0xec8   : > { %v5271_v32 = vpop.eup %5270  ;;  %5294 = vrcp.f32 %v1770_v54  ;;  %v1747_v24 = vpop.xlane.xlu0 %1746  ;;  %5037 = vmatmul.mubr.msk.f32.gmra.mxu0 %vm287_vm1, %v7059_v40 }
 0xec9   : > { %v1762_v51 = vpop.xlane.xlu1 %1761  ;;  %v5273_v37 = vpop.eup %5272  ;;  %v1489_v57 = vmul.f32 %v5271_v32, %v1473_v42  ;;  %v1767_v28 = vadd.f32 %v1747_v24, %v7063_v46  ;;  %5296 = vpow2.f32 %v2610_v48  ;;  %v7712_v48 = vld [vmem:[#allocation66_spill] sm:$0xff] }
 0xeca   : > { %v1772_v1 = vadd.f32 %v1762_v51, %v7065_v14  ;;  %v5275_v11 = vpop.eup %5274  ;;  %v1491_v4 = vmul.f32 %v5273_v37, %v1475_v21  ;;  %v1927_v55 = vadd.f32 %v7712_v48, %v7022_v17  ;;  %v2618_v51 = vmul.f32 1.442695, %v2606_v62 }
 0xecb   : > { %v5277_v20 = vpop.eup %5276  ;;  %3831 = vrot.lane.b32.xlu0 %v1489_v57, %s5512_s10  ;;  %5298 = vrcp.f32 %v1767_v28  ;;  %v1739_v37 = vmul.f32 0.0, %v5275_v11  ;;  %v7715_v11 = vld [vmem:[#allocation55_spill] sm:$0xff] }
 0xecc   : > { %v5279_v45 = vpop.eup %5278  ;;  %5300 = vrcp.f32 %v1772_v1  ;;  %v1753_v54 = vpop.xlane.xlu0 %1752  ;;  %v7086_v21 = vmul.f32 0.0, %v5277_v20  ;;  %v1476_v20 = vadd.f32 %v7715_v11, %v7042_v18 }
 0xecd   : > { %v7079_v15 = vpop.xlane.xlu1 %2201  ;;  %v5281_v7 = vpop.eup %5280  ;;  %v1769_v42 = vadd.f32 %v1753_v54, %v7076_v38  ;;  %v1488_v32 = vmul.f32 %v5279_v45, %v1472_v56  ;;  %5302 = vpow2.f32 %v2614_v29  ;;  %v1929_v56 = vadd.f32 %v7714_v22, %v7035_v41 }
 0xece   : > { %v5283_v24 = vpop.eup %5282  ;;  %v1943_v57 = vmul.f32 %v5281_v7, %v1927_v55 }
 0xecf   : > { %v5285_v43 = vpop.eup %5284  ;;  %3835 = vrot.lane.b32.xlu0 %v1491_v4, %s5512_s10  ;;  %5304 = vrcp.f32 %v1769_v42  ;;  %3829 = vrot.lane.b32.xlu1 %v1488_v32, %s5512_s10  ;;  %v1741_v45 = vmul.f32 0.0, %v5283_v24  ;;  %v7716_v32 = vld [vmem:[#allocation70_spill] sm:$0xff] }
 0xed0   : > { %v5287_v17 = vpop.eup %5286  ;;  %v1759_v28 = vpop.xlane.xlu0 %1758  ;;  %5306 = vpow2.f32 %v2618_v51  ;;  %v2196_v54 = vmul.f32 0.0, %v5285_v43  ;;  %v1931_v10 = vadd.f32 %v7716_v32, %v7044_v30  ;;  %v7717_v43 = vld [vmem:[#allocation65_spill] sm:$0xff] }
 0xed1   : > { %v2208_v1 = vpop.xlane.xlu1 %2207  ;;  %v5289_v49 = vpop.eup %5288  ;;  %v1771_v3 = vadd.f32 %v1759_v28, %v1739_v37  ;;  %v1490_v62 = vmul.f32 %v5287_v17, %v1474_v25  ;;  %v1928_v17 = vadd.f32 %v7717_v43, %v7063_v46  ;;  %v7719_v46 = vld [vmem:[#allocation67_spill] sm:$0xff] }
 0xed2   : > { %v2226_v29 = vadd.f32 %v2208_v1, %v7086_v21  ;;  %v5291_v4 = vpop.eup %5290  ;;  %v1945_v7 = vmul.f32 %v5289_v49, %v1929_v56  ;;  %v7718_v56 = vld [vmem:[#allocation72_spill] sm:$0xff] }
 0xed3   : > { %3855 = vrot.lane.b32.xlu0 %v1943_v57, %s5513_s11  ;;  %5308 = vrcp.f32 %v1771_v3  ;;  %3833 = vrot.lane.b32.xlu1 %v1490_v62, %s5512_s10  ;;  %v2198_v57 = vmul.f32 0.0, %v5291_v4  ;;  %v1933_v3 = vadd.f32 %v7718_v56, %v7065_v14  ;;  %v7722_v56 = vld [vmem:[#allocation71_spill] sm:$0xff] }
 0xed4   : > { %v5293_v48 = vpop.eup %5292  ;;  %5310 = vrcp.f32 %v2226_v29  ;;  %v1765_v41 = vpop.xlane.xlu0 %1764 }
 0xed5   : > { %v2214_v55 = vpop.xlane.xlu1 %2213  ;;  %v5295_v42 = vpop.eup %5294  ;;  %v1773_v18 = vadd.f32 %v1765_v41, %v1741_v45  ;;  %v1492_v51 = vmul.f32 %v5293_v48, %v1476_v20  ;;  %v1930_v20 = vadd.f32 %v7719_v46, %v7076_v38 }
 0xed6   : > { %v2228_v25 = vadd.f32 %v2214_v55, %v2196_v54  ;;  %v5297_v24 = vpop.eup %5296  ;;  %v1947_v28 = vmul.f32 %v5295_v42, %v1931_v10  ;;  %v7720_v10 = vld [vmem:[#allocation69_spill] sm:$0xff] }
 0xed7   : > { %3859 = vrot.lane.b32.xlu0 %v1945_v7, %s5513_s11  ;;  %5312 = vrcp.f32 %v1773_v18  ;;  %3837 = vrot.lane.b32.xlu1 %v1492_v51, %s5512_s10  ;;  %v2650_v4 = vmul.f32 0.0, %v5297_v24  ;;  %v1932_v18 = vadd.f32 %v7720_v10, %v1739_v37  ;;  %v7721_v51 = vld [vmem:[#allocation84_spill] sm:$0xff]  ;;  %v1934_v37 = vadd.f32 %v7722_v56, %v1741_v45 }
 0xed8   : > { %v5299_v1 = vpop.eup %5298  ;;  %5314 = vrcp.f32 %v2228_v25  ;;  %v7103_v49 = vpop.xlane.xlu0 %2204  ;;  %v2387_v24 = vadd.f32 %v7721_v51, %v7086_v21  ;;  %v3549_v45 = vsub.f32 %v6842_v59, %v7013_v53  ;;  %v7728_v56 = vld [vmem:[#allocation100_spill] sm:$0xff] }
 0xed9   : > { %v2220_v22 = vpop.xlane.xlu1 %2219  ;;  %v5301_v30 = vpop.eup %5300  ;;  %v1944_v62 = vmul.f32 %v5299_v1, %v1928_v17 }
 0xeda   : > { %v2230_v29 = vadd.f32 %v2220_v22, %v2198_v57  ;;  %v5303_v11 = vpop.eup %5302  ;;  %v1949_v7 = vmul.f32 %v5301_v30, %v1933_v3 }
 0xedb   : > { %3863 = vrot.lane.b32.xlu0 %v1947_v28, %s5513_s11  ;;  %3857 = vrot.lane.b32.xlu1 %v1944_v62, %s5513_s11  ;;  %v2652_v25 = vmul.f32 0.0, %v5303_v11  ;;  %v7723_v62 = vld [vmem:[#allocation86_spill] sm:$0xff] }
 0xedc   : > { %v5305_v48 = vpop.eup %5304  ;;  %5316 = vrcp.f32 %v2230_v29  ;;  %v7111_v41 = vpop.xlane.xlu0 %2210  ;;  %v2389_v11 = vadd.f32 %v7723_v62, %v2196_v54 }
 0xedd   : > { %v2660_v55 = vpop.xlane.xlu1 %2659  ;;  %v1946_v32 = vmul.f32 %v5305_v48, %v1930_v20  ;;  %v5307_v14 = vpop.eup %5306 }
 0xede   : > { %v2682_v42 = vadd.f32 %v2660_v55, %v2650_v4  ;;  %v2654_v3 = vmul.f32 0.0, %v5307_v14  ;;  %v7725_v14 = vld [vmem:[#allocation88_spill] sm:$0xff] }
 0xedf   : > { %3867 = vrot.lane.b32.xlu0 %v1949_v7, %s5513_s11  ;;  %3861 = vrot.lane.b32.xlu1 %v1946_v32, %s5513_s11  ;;  %v7724_v7 = vld [vmem:[#allocation3_spill] sm:$0xff]  ;;  %v2391_v10 = vadd.f32 %v7725_v14, %v2198_v57 }
 0xee0   : > { %v5309_v38 = vpop.eup %5308  ;;  %5318 = vrcp.f32 %v2682_v42  ;;  %v7118_v43 = vpop.xlane.xlu0 %2216  ;;  %v312_v48 = vsub.f32 -inf, %v7724_v7  ;;  %v7730_v7 = vld [vmem:[#allocation8_spill] sm:$0xff] }
 0xee1   : > { %v2666_v17 = vpop.xlane.xlu1 %2665  ;;  %v5311_v28 = vpop.eup %5310  ;;  %v1948_v22 = vmul.f32 %v5309_v38, %v1932_v18 }
 0xee2   : > { %v2684_v1 = vadd.f32 %v2666_v17, %v2652_v25  ;;  %v7120_v30 = vmul.f32 %v5311_v28, %v2387_v24  ;;  %v320_v51 = vmul.f32 1.442695, %v312_v48  ;;  %v7727_v28 = vld [vmem:[#allocation6_spill] sm:$0xff]  ;;  %v316_v48 = vsub.f32 -inf, %v7730_v7  ;;  %v7736_v7 = vld [vmem:[#allocation104_spill] sm:$0xff] }
 0xee3   : > { %3865 = vrot.lane.b32.xlu1 %v1948_v22, %s5513_s11  ;;  %v3564_v22 = vmul.f32 1.442695, %v3549_v45  ;;  %v7732_v45 = vld [vmem:[#allocation102_spill] sm:$0xff] }
 0xee4   : > { %v5313_v29 = vpop.eup %5312  ;;  %5320 = vrcp.f32 %v2684_v1  ;;  %v7125_v46 = vpop.xlane.xlu0 %2222  ;;  %v314_v1 = vsub.f32 -inf, %v7727_v28  ;;  %v2845_v14 = vadd.f32 %v7732_v45, %v2652_v25 }
 0xee5   : > { %v2672_v21 = vpop.xlane.xlu1 %2671  ;;  %v5315_v20 = vpop.eup %5314  ;;  %v1950_v42 = vmul.f32 %v5313_v29, %v1934_v37  ;;  %v2843_v37 = vadd.f32 %v7728_v56, %v2650_v4 }
 0xee6   : > { %v2686_v55 = vadd.f32 %v2672_v21, %v2654_v3  ;;  %v7128_v32 = vmul.f32 %v5315_v20, %v2389_v11  ;;  %v7729_v11 = vld [vmem:[#allocation2_spill] sm:$0xff] }
 0xee7   : > { %3869 = vrot.lane.b32.xlu1 %v1950_v42, %s5513_s11  ;;  %v313_v21 = vsub.f32 -inf, %v7729_v11 }
 0xee8   : > { %5322 = vrcp.f32 %v2686_v55  ;;  %v7134_v54 = vpop.xlane.xlu0 %2662  ;;  %v7731_v55 = vld [vmem:[#allocation74_spill] sm:$0xff] }
 0xee9   : > { %v7136_v18 = vpop.xlane.xlu1 %3513  ;;  %v5317_v38 = vpop.eup %5316  ;;  %5324 = vpow2.f32 %v320_v51  ;;  %v2144_v42 = vsub.f32 -inf, %v7731_v55  ;;  %v7733_v51 = vld [vmem:[#allocation7_spill] sm:$0xff]  ;;  %v2847_v55 = vadd.f32 %v7736_v7, %v2654_v3 }
 0xeea   : > { %7726 = vst [vmem:[#allocation29_spill] sm:$0xff] %v7136_v18  ;;  %v3548_v24 = vsub.f32 %v6892_v31, %v7136_v18  ;;  %v7140_v17 = vmul.f32 %v5317_v38, %v2391_v10  ;;  %v324_v31 = vmul.f32 1.442695, %v314_v1  ;;  %v315_v28 = vsub.f32 -inf, %v7733_v51  ;;  %v7734_v1 = vld [vmem:[#allocation15_spill] sm:$0xff]  ;;  %v7738_v51 = vld [vmem:[#allocation76_spill] sm:$0xff] }
 0xeeb   : > { %v2152_v11 = vmul.f32 1.442695, %v2144_v42 }
 0xeec   : > { %v3562_v59 = vmul.f32 1.442695, %v3548_v24  ;;  %v7144_v29 = vpop.xlane.xlu0 %2668  ;;  %v322_v24 = vmul.f32 1.442695, %v313_v21  ;;  %v326_v21 = vmul.f32 1.442695, %v315_v28 }
 0xeed   : > { %v7146_v57 = vpop.xlane.xlu1 %2677  ;;  %v5319_v62 = vpop.eup %5318  ;;  %v7739_v28 = vld [vmem:[#allocation10_spill] sm:$0xff] }
 0xeee   : > { %5326 = vpow2.f32 %v3562_v59  ;;  %v7149_v20 = vmul.f32 %v5319_v62, %v2843_v37  ;;  %v328_v59 = vmul.f32 1.442695, %v316_v48  ;;  %v318_v37 = vsub.f32 -inf, %v7734_v1  ;;  %v7735_v62 = vld [vmem:[#allocation73_spill] sm:$0xff] }
 0xeef   : > { %5328 = vpow2.f32 %v3564_v22  ;;  %v2145_v22 = vsub.f32 -inf, %v7735_v62  ;;  %v2147_v1 = vsub.f32 -inf, %v7738_v51  ;;  %v3583_v51 = vsel %vm287_vm1, %v7046_v44, 0.0 }
 0xef0   : > { %v7154_v4 = vpop.xlane.xlu0 %2674  ;;  %5330 = vpow2.f32 %v324_v31  ;;  %v332_v48 = vmul.f32 1.442695, %v318_v37 }
 0xef1   : > { %v7156_v10 = vpop.xlane.xlu1 %3117  ;;  %v5321_v38 = vpop.eup %5320  ;;  %5332 = vpow2.f32 %v322_v24 }
 0xef2   : > { %v7159_v56 = vmul.f32 %v5321_v38, %v2845_v14  ;;  %5334 = vpow2.f32 %v328_v59  ;;  %v7737_v14 = vld [vmem:[#allocation9_spill] sm:$0xff]  ;;  %v2154_v38 = vmul.f32 1.442695, %v2145_v22 }
 0xef3   : > { %v317_v31 = vsub.f32 -inf, %v7737_v14  ;;  %5336 = vpow2.f32 %v2152_v11  ;;  %v3577_v11 = vsel %vm287_vm1, %v7024_v12, 0.0 }
 0xef4   : > { %v7164_v25 = vpop.xlane.xlu0 %2680  ;;  %5338 = vpow2.f32 %v326_v21 }
 0xef5   : > { %v7166_v45 = vpop.xlane.xlu1 %3123  ;;  %v5323_v18 = vpop.eup %5322  ;;  %v330_v24 = vmul.f32 1.442695, %v317_v31  ;;  %5340 = vpow2.f32 %v332_v48 }
 0xef6   : > { %v7168_v53 = vmul.f32 %v5323_v18, %v2847_v55  ;;  %v5325_v62 = vpop.eup %5324  ;;  %v319_v18 = vsub.f32 -inf, %v7739_v28  ;;  %5342 = vpow2.f32 %v2154_v38  ;;  %v2158_v55 = vmul.f32 1.442695, %v2147_v1 }
 0xef7   : > { %5344 = vpow2.f32 %v330_v24  ;;  %v360_v14 = vmul.f32 0.0, %v5325_v62  ;;  %v3589_v62 = vsel %vm287_vm1, %v7059_v40, 0.0  ;;  %v3574_v40 = vsel %vm287_vm1, %v7018_v19, 0.0 }
 0xef8   : > { %v7172_v42 = vpop.xlane.xlu0 %3120  ;;  %v334_v21 = vmul.f32 1.442695, %v319_v18  ;;  %5346 = vpow2.f32 %v2158_v55  ;;  %v3580_v19 = vsel %vm287_vm1, %v7040_v61, 0.0 }
 0xef9   : > { %v7174_v3 = vpop.xlane.xlu1 %3129 }
 0xefa   : > { %5348 = vpow2.f32 %v334_v21 }
 0xefb   : > { %v7176_v7 = vpop.eup %5326 }
 0xefc   : > { %v5329_v59 = vpop.eup %5328  ;;  %5039 = vmatprep.mubr.msk.f32.mxu0 %vm287_vm1, %v7176_v7  ;;  %v7181_v37 = vpop.xlane.xlu0 %3126 }
 0xefd   : > { %v7183_v22 = vpop.xlane.xlu1 %3135  ;;  %5040 = vmatmul.mubr.msk.f32.gmra.mxu0 %vm287_vm1, %v5329_v59  ;;  %v5331_v31 = vpop.eup %5330 }
 0xefe   : > { %3578 = vadd.xlane.f32.xlu0 %v3577_v11  ;;  %v5333_v28 = vpop.eup %5332  ;;  %v362_v8 = vmul.f32 0.0, %v5331_v31 }
 0xeff   : > { %v5335_v12 = vpop.eup %5334  ;;  %v361_v23 = vmul.f32 0.0, %v5333_v28 }
 0xf00   : > { %v7188_v48 = vpop.xlane.xlu0 %3132  ;;  %v5337_v18 = vpop.eup %5336  ;;  %v364_v39 = vmul.f32 0.0, %v5335_v12 }
 0xf01   : > { %v370_v38 = vpop.xlane.xlu1 %369  ;;  %v5339_v11 = vpop.eup %5338 }
 0xf02   : > { %v392_v1 = vadd.f32 %v370_v38, %v360_v14  ;;  %3584 = vadd.xlane.f32.xlu0 %v3583_v51  ;;  %v5341_v44 = vpop.eup %5340  ;;  %v7196_v38 = vmul.f32 0.0, %v5337_v18  ;;  %v363_v28 = vmul.f32 0.0, %v5339_v11 }
 0xf03   : > { %v5343_v51 = vpop.eup %5342  ;;  %v366_v12 = vmul.f32 0.0, %v5341_v44 }
 0xf04   : > { %5350 = vrcp.f32 %v392_v1  ;;  %v7192_v58 = vpop.xlane.xlu0 %3138  ;;  %v3595_v1 = vsel %vm287_vm1, %v5329_v59, 0.0  ;;  %v2224_v33 = vadd.f32 %v7079_v15, %v7196_v38  ;;  %v7203_v18 = vmul.f32 0.0, %v5343_v51 }
 0xf05   : > { %v376_v24 = vpop.xlane.xlu1 %375 }
 0xf06   : > { %v394_v55 = vadd.f32 %v376_v24, %v362_v8  ;;  %3590 = vadd.xlane.f32.xlu0 %v3589_v62  ;;  %v5345_v24 = vpop.eup %5344  ;;  %v7740_v62 = vld [vmem:[#allocation97_spill] sm:$0xff]  ;;  %v2225_v15 = vadd.f32 %v7103_v49, %v7203_v18 }
 0xf07   : > { %v365_v44 = vmul.f32 0.0, %v5345_v24 }
 0xf08   : > { %5352 = vrcp.f32 %v394_v55  ;;  %v373_v21 = vpop.xlane.xlu0 %372  ;;  %v2608_v55 = vsub.f32 -inf, %v7740_v62 }
 0xf09   : > { %v382_v31 = vpop.xlane.xlu1 %381  ;;  %v393_v6 = vadd.f32 %v373_v21, %v361_v23 }
 0xf0a   : > { %v396_v63 = vadd.f32 %v382_v31, %v364_v39  ;;  %3596 = vadd.xlane.f32.xlu0 %v3595_v1  ;;  %v5347_v31 = vpop.eup %5346 }
 0xf0b   : > { %5354 = vrcp.f32 %v393_v6  ;;  %3575 = vadd.xlane.f32.xlu1 %v3574_v40  ;;  %v7741_v6 = vld [vmem:[#allocation19_spill] sm:$0xff]  ;;  %v5349_v51 = vpop.eup %5348  ;;  %v7211_v1 = vmul.f32 0.0, %v5347_v31  ;;  %v3060_v40 = vsub.f32 -inf, %v6684_v50 }
 0xf0c   : > { %5356 = vrcp.f32 %v396_v63  ;;  %v379_v59 = vpop.xlane.xlu0 %378  ;;  %v553_v11 = vadd.f32 %v7741_v6, %v360_v14  ;;  %v2622_v63 = vmul.f32 1.442695, %v2608_v55  ;;  %v7742_v14 = vld [vmem:[#allocation21_spill] sm:$0xff]  ;;  %v367_v31 = vmul.f32 0.0, %v5349_v51 }
 0xf0d   : > { %v388_v21 = vpop.xlane.xlu1 %387  ;;  %v395_v34 = vadd.f32 %v379_v59, %v363_v28  ;;  %5358 = vrcp.f32 %v2224_v33  ;;  %v2227_v61 = vadd.f32 %v7111_v41, %v7211_v1  ;;  %v555_v24 = vadd.f32 %v7742_v14, %v362_v8 }
 0xf0e   : > { %v398_v60 = vadd.f32 %v388_v21, %v366_v12  ;;  %v3068_v50 = vmul.f32 1.442695, %v3060_v40  ;;  %v3064_v40 = vsub.f32 -inf, %v6738_v13 }
 0xf0f   : > { %5360 = vrcp.f32 %v395_v34  ;;  %3581 = vadd.xlane.f32.xlu1 %v3580_v19  ;;  %v3586_v34 = vsel %vm287_vm1, %v7050_v27, 0.0 }
 0xf10   : > { %5362 = vrcp.f32 %v398_v60  ;;  %v385_v62 = vpop.xlane.xlu0 %384  ;;  %v3062_v60 = vsub.f32 -inf, %v6730_v5  ;;  %v3076_v13 = vmul.f32 1.442695, %v3064_v40 }
 0xf11   : > { %v3792_v33 = vpop.permute.xlu1 %3791  ;;  %v5351_v59 = vpop.eup %5350  ;;  %v397_v21 = vadd.f32 %v385_v62, %v365_v44  ;;  %5364 = vrcp.f32 %v2225_v15  ;;  %v7743_v62 = vld [vmem:[#allocation18_spill] sm:$0xff] }
 0xf12   : > { %v569_v49 = vmul.f32 %v5351_v59, %v553_v11  ;;  %v554_v27 = vadd.f32 %v7743_v62, %v361_v23  ;;  %v7744_v59 = vld [vmem:[#allocation23_spill] sm:$0xff] }
 0xf13   : > { %5366 = vrcp.f32 %v397_v21  ;;  %3587 = vadd.xlane.f32.xlu1 %v3586_v34  ;;  %v557_v8 = vadd.f32 %v7744_v59, %v364_v39 }
 0xf14   : > { %5368 = vpow2.f32 %v2622_v63  ;;  %v7221_v55 = vsel %vm149_vm0, %v569_v49, %v3792_v33  ;;  %v391_v15 = vpop.xlane.xlu0 %390  ;;  %v3072_v63 = vmul.f32 1.442695, %v3062_v60 }
 0xf15   : > { %v3796_v19 = vpop.permute.xlu1 %3795  ;;  %v5353_v6 = vpop.eup %5352  ;;  %v399_v41 = vadd.f32 %v391_v15, %v367_v31  ;;  %5370 = vrcp.f32 %v2227_v61  ;;  %v7745_v61 = vld [vmem:[#allocation20_spill] sm:$0xff] }
 0xf16   : > { %v571_v11 = vmul.f32 %v5353_v6, %v555_v24  ;;  %v556_v24 = vadd.f32 %v7745_v61, %v363_v28  ;;  %v7746_v6 = vld [vmem:[#allocation25_spill] sm:$0xff] }
 0xf17   : > { %5372 = vrcp.f32 %v399_v41  ;;  %v559_v23 = vadd.f32 %v7746_v6, %v366_v12 }
 0xf18   : > { %v5355_v51 = vpop.eup %5354  ;;  %5374 = vpow2.f32 %v3068_v50  ;;  %v4009_v5 = vsel %vm149_vm0, %v571_v11, %v3796_v19  ;;  %v3794_v33 = vpop.permute.xlu0 %3793  ;;  %v7747_v50 = vld [vmem:[#allocation82_spill] sm:$0xff]  ;;  %v3066_v19 = vsub.f32 -inf, %v6780_v9 }
 0xf19   : > { %v3798_v21 = vpop.permute.xlu1 %3797  ;;  %v5357_v49 = vpop.eup %5356  ;;  %v570_v34 = vmul.f32 %v5355_v51, %v554_v27  ;;  %v2385_v60 = vadd.f32 %v7747_v50, %v7196_v38  ;;  %5376 = vpow2.f32 %v3072_v63  ;;  %v7749_v63 = vld [vmem:[#allocation81_spill] sm:$0xff] }
 0xf1a   : > { %v573_v14 = vmul.f32 %v5357_v49, %v557_v8  ;;  %v5359_v15 = vpop.eup %5358  ;;  %v7748_v49 = vld [vmem:[#allocation22_spill] sm:$0xff]  ;;  %v2386_v40 = vadd.f32 %v7749_v63, %v7203_v18  ;;  %5378 = vpow2.f32 %v3076_v13  ;;  %v3080_v9 = vmul.f32 1.442695, %v3066_v19 }
 0xf1b   : > { %v4008_v39 = vsel %vm149_vm0, %v570_v34, %v3794_v33  ;;  %v2401_v28 = vmul.f32 %v5359_v15, %v2385_v60  ;;  %v558_v33 = vadd.f32 %v7748_v49, %v365_v44  ;;  %v7751_v60 = vld [vmem:[#allocation83_spill] sm:$0xff]  ;;  %v7752_v63 = vld [vmem:[#allocation78_spill] sm:$0xff] }
 0xf1c   : > { %v5361_v41 = vpop.eup %5360  ;;  %v3800_v11 = vpop.permute.xlu0 %3799  ;;  %v2388_v13 = vadd.f32 %v7751_v60, %v7211_v1  ;;  %5380 = vpow2.f32 %v3080_v9 }
 0xf1d   : > { %v3802_v62 = vpop.permute.xlu1 %3801  ;;  %v5363_v59 = vpop.eup %5362  ;;  %v572_v27 = vmul.f32 %v5361_v41, %v556_v24  ;;  %v7234_v8 = vsel %vm149_vm0, %v573_v14, %v3800_v11 }
 0xf1e   : > { %v575_v51 = vmul.f32 %v5363_v59, %v559_v23  ;;  %v5365_v12 = vpop.eup %5364  ;;  %v7750_v23 = vld [vmem:[#allocation24_spill] sm:$0xff] }
 0xf1f   : > { %v7238_v34 = vsel %vm149_vm0, %v572_v27, %v3798_v21  ;;  %v2402_v44 = vmul.f32 %v5365_v12, %v2386_v40  ;;  %v560_v41 = vadd.f32 %v7750_v23, %v367_v31  ;;  %v2149_v40 = vsub.f32 -inf, %v7752_v63 }
 0xf20   : > { %v5367_v38 = vpop.eup %5366  ;;  %3887 = vrot.lane.b32.xlu0 %v2401_v28, %s5514_s12  ;;  %v3804_v61 = vpop.permute.xlu0 %3803 }
 0xf21   : > { %v3806_v14 = vpop.permute.xlu1 %3805  ;;  %v5369_v24 = vpop.eup %5368  ;;  %v574_v15 = vmul.f32 %v5367_v38, %v558_v33  ;;  %v7244_v6 = vsel %vm149_vm0, %v575_v51, %v3804_v61  ;;  %v2162_v61 = vmul.f32 1.442695, %v2149_v40 }
 0xf22   : > { %v5371_v21 = vpop.eup %5370  ;;  %v2656_v19 = vmul.f32 0.0, %v5369_v24 }
 0xf23   : > { %v7248_v50 = vsel %vm149_vm0, %v574_v15, %v3802_v62  ;;  %v2404_v51 = vmul.f32 %v5371_v21, %v2388_v13 }
 0xf24   : > { %v5373_v18 = vpop.eup %5372  ;;  %3891 = vrot.lane.b32.xlu0 %v7120_v30, %s5514_s12  ;;  %v3824_v11 = vpop.permute.xlu0 %3823  ;;  %3889 = vrot.lane.b32.xlu1 %v2402_v44, %s5514_s12  ;;  %v2688_v1 = vadd.f32 %v7146_v57, %v2656_v19  ;;  %v7754_v44 = vld [vmem:[#allocation89_spill] sm:$0xff] }
 0xf25   : > { %v3826_v59 = vpop.permute.xlu1 %3825  ;;  %v5375_v27 = vpop.eup %5374  ;;  %v576_v28 = vmul.f32 %v5373_v18, %v560_v41  ;;  %v7257_v31 = vsel %vm4015_vm2, %v7221_v55, %v3824_v11 }
 0xf26   : > { %v7260_v62 = vsel %vm4015_vm2, %v4008_v39, %v3826_v59  ;;  %v3108_v30 = vmul.f32 0.0, %v5375_v27  ;;  %v5377_v33 = vpop.eup %5376  ;;  %5382 = vrcp.f32 %v2688_v1 }
 0xf27   : > { %v7264_v12 = vsel %vm149_vm0, %v576_v28, %v3806_v14  ;;  %v3110_v38 = vmul.f32 0.0, %v5377_v33  ;;  %v5379_v57 = vpop.eup %5378  ;;  %v7753_v14 = vld [vmem:[#allocation79_spill] sm:$0xff] }
 0xf28   : > { %3895 = vrot.lane.b32.xlu0 %v7128_v32, %s5514_s12  ;;  %v3828_v49 = vpop.permute.xlu0 %3827  ;;  %3893 = vrot.lane.b32.xlu1 %v2404_v51, %s5514_s12  ;;  %v3140_v39 = vadd.f32 %v7156_v10, %v3108_v30  ;;  %v3112_v9 = vmul.f32 0.0, %v5379_v57  ;;  %v2151_v24 = vsub.f32 -inf, %v7753_v14  ;;  %v3301_v11 = vadd.f32 %v6802_v47, %v3108_v30  ;;  %v7758_v47 = vld [vmem:[#allocation95_spill] sm:$0xff] }
 0xf29   : > { %v7270_v55 = vsel %vm4015_vm2, %v4009_v5, %v3828_v49  ;;  %v3142_v32 = vadd.f32 %v7166_v45, %v3110_v38  ;;  %v5381_v5 = vpop.eup %5380  ;;  %v2603_v45 = vsub.f32 -inf, %v7754_v44  ;;  %v3303_v51 = vadd.f32 %v6806_v26, %v3110_v38 }
 0xf2a   : > { %5384 = vrcp.f32 %v3140_v39  ;;  %v3144_v10 = vadd.f32 %v7174_v3, %v3112_v9  ;;  %v3114_v15 = vmul.f32 0.0, %v5381_v5  ;;  %v7756_v3 = vld [vmem:[#allocation92_spill] sm:$0xff]  ;;  %v2609_v30 = vsub.f32 -inf, %v7758_v47 }
 0xf2b   : > { %5386 = vrcp.f32 %v3142_v32  ;;  %v2612_v18 = vmul.f32 1.442695, %v2603_v45  ;;  %v2605_v60 = vsub.f32 -inf, %v7756_v3  ;;  %v3305_v26 = vadd.f32 %v6810_v36, %v3112_v9 }
 0xf2c   : > { %3899 = vrot.lane.b32.xlu0 %v7140_v17, %s5514_s12  ;;  %5388 = vpow2.f32 %v2162_v61  ;;  %v2166_v17 = vmul.f32 1.442695, %v2151_v24  ;;  %v3146_v21 = vadd.f32 %v7183_v22, %v3114_v15  ;;  %v7757_v22 = vld [vmem:[#allocation94_spill] sm:$0xff]  ;;  %v2624_v5 = vmul.f32 1.442695, %v2609_v30  ;;  %v7759_v30 = vld [vmem:[#allocation85_spill] sm:$0xff] }
 0xf2d   : > { %5390 = vrcp.f32 %v3144_v10  ;;  %v2616_v59 = vmul.f32 1.442695, %v2605_v60  ;;  %v2607_v27 = vsub.f32 -inf, %v7757_v22  ;;  %v3061_v61 = vsub.f32 -inf, %v6681_v0 }
 0xf2e   : > { %5392 = vpow2.f32 %v2166_v17  ;;  %v3307_v9 = vadd.f32 %v6814_v2, %v3114_v15  ;;  %v3592_v15 = vsel %vm287_vm1, %v7176_v7, 0.0  ;;  %v3065_v3 = vsub.f32 -inf, %v6744_v16 }
 0xf2f   : > { %5394 = vrcp.f32 %v3146_v21  ;;  %v2620_v49 = vmul.f32 1.442695, %v2607_v27  ;;  %v3070_v0 = vmul.f32 1.442695, %v3061_v61  ;;  %v3063_v21 = vsub.f32 -inf, %v6734_v52 }
 0xf30   : > { %3919 = vrot.lane.b32.xlu0 %v7149_v20, %s5515_s13  ;;  %v7755_v20 = vld [vmem:[#allocation106_spill] sm:$0xff]  ;;  %5396 = vpow2.f32 %v2612_v18 }
 0xf31   : > { %v2849_v41 = vadd.f32 %v7755_v20, %v2656_v19  ;;  %5398 = vpow2.f32 %v2616_v59  ;;  %v3074_v18 = vmul.f32 1.442695, %v3063_v21  ;;  %v3067_v59 = vsub.f32 -inf, %v6750_v35 }
 0xf32   : > { %5400 = vpow2.f32 %v2620_v49 }
 0xf33   : > { %v5383_v23 = vpop.eup %5382  ;;  %5402 = vpow2.f32 %v2624_v5 }
 0xf34   : > { %3923 = vrot.lane.b32.xlu0 %v7159_v56, %s5515_s13  ;;  %v2865_v13 = vmul.f32 %v5383_v23, %v2849_v41 }
 0xf37   : > { %v5385_v56 = vpop.eup %5384 }
 0xf38   : > { %3927 = vrot.lane.b32.xlu0 %v7168_v53, %s5515_s13  ;;  %v3317_v53 = vmul.f32 %v5385_v56, %v3301_v11  ;;  %v5387_v1 = vpop.eup %5386  ;;  %v3078_v11 = vmul.f32 1.442695, %v3065_v3 }
 0xf39   : > { %v5389_v57 = vpop.eup %5388  ;;  %v3319_v40 = vmul.f32 %v5387_v1, %v3303_v51 }
 0xf3a   : > { %v5391_v32 = vpop.eup %5390  ;;  %v2197_v38 = vmul.f32 0.0, %v5389_v57 }
 0xf3b   : > { %v5393_v10 = vpop.eup %5392  ;;  %v3321_v17 = vmul.f32 %v5391_v32, %v3305_v26  ;;  %v7760_v26 = vld [vmem:[#allocation87_spill] sm:$0xff] }
 0xf3c   : > { %3931 = vrot.lane.b32.xlu0 %v2865_v13, %s5515_s13  ;;  %v5395_v44 = vpop.eup %5394  ;;  %v2229_v36 = vadd.f32 %v7118_v43, %v2197_v38  ;;  %v2199_v45 = vmul.f32 0.0, %v5393_v10  ;;  %v7761_v10 = vld [vmem:[#allocation99_spill] sm:$0xff] }
 0xf3d   : > { %v3832_v28 = vpop.permute.xlu0 %3831 }
 0xf3e   : > { %v4020_v19 = vsel %vm4015_vm2, %v7234_v8, %v3832_v28  ;;  %5404 = vrcp.f32 %v2229_v36  ;;  %v2231_v2 = vadd.f32 %v7125_v46, %v2199_v45  ;;  %v2392_v5 = vadd.f32 %v7760_v26, %v2199_v45  ;;  %v7762_v45 = vld [vmem:[#allocation101_spill] sm:$0xff] }
 0xf3f   : > { %5406 = vpow2.f32 %v3070_v0 }
 0xf40   : > { %3951 = vrot.lane.b32.xlu0 %v3317_v53, %s5516_s14  ;;  %5408 = vrcp.f32 %v2231_v2 }
 0xf41   : > { %v3836_v33 = vpop.permute.xlu0 %3835  ;;  %v3830_v39 = vpop.permute.xlu1 %3829  ;;  %5410 = vpow2.f32 %v3074_v18  ;;  %v7764_v18 = vld [vmem:[#allocation105_spill] sm:$0xff] }
 0xf42   : > { %v4022_v63 = vsel %vm4015_vm2, %v7244_v6, %v3836_v33  ;;  %v4019_v8 = vsel %vm4015_vm2, %v7238_v34, %v3830_v39  ;;  %v2390_v33 = vadd.f32 %v7759_v30, %v2197_v38 }
 0xf44   : > { %3955 = vrot.lane.b32.xlu0 %v3319_v40, %s5516_s14 }
 0xf45   : > { %v3856_v14 = vpop.permute.xlu0 %3855  ;;  %v3834_v24 = vpop.permute.xlu1 %3833 }
 0xf46   : > { %v7306_v6 = vsel %vm4024_vm3, %v7257_v31, %v3856_v14  ;;  %v4021_v34 = vsel %vm4015_vm2, %v7248_v50, %v3834_v24  ;;  %v5397_v31 = vpop.eup %5396  ;;  %v3323_v50 = vmul.f32 %v5395_v44, %v3307_v9 }
 0xf47   : > { %v2651_v52 = vmul.f32 0.0, %v5397_v31  ;;  %v5399_v13 = vpop.eup %5398 }
 0xf48   : > { %3959 = vrot.lane.b32.xlu0 %v3321_v17, %s5516_s14  ;;  %v5401_v27 = vpop.eup %5400 }
 0xf49   : > { %v3860_v23 = vpop.permute.xlu0 %3859  ;;  %v3838_v20 = vpop.permute.xlu1 %3837  ;;  %v2683_v7 = vadd.f32 %v7134_v54, %v2651_v52  ;;  %v2655_v53 = vmul.f32 0.0, %v5401_v27  ;;  %v3082_v54 = vmul.f32 1.442695, %v3067_v59  ;;  %v2844_v17 = vadd.f32 %v7761_v10, %v2651_v52  ;;  %v7767_v59 = vld [vmem:[#allocation98_spill] sm:$0xff]  ;;  %v7768_v27 = vld [vmem:[#allocation108_spill] sm:$0xff] }
 0xf4a   : > { %v7316_v41 = vsel %vm4024_vm3, %v7270_v55, %v3860_v23  ;;  %v4023_v43 = vsel %vm4015_vm2, %v7264_v12, %v3838_v20  ;;  %v2653_v12 = vmul.f32 0.0, %v5399_v13  ;;  %v5403_v51 = vpop.eup %5402 }
 0xf4b   : > { %5412 = vrcp.f32 %v2683_v7  ;;  %v2687_v35 = vadd.f32 %v7154_v4, %v2655_v53  ;;  %v5405_v47 = vpop.eup %5404  ;;  %v2657_v39 = vmul.f32 0.0, %v5403_v51  ;;  %v7766_v7 = vld [vmem:[#allocation107_spill] sm:$0xff] }
 0xf4c   : > { %3963 = vrot.lane.b32.xlu0 %v3323_v50, %s5516_s14  ;;  %3593 = vadd.xlane.f32.xlu1 %v3592_v15  ;;  %5414 = vpow2.f32 %v3078_v11  ;;  %v2846_v0 = vadd.f32 %v7762_v45, %v2653_v12  ;;  %v7763_v50 = vld [vmem:[#allocation103_spill] sm:$0xff] }
 0xf4d   : > { %v3864_v55 = vpop.permute.xlu0 %3863  ;;  %v3858_v60 = vpop.permute.xlu1 %3857  ;;  %v2689_v40 = vadd.f32 %v7164_v25, %v2657_v39  ;;  %v2850_v3 = vadd.f32 %v7764_v18, %v2657_v39  ;;  %v7771_v39 = vld [vmem:[#allocation27_spill] sm:$0xff] }
 0xf4e   : > { %v7326_v56 = vsel %vm4024_vm3, %v4020_v19, %v3864_v55  ;;  %v7330_v46 = vsel %vm4024_vm3, %v7260_v62, %v3858_v60  ;;  %v2685_v62 = vadd.f32 %v7144_v29, %v2653_v12  ;;  %v7765_v55 = vld [vmem:[#allocation96_spill] sm:$0xff]  ;;  %v7775_v18 = vld [vmem:[#allocation31_spill] sm:$0xff] }
 0xf4f   : > { %v3519_v60 = vsub.f32 -inf, %v7765_v55 }
 0xf50   : > { %5416 = vrcp.f32 %v2685_v62 }
 0xf51   : > { %v3868_v22 = vpop.permute.xlu0 %3867  ;;  %v3862_v16 = vpop.permute.xlu1 %3861  ;;  %5418 = vpow2.f32 %v3082_v54  ;;  %v3528_v11 = vmul.f32 1.442695, %v3519_v60  ;;  %v7769_v54 = vld [vmem:[#allocation26_spill] sm:$0xff] }
 0xf52   : > { %v7335_v28 = vsel %vm4024_vm3, %v4022_v63, %v3868_v22  ;;  %v7338_v19 = vsel %vm4024_vm3, %v4019_v8, %v3862_v16  ;;  %v5407_v63 = vpop.eup %5406  ;;  %5420 = vrcp.f32 %v2687_v35  ;;  %v2406_v8 = vmul.f32 %v5405_v47, %v2390_v33  ;;  %v7770_v47 = vld [vmem:[#allocation109_spill] sm:$0xff] }
 0xf53   : > { %v5409_v32 = vpop.eup %5408  ;;  %v3109_v61 = vmul.f32 0.0, %v5407_v63  ;;  %5422 = vrcp.f32 %v2689_v40  ;;  %v3521_v22 = vsub.f32 -inf, %v7767_v59 }
 0xf54   : > { %v5411_v4 = vpop.eup %5410  ;;  %v2408_v14 = vmul.f32 %v5409_v32, %v2392_v5  ;;  %v7773_v5 = vld [vmem:[#allocation28_spill] sm:$0xff] }
 0xf55   : > { %v3866_v1 = vpop.permute.xlu1 %3865  ;;  %v3141_v38 = vadd.f32 %v7172_v42, %v3109_v61  ;;  %v3302_v12 = vadd.f32 %v7766_v7, %v3109_v61  ;;  %v3520_v61 = vsub.f32 -inf, %v7773_v5 }
 0xf56   : > { %v7342_v49 = vsel %vm4024_vm3, %v4021_v34, %v3866_v1  ;;  %v3111_v34 = vmul.f32 0.0, %v5411_v4  ;;  %v3523_v1 = vsub.f32 -inf, %v7769_v54 }
 0xf57   : > { %5424 = vrcp.f32 %v3141_v38 }
 0xf58   : > { %v5413_v24 = vpop.eup %5412  ;;  %v3143_v25 = vadd.f32 %v7181_v37, %v3111_v34  ;;  %v3304_v62 = vadd.f32 %v7768_v27, %v3111_v34  ;;  %v3536_v33 = vmul.f32 1.442695, %v3523_v1 }
 0xf59   : > { %v3870_v57 = vpop.permute.xlu1 %3869  ;;  %v5415_v44 = vpop.eup %5414  ;;  %v2860_v36 = vmul.f32 %v5413_v24, %v2844_v17  ;;  %v7774_v24 = vld [vmem:[#allocation30_spill] sm:$0xff] }
 0xf5a   : > { %v7347_v29 = vsel %vm4024_vm3, %v4023_v43, %v3870_v57  ;;  %v3113_v21 = vmul.f32 0.0, %v5415_v44  ;;  %5426 = vrcp.f32 %v3143_v25  ;;  %v2848_v43 = vadd.f32 %v7763_v50, %v2655_v53 }
 0xf5b   : > { %v3532_v53 = vmul.f32 1.442695, %v3521_v22  ;;  %v3518_v57 = vsub.f32 -inf, %v7771_v39  ;;  %v3522_v10 = vsub.f32 -inf, %v7774_v24 }
 0xf5c   : > { %v3145_v42 = vadd.f32 %v7188_v48, %v3113_v21  ;;  %v3306_v30 = vadd.f32 %v7770_v47, %v3113_v21 }
 0xf5d   : > { %3897 = vrot.lane.b32.xlu1 %v2406_v8, %s5514_s12  ;;  %v5417_v9 = vpop.eup %5416  ;;  %v7772_v8 = vld [vmem:[#allocation110_spill] sm:$0xff]  ;;  %v3526_v26 = vmul.f32 1.442695, %v3518_v57  ;;  %v3534_v44 = vmul.f32 1.442695, %v3522_v10 }
 0xf5e   : > { %v5419_v23 = vpop.eup %5418  ;;  %v2862_v20 = vmul.f32 %v5417_v9, %v2846_v0  ;;  %5428 = vrcp.f32 %v3145_v42 }
 0xf5f   : > { %v5421_v31 = vpop.eup %5420  ;;  %v3115_v2 = vmul.f32 0.0, %v5419_v23 }
 0xf60   : > { %v2864_v15 = vmul.f32 %v5421_v31, %v2848_v43  ;;  %v5423_v52 = vpop.eup %5422 }
 0xf61   : > { %3901 = vrot.lane.b32.xlu1 %v2408_v14, %s5514_s12  ;;  %v3147_v37 = vadd.f32 %v7192_v58, %v3115_v2  ;;  %v2866_v48 = vmul.f32 %v5423_v52, %v2850_v3  ;;  %v3308_v32 = vadd.f32 %v7772_v8, %v3115_v2  ;;  %v3530_v14 = vmul.f32 1.442695, %v3520_v61 }
 0xf62   : > { %v3525_v3 = vsub.f32 -inf, %v7775_v18 }
 0xf63   : > { %5430 = vrcp.f32 %v3147_v37 }
 0xf64   : > { %v5425_v13 = vpop.eup %5424  ;;  %5432 = vpow2.f32 %v3528_v11  ;;  %v3540_v22 = vmul.f32 1.442695, %v3525_v3 }
 0xf65   : > { %3921 = vrot.lane.b32.xlu1 %v2860_v36, %s5515_s13  ;;  %v3318_v16 = vmul.f32 %v5425_v13, %v3302_v12  ;;  %5434 = vpow2.f32 %v3532_v53 }
 0xf66   : > { %5436 = vpow2.f32 %v3536_v33 }
 0xf67   : > { %v5427_v58 = vpop.eup %5426  ;;  %5438 = vpow2.f32 %v3526_v26 }
 0xf68   : > { %v3320_v51 = vmul.f32 %v5427_v58, %v3304_v62  ;;  %5440 = vpow2.f32 %v3530_v14 }
 0xf69   : > { %3925 = vrot.lane.b32.xlu1 %v2862_v20, %s5515_s13 }
 0xf6b   : > { %v5429_v35 = vpop.eup %5428 }
 0xf6c   : > { %v3322_v63 = vmul.f32 %v5429_v35, %v3306_v30 }
 0xf6d   : > { %3929 = vrot.lane.b32.xlu1 %v2864_v15, %s5515_s13 }
 0xf70   : > { %v5431_v40 = vpop.eup %5430 }
 0xf71   : > { %3933 = vrot.lane.b32.xlu1 %v2866_v48, %s5515_s13  ;;  %v3324_v4 = vmul.f32 %v5431_v40, %v3308_v32  ;;  %v5433_v38 = vpop.eup %5432 }
 0xf72   : > { %v3567_v17 = vmul.f32 0.0, %v5433_v38  ;;  %v5435_v34 = vpop.eup %5434 }
 0xf73   : > { %v3569_v9 = vmul.f32 0.0, %v5435_v34  ;;  %v5437_v45 = vpop.eup %5436 }
 0xf74   : > { %v3571_v42 = vmul.f32 0.0, %v5437_v45  ;;  %v5439_v31 = vpop.eup %5438 }
 0xf75   : > { %3953 = vrot.lane.b32.xlu1 %v3318_v16, %s5516_s14  ;;  %v3566_v2 = vmul.f32 0.0, %v5439_v31  ;;  %v5441_v52 = vpop.eup %5440 }
 0xf76   : > { %v3568_v7 = vmul.f32 0.0, %v5441_v52 }
 0xf79   : > { %3957 = vrot.lane.b32.xlu1 %v3320_v51, %s5516_s14 }
 0xf7c   : > { %v5032_v23 = vpop.f32.mrf.mxu0 }
 0xf7d   : > { %3961 = vrot.lane.b32.xlu1 %v3322_v63, %s5516_s14  ;;  %v3760_v48 = vadd.f32 %v5032_v23, %v3567_v17 }
 0xf7e   : > { %v3720_v43 = vpop.f32.mrf.mxu0 }
 0xf7f   : > { %v3759_v40 = vadd.f32 %v3720_v43, %v3566_v2 }
 0xf81   : > { %3965 = vrot.lane.b32.xlu1 %v3324_v4, %s5516_s14 }
 0xf84   : > { %v5035_v37 = vpop.f32.mrf.mxu0 }
 0xf85   : > { %v3762_v62 = vadd.f32 %v5035_v37, %v3569_v9 }
 0xf86   : > { %v3730_v12 = vpop.f32.mrf.mxu0 }
 0xf87   : > { %v3579_v25 = vpop.xlane.xlu0 %3578  ;;  %v3761_v61 = vadd.f32 %v3730_v12, %v3568_v7 }
 0xf88   : > { %v3599_v36 = vadd.f32 %v3579_v25, %v3567_v17  ;;  %v5038_v54 = vpop.f32.mrf.mxu0 }
 0xf89   : > { %v3764_v33 = vadd.f32 %v5038_v54, %v3571_v42 }
 0xf8a   : > { %5442 = vrcp.f32 %v3599_v36  ;;  %v3740_v14 = vpop.f32.mrf.mxu0 }
 0xf8b   : > { %5444 = vpow2.f32 %v3534_v44  ;;  %v3585_v0 = vpop.xlane.xlu0 %3584 }
 0xf8c   : > { %v3601_v21 = vadd.f32 %v3585_v0, %v3569_v9 }
 0xf8e   : > { %5446 = vrcp.f32 %v3601_v21  ;;  %v7776_v21 = vld [vmem:[#allocation29_spill] sm:$0xff] }
 0xf8f   : > { %v3591_v20 = vpop.xlane.xlu0 %3590  ;;  %v3524_v23 = vsub.f32 -inf, %v7776_v21 }
 0xf90   : > { %v3603_v50 = vadd.f32 %v3591_v20, %v3571_v42 }
 0xf92   : > { %5448 = vrcp.f32 %v3603_v50  ;;  %v3538_v50 = vmul.f32 1.442695, %v3524_v23 }
 0xf93   : > { %v3597_v15 = vpop.xlane.xlu0 %3596 }
 0xf94   : > { %v3576_v55 = vpop.xlane.xlu1 %3575 }
 0xf95   : > { %v3598_v60 = vadd.f32 %v3576_v55, %v3566_v2 }
 0xf97   : > { %v5443_v13 = vpop.eup %5442  ;;  %v7380_v11 = vpop.permute.xlu0 %3887  ;;  %5450 = vrcp.f32 %v3598_v60 }
 0xf98   : > { %v5445_v59 = vpop.eup %5444  ;;  %v3776_v16 = vmul.f32 %v5443_v13, %v3760_v48  ;;  %v3582_v58 = vpop.xlane.xlu1 %3581 }
 0xf99   : > { %v3600_v27 = vadd.f32 %v3582_v58, %v3568_v7  ;;  %v3570_v1 = vmul.f32 0.0, %v5445_v59 }
 0xf9a   : > { %3985 = vrot.lane.b32.xlu1 %v3776_v16, %s5517_s15 }
 0xf9b   : > { %v5447_v53 = vpop.eup %5446  ;;  %v7383_v51 = vpop.permute.xlu0 %3891  ;;  %5452 = vrcp.f32 %v3600_v27  ;;  %v3763_v17 = vadd.f32 %v3740_v14, %v3570_v1 }
 0xf9c   : > { %5454 = vpow2.f32 %v3540_v22  ;;  %v3778_v35 = vmul.f32 %v5447_v53, %v3762_v62  ;;  %v3588_v47 = vpop.xlane.xlu1 %3587 }
 0xf9d   : > { %v3602_v30 = vadd.f32 %v3588_v47, %v3570_v1 }
 0xf9e   : > { %3989 = vrot.lane.b32.xlu1 %v3778_v35, %s5517_s15 }
 0xf9f   : > { %v5449_v39 = vpop.eup %5448  ;;  %v7386_v57 = vpop.permute.xlu0 %3895  ;;  %5456 = vrcp.f32 %v3602_v30 }
 0xfa0   : > { %v3780_v63 = vmul.f32 %v5449_v39, %v3764_v33  ;;  %v3890_v2 = vpop.permute.xlu1 %3889  ;;  %v4038_v21 = vsel %vm4033_vm4, %v7326_v56, %v7386_v57 }
 0xfa2   : > { %3993 = vrot.lane.b32.xlu1 %v3780_v63, %s5517_s15 }
 0xfa3   : > { %v3900_v8 = vpop.permute.xlu0 %3899 }
 0xfa4   : > { %v5451_v32 = vpop.eup %5450  ;;  %v4040_v26 = vsel %vm4033_vm4, %v7335_v28, %v3900_v8 }
 0xfa5   : > { %v3775_v5 = vmul.f32 %v5451_v32, %v3759_v40 }
 0xfa7   : > { %v7391_v4 = vpop.permute.xlu0 %3919  ;;  %3983 = vrot.lane.b32.xlu0 %v3775_v5, %s5517_s15 }
 0xfa8   : > { %v5453_v38 = vpop.eup %5452 }
 0xfa9   : > { %v5455_v24 = vpop.eup %5454  ;;  %v3777_v10 = vmul.f32 %v5453_v38, %v3761_v61 }
 0xfaa   : > { %v3573_v25 = vmul.f32 0.0, %v5455_v24 }
 0xfab   : > { %v7394_v34 = vpop.permute.xlu0 %3923  ;;  %3987 = vrot.lane.b32.xlu0 %v3777_v10, %s5517_s15 }
 0xfac   : > { %v5457_v44 = vpop.eup %5456  ;;  %v3605_v9 = vadd.f32 %v3597_v15, %v3573_v25  ;;  %v3894_v15 = vpop.permute.xlu1 %3893 }
 0xfad   : > { %v3779_v36 = vmul.f32 %v5457_v44, %v3763_v17  ;;  %v4034_v17 = vsel %vm4033_vm4, %v7306_v6, %v7380_v11 }
 0xfae   : > { %5458 = vrcp.f32 %v3605_v9  ;;  %v4036_v9 = vsel %vm4033_vm4, %v7316_v41, %v7383_v51 }
 0xfaf   : > { %v7397_v28 = vpop.permute.xlu0 %3927  ;;  %3991 = vrot.lane.b32.xlu0 %v3779_v36, %s5517_s15  ;;  %5460 = vpow2.f32 %v3538_v50 }
 0xfb0   : > { %v4047_v41 = vsel %vm4042_vm5, %v4038_v21, %v7397_v28 }
 0xfb3   : > { %v3932_v45 = vpop.permute.xlu0 %3931 }
 0xfb4   : > { %v7401_v0 = vsel %vm4042_vm5, %v4040_v26, %v3932_v45  ;;  %v4045_v45 = vsel %vm4042_vm5, %v4036_v9, %v7394_v34 }
 0xfb7   : > { %v3952_v1 = vpop.permute.xlu0 %3951 }
 0xfbb   : > { %v5459_v31 = vpop.eup %5458  ;;  %v3956_v47 = vpop.permute.xlu0 %3955 }
 0xfbc   : > { %v5461_v37 = vpop.eup %5460  ;;  %v4054_v6 = vsel %vm4051_vm7, %v4045_v45, %v3956_v47 }
 0xfbd   : > { %v5041_v42 = vpop.f32.mrf.mxu0  ;;  %v3572_v52 = vmul.f32 0.0, %v5461_v37 }
 0xfbe   : > { %v3766_v20 = vadd.f32 %v5041_v42, %v3573_v25 }
 0xfbf   : > { %v3750_v13 = vpop.f32.mrf.mxu0  ;;  %v3960_v40 = vpop.permute.xlu0 %3959 }
 0xfc0   : > { %v3782_v43 = vmul.f32 %v5459_v31, %v3766_v20  ;;  %v3765_v12 = vadd.f32 %v3750_v13, %v3572_v52  ;;  %v4056_v51 = vsel %vm4051_vm7, %v4047_v41, %v3960_v40 }
 0xfc2   : > { %3997 = vrot.lane.b32.xlu1 %v3782_v43, %s5517_s15 }
 0xfc3   : > { %v3964_v24 = vpop.permute.xlu0 %3963 }
 0xfc4   : > { %v4058_v56 = vsel %vm4051_vm7, %v7401_v0, %v3964_v24 }
 0xfd5   : > { %v3594_v18 = vpop.xlane.xlu1 %3593 }
 0xfd6   : > { %v3604_v3 = vadd.f32 %v3594_v18, %v3572_v52 }
 0xfd8   : > { %5462 = vrcp.f32 %v3604_v3 }
 0xfd9   : > { %v3898_v55 = vpop.permute.xlu1 %3897 }
 0xfda   : > { %v4039_v61 = vsel %vm4033_vm4, %v7342_v49, %v3898_v55  ;;  %v4043_v49 = vsel %vm4042_vm5, %v4034_v17, %v7391_v4 }
 0xfdb   : > { %v4052_v44 = vsel %vm4051_vm7, %v4043_v49, %v3952_v1 }
 0xfdd   : > { %v3902_v60 = vpop.permute.xlu1 %3901 }
 0xfde   : > { %v4041_v48 = vsel %vm4033_vm4, %v7347_v29, %v3902_v60  ;;  %v4035_v29 = vsel %vm4033_vm4, %v7330_v46, %v3890_v2  ;;  %v4037_v46 = vsel %vm4033_vm4, %v7338_v19, %v3894_v15 }
 0xfe1   : > { %v3922_v7 = vpop.permute.xlu1 %3921 }
 0xfe2   : > { %v4044_v30 = vsel %vm4042_vm5, %v4035_v29, %v3922_v7 }
 0xfe5   : > { %v5463_v59 = vpop.eup %5462  ;;  %v3926_v22 = vpop.permute.xlu1 %3925 }
 0xfe6   : > { %v3781_v16 = vmul.f32 %v5463_v59, %v3765_v12  ;;  %v4046_v8 = vsel %vm4042_vm5, %v4037_v46, %v3926_v22 }
 0xfe8   : > { %3995 = vrot.lane.b32.xlu0 %v3781_v16, %s5517_s15 }
 0xfe9   : > { %v3930_v58 = vpop.permute.xlu1 %3929 }
 0xfea   : > { %v4048_v38 = vsel %vm4042_vm5, %v4039_v61, %v3930_v58 }
 0xfed   : > { %v3934_v27 = vpop.permute.xlu1 %3933 }
 0xfee   : > { %v4050_v42 = vsel %vm4042_vm5, %v4041_v48, %v3934_v27 }
 0xff1   : > { %v3954_v62 = vpop.permute.xlu1 %3953 }
 0xff2   : > { %v4053_v33 = vsel %vm4051_vm7, %v4044_v30, %v3954_v62 }
 0xff5   : > { %v3958_v53 = vpop.permute.xlu1 %3957 }
 0xff6   : > { %v4055_v32 = vsel %vm4051_vm7, %v4046_v8, %v3958_v53 }
 0xff9   : > { %v3962_v54 = vpop.permute.xlu1 %3961 }
 0xffa   : > { %v4057_v19 = vsel %vm4051_vm7, %v4048_v38, %v3962_v54 }
 0xffd   : > { %v3966_v35 = vpop.permute.xlu1 %3965 }
 0xffe   : > { %v4059_v20 = vsel %vm4051_vm7, %v4050_v42, %v3966_v35 }
0x100c   : > { %v3986_v39 = vpop.permute.xlu1 %3985 }
0x100d   : > { %v4062_v63 = vsel %vm4060_vm6, %v4053_v33, %v3986_v39 }
0x100e   : > { %4071 = vst.msk [vmem:[%s7416_s18 + $0x8] sm:$0xff] %vm4069_vm8, %v4062_v63 }
0x1010   : > { %v3990_v26 = vpop.permute.xlu1 %3989 }
0x1011   : > { %v4064_v5 = vsel %vm4060_vm6, %v4055_v32, %v3990_v26 }
0x1012   : > { %4073 = vst.msk [vmem:[%s7416_s18 + $0x18] sm:$0xff] %vm4069_vm8, %v4064_v5 }
0x1014   : > { %v3994_v14 = vpop.permute.xlu1 %3993 }
0x1015   : > { %v4066_v10 = vsel %vm4060_vm6, %v4057_v19, %v3994_v14 }
0x1016   : > { %4075 = vst.msk [vmem:[%s7416_s18 + $0x28] sm:$0xff] %vm4069_vm8, %v4066_v10 }
0x1019   : > { %v3984_v25 = vpop.permute.xlu0 %3983 }
0x101a   : > { %v4061_v36 = vsel %vm4060_vm6, %v4052_v44, %v3984_v25 }
0x101b   : > { %4070 = vst.msk [vmem:[%s7416_s18] sm:$0xff] %vm4069_vm8, %v4061_v36 }
0x101d   : > { %v3988_v11 = vpop.permute.xlu0 %3987 }
0x101e   : > { %v4063_v4 = vsel %vm4060_vm6, %v4054_v6, %v3988_v11 }
0x101f   : > { %4072 = vst.msk [vmem:[%s7416_s18 + $0x10] sm:$0xff] %vm4069_vm8, %v4063_v4 }
0x1021   : > { %v3992_v23 = vpop.permute.xlu0 %3991 }
0x1022   : > { %v4065_v34 = vsel %vm4060_vm6, %v4056_v51, %v3992_v23 }
0x1023   : > { %4074 = vst.msk [vmem:[%s7416_s18 + $0x20] sm:$0xff] %vm4069_vm8, %v4065_v34 }
0x1034   : > { %v3998_v31 = vpop.permute.xlu1 %3997 }
0x1035   : > { %v4068_v50 = vsel %vm4060_vm6, %v4059_v20, %v3998_v31 }
0x1036   : > { %4077 = vst.msk [vmem:[%s7416_s18 + $0x38] sm:$0xff] %vm4069_vm8, %v4068_v50 }
0x105a   : > { %v3996_v57 = vpop.permute.xlu0 %3995 }
0x105b   : > { %v4067_v28 = vsel %vm4060_vm6, %v4058_v56, %v3996_v57 }
0x105c   : > { %4076 = vst.msk [vmem:[%s7416_s18 + $0x30] sm:$0xff] %vm4069_vm8, %v4067_v28 }
0x105d PF: > { %s11_s6 = sadd.s32 1, %s5486_s6  }
0x105e   : > { %p8_p4 = scmp.ge.s32.totalorder %s11_s6, 4  }
0x1060   :  { %10 = sbr.rel (!%p8_p4) target bundleno = 1 (0x1), region = 54 }

</bundles_post_ra>
